<compile_context>
chip_gen: v6e
topology: v6e:2x2x1
jax: 0.10.0
libtpu: 0.0.40
codegen_flags: <defaults>
</compile_context>

<pallas_src>
import numpy as np

import jax
import jax.numpy as jnp
from jax import lax
from jax.experimental import pallas as pl
from jax.experimental.pallas import tpu as pltpu

# ---- small-scale SAFRON geometry (PyTorch originals in parentheses) ----
C = 3                                   # channels
KC = 5                                  # context-encoder conv kernel   (41)
KP = 20                                 # extracted patch size          (296)
KOUT = KP - KC + 1                      # 16                            (256)
STRIDE = 12                             # patch stride                  (236)
PAD = 2                                 # ConstantPad2d                 (20)
H_IN = 28                               # mask spatial size             (728)
H_PADDED = H_IN + 2 * PAD               # 32                            (768)
NPATCH = (H_PADDED - KP) // STRIDE + 1  # 2 patches per dim             (3)
H_OUT = (NPATCH - 1) * STRIDE + KOUT    # 28                            (728)
EPS = 1e-5                              # BatchNorm2d eps

LANEW = C * H_PADDED                    # 96: packed lane width (<= 128 -> 1 lane tile)
W_ACC = LANEW - (KC - 1)                # 92: slice width valid for every dx shift
NW = C * KC * KC                        # 75 lane-blocked weight rows

# --- static-geometry guards for the fusion shortcuts used below (fail loudly) ---
assert KOUT == KP - KC + 1
assert (H_PADDED - KP) % STRIDE == 0                    # patches tile the padded image exactly
assert H_OUT == H_PADDED - KC + 1                        # full-image conv == per-patch conv
assert H_OUT == (NPATCH - 1) * STRIDE + KOUT             # fold output size consistent
assert (C - 1) * H_PADDED + H_OUT == W_ACC               # packed block-reduce slices fit

# --- fold weights baked at trace time: patch mask / overlap count (numpy) ---
_cnt1 = np.zeros(H_OUT, np.float64)
for _i in range(NPATCH):
    _cnt1[_i * STRIDE:_i * STRIDE + KOUT] += 1.0
_CNT2 = np.outer(_cnt1, _cnt1)
assert (_CNT2 > 0).all(), "fold does not cover every output pixel"
_FOLD_W_NP = np.zeros((NPATCH * NPATCH, H_OUT, H_OUT), np.float32)
for _i in range(NPATCH):
    for _j in range(NPATCH):
        _m = np.zeros((H_OUT, H_OUT), np.float64)
        _m[_i * STRIDE:_i * STRIDE + KOUT, _j * STRIDE:_j * STRIDE + KOUT] = 1.0
        _FOLD_W_NP[_i * NPATCH + _j] = (_m / _CNT2).astype(np.float32)


# ---------------------------------------------------------------------------
# Fused kernel: lane-packed valid conv -> per-patch BN(train) + ReLU (+identity
# generator) -> baked-weight fold.  One full-width store at the end.
# ---------------------------------------------------------------------------
def safron_fused_kernel(wrow_ref, gamma_ref, beta_ref, img_ref, foldw_ref, out_ref):
    f32 = jnp.float32
    img = img_ref[...]                                    # (H_PADDED, LANEW) packed channels

    # ---- Conv2d(C, C, KC), valid, over the whole padded image (lane-packed) ----
    # Each patch's conv output is a sub-window of this full conv, so it is
    # computed once.  One lane realignment per dx; sublane-only slices per dy;
    # every tap is reused for all C output channels.  Bias omitted: it cancels
    # in the train-mode BatchNorm mean subtraction below.
    accs = [jnp.zeros((H_OUT, W_ACC), f32) for _ in range(C)]
    for dx in range(KC):
        sh = img[:, dx:dx + W_ACC]                        # (H_PADDED, W_ACC)
        for dy in range(KC):
            tap = sh[dy:dy + H_OUT, :]                    # (H_OUT, W_ACC) sublane slice
            for co in range(C):
                widx = (co * KC + dy) * KC + dx
                wv = wrow_ref[widx:widx + 1, :]           # (1, W_ACC) lane-blocked weights
                accs[co] = accs[co] + wv * tap

    # ---- reduce the C packed lane blocks -> per-output-channel conv planes ----
    convs = []
    for co in range(C):
        r = accs[co]
        tot = r[:, 0:H_OUT]
        for ci in range(1, C):
            tot = tot + r[:, ci * H_PADDED:ci * H_PADDED + H_OUT]
        convs.append(tot)                                 # (H_OUT, H_OUT)

    # ---- per-patch BatchNorm2d (training, batch of one patch) + ReLU + fold ----
    inv_area = 1.0 / float(KOUT * KOUT)
    planes = []
    for co in range(C):
        g = gamma_ref[co]                                 # SMEM scalars
        b = beta_ref[co]
        plane = convs[co]
        acc = jnp.zeros((H_OUT, H_OUT), f32)
        for i in range(NPATCH):
            for j in range(NPATCH):
                r0, c0 = i * STRIDE, j * STRIDE
                # windowed statistics (biased variance, per-channel, N=1 patch)
                win = plane[r0:r0 + KOUT, c0:c0 + KOUT]
                mean = jnp.sum(win, axis=(0, 1), keepdims=True) * inv_area
                d = win - mean
                var = jnp.sum(d * d, axis=(0, 1), keepdims=True) * inv_area
                scale = g * lax.rsqrt(var + EPS)          # reassociated affine, EUP rsqrt
                # normalize + ReLU on the full plane, then weighted (mask/divider)
                # overlap-add with a baked constant -> no iota masks, no divide.
                normed = jnp.maximum((plane - mean) * scale + b, 0.0)
                # TODO(synk): image_generator (pix2pix / residual) source is not
                # provided in the module; treated as identity here.
                acc = acc + normed * foldw_ref[i * NPATCH + j]
        planes.append(acc)

    out_ref[...] = jnp.stack(planes, axis=0)              # single full-width store


# ---------------------------------------------------------------------------
# Forward wrapper: only layout plumbing (pad + channel->lane packing, weight-row
# replication); all arithmetic is inside the kernel.
# ---------------------------------------------------------------------------
def safron_forward(mask, w, b, gamma, beta):
    # mask: (1, C, H_IN, H_IN) NCHW like the PyTorch module.
    # `b` (Conv2d bias) is accepted for interface parity but unused: it cancels
    # exactly under train-mode BatchNorm, so the forward output is unchanged.
    del b

    x = mask[0].astype(jnp.float32)                                   # (C, H_IN, H_IN)
    # ConstantPad2d + channel->lane packing (layout plumbing, lane-dense input)
    xpad = jnp.pad(x, ((0, 0), (PAD, PAD), (PAD, PAD)))               # (C, H_PADDED, H_PADDED)
    img_packed = jnp.transpose(xpad, (1, 0, 2)).reshape(H_PADDED, LANEW)

    # lane-blocked weight rows: row (co*KC+dy)*KC+dx, lanes [ci*H_PADDED + k] = w[co,ci,dy,dx]
    wt = jnp.transpose(w.astype(jnp.float32), (0, 2, 3, 1)).reshape(NW, C)
    wrow = jnp.repeat(wt, H_PADDED, axis=1)[:, :W_ACC]                # (NW, W_ACC)

    foldw = jnp.asarray(_FOLD_W_NP)                                   # baked mask/divider maps

    img = pl.pallas_call(
        safron_fused_kernel,
        out_shape=jax.ShapeDtypeStruct((C, H_OUT, H_OUT), jnp.float32),
        in_specs=[
            pl.BlockSpec(memory_space=pltpu.MemorySpace.VMEM),   # wrow  (NW, W_ACC)
            pl.BlockSpec(memory_space=pltpu.MemorySpace.SMEM),   # gamma (C,)
            pl.BlockSpec(memory_space=pltpu.MemorySpace.SMEM),   # beta  (C,)
            pl.BlockSpec(memory_space=pltpu.MemorySpace.VMEM),   # packed padded mask (H_PADDED, LANEW)
            pl.BlockSpec(memory_space=pltpu.MemorySpace.VMEM),   # baked fold weights (NPATCH^2, H_OUT, H_OUT)
        ],
        out_specs=pl.BlockSpec(memory_space=pltpu.MemorySpace.VMEM),
    )(wrow, gamma.astype(jnp.float32), beta.astype(jnp.float32), img_packed, foldw)
    return img[None]                                                  # (1, C, H_OUT, H_OUT)


# ---------------------------------------------------------------------------
# Pure-JAX reference (includes the conv bias; verifies the bias-cancellation and
# every fusion shortcut).  Elementwise conv -> exact f32, no MXU precision issues.
# ---------------------------------------------------------------------------
def reference_forward(mask, w, b, gamma, beta):
    x = jnp.pad(mask[0].astype(jnp.float32), ((0, 0), (PAD, PAD), (PAD, PAD)))
    conv = []
    for co in range(C):
        acc = jnp.full((H_OUT, H_OUT), b[co], jnp.float32)
        for ci in range(C):
            for dy in range(KC):
                for dx in range(KC):
                    acc = acc + w[co, ci, dy, dx] * x[ci, dy:dy + H_OUT, dx:dx + H_OUT]
        conv.append(acc)
    conv = jnp.stack(conv, axis=0)
    out = jnp.zeros((C, H_OUT, H_OUT), jnp.float32)
    cnt = jnp.zeros((H_OUT, H_OUT), jnp.float32)
    g = gamma.reshape(C, 1, 1).astype(jnp.float32)
    be = beta.reshape(C, 1, 1).astype(jnp.float32)
    for i in range(NPATCH):
        for j in range(NPATCH):
            r0, c0 = i * STRIDE, j * STRIDE
            win = conv[:, r0:r0 + KOUT, c0:c0 + KOUT]
            mean = jnp.mean(win, axis=(1, 2), keepdims=True)
            var = jnp.mean((win - mean) ** 2, axis=(1, 2), keepdims=True)
            act = jnp.maximum((win - mean) / jnp.sqrt(var + EPS) * g + be, 0.0)
            out = out.at[:, r0:r0 + KOUT, c0:c0 + KOUT].add(act)
            cnt = cnt.at[r0:r0 + KOUT, c0:c0 + KOUT].add(1.0)
    return (out / cnt)[None]


if __name__ == "__main__":
    key = jax.random.PRNGKey(0)
    k1, k2, k3, k4, k5 = jax.random.split(key, 5)

    # Deterministic parameter init (Conv2d(C, C, KC) + BatchNorm2d(C)).
    w = 0.05 * jax.random.normal(k1, (C, C, KC, KC), jnp.float32)
    b = 0.05 * jax.random.normal(k2, (C,), jnp.float32)
    gamma = jnp.ones((C,), jnp.float32) + 0.1 * jax.random.normal(k3, (C,), jnp.float32)
    beta = 0.1 * jax.random.normal(k4, (C,), jnp.float32)

    mask = jax.random.normal(k5, (1, C, H_IN, H_IN), jnp.float32)

    out = jax.jit(safron_forward)(mask, w, b, gamma, beta)
    out = jax.block_until_ready(out)
    assert out.shape == (1, C, H_OUT, H_OUT), out.shape
    assert bool(jnp.all(jnp.isfinite(out)))

    ref = jax.jit(reference_forward)(mask, w, b, gamma, beta)
    ref = jax.block_until_ready(ref)
    err = float(jnp.max(jnp.abs(out - ref)))
    assert err < 1e-3, f"kernel vs reference max abs err = {err}"

    print("KERNEL_OK")
</pallas_src>

<mosaic_0001>
module attributes {stable_mosaic.version = 11 : i64} {
  func.func @safron_fused_kernel(%arg0: memref<75x92xf32, #tpu.memory_space<vmem>>, %arg1: memref<3xf32, #tpu.memory_space<smem>>, %arg2: memref<3xf32, #tpu.memory_space<smem>>, %arg3: memref<32x96xf32, #tpu.memory_space<vmem>>, %arg4: memref<4x28x28xf32, #tpu.memory_space<vmem>>, %arg5: memref<3x28x28xf32, #tpu.memory_space<vmem>>) attributes {dimension_semantics = [], scalar_prefetch = 0 : i64, scratch_operands = 0 : i64, tpu.core_type = #tpu.core_type<tc>} {
    %c0 = arith.constant 0 : index
    %c0_0 = arith.constant 0 : index
    %0 = vector.load %arg3[%c0, %c0_0] : memref<32x96xf32, #tpu.memory_space<vmem>>, vector<32x96xf32>
    %cst = arith.constant 0.000000e+00 : f32
    %1 = vector.broadcast %cst : f32 to vector<28x92xf32>
    %cst_1 = arith.constant 0.000000e+00 : f32
    %2 = vector.broadcast %cst_1 : f32 to vector<28x92xf32>
    %cst_2 = arith.constant 0.000000e+00 : f32
    %3 = vector.broadcast %cst_2 : f32 to vector<28x92xf32>
    %4 = vector.extract_strided_slice %0 {offsets = [0, 0], sizes = [32, 92], strides = [1, 1]} : vector<32x96xf32> to vector<32x92xf32>
    %5 = vector.extract_strided_slice %4 {offsets = [0, 0], sizes = [28, 92], strides = [1, 1]} : vector<32x92xf32> to vector<28x92xf32>
    %c0_3 = arith.constant 0 : index
    %c0_4 = arith.constant 0 : index
    %6 = vector.load %arg0[%c0_3, %c0_4] : memref<75x92xf32, #tpu.memory_space<vmem>>, vector<1x92xf32>
    %7 = vector.broadcast %6 : vector<1x92xf32> to vector<28x92xf32>
    %8 = arith.mulf %7, %5 : vector<28x92xf32>
    %9 = arith.addf %1, %8 : vector<28x92xf32>
    %c25 = arith.constant 25 : index
    %c0_5 = arith.constant 0 : index
    %10 = vector.load %arg0[%c25, %c0_5] : memref<75x92xf32, #tpu.memory_space<vmem>>, vector<1x92xf32>
    %11 = vector.broadcast %10 : vector<1x92xf32> to vector<28x92xf32>
    %12 = arith.mulf %11, %5 : vector<28x92xf32>
    %13 = arith.addf %2, %12 : vector<28x92xf32>
    %c50 = arith.constant 50 : index
    %c0_6 = arith.constant 0 : index
    %14 = vector.load %arg0[%c50, %c0_6] : memref<75x92xf32, #tpu.memory_space<vmem>>, vector<1x92xf32>
    %15 = vector.broadcast %14 : vector<1x92xf32> to vector<28x92xf32>
    %16 = arith.mulf %15, %5 : vector<28x92xf32>
    %17 = arith.addf %3, %16 : vector<28x92xf32>
    %18 = vector.extract_strided_slice %4 {offsets = [1, 0], sizes = [28, 92], strides = [1, 1]} : vector<32x92xf32> to vector<28x92xf32>
    %c5 = arith.constant 5 : index
    %c0_7 = arith.constant 0 : index
    %19 = vector.load %arg0[%c5, %c0_7] : memref<75x92xf32, #tpu.memory_space<vmem>>, vector<1x92xf32>
    %20 = vector.broadcast %19 : vector<1x92xf32> to vector<28x92xf32>
    %21 = arith.mulf %20, %18 : vector<28x92xf32>
    %22 = arith.addf %9, %21 : vector<28x92xf32>
    %c30 = arith.constant 30 : index
    %c0_8 = arith.constant 0 : index
    %23 = vector.load %arg0[%c30, %c0_8] : memref<75x92xf32, #tpu.memory_space<vmem>>, vector<1x92xf32>
    %24 = vector.broadcast %23 : vector<1x92xf32> to vector<28x92xf32>
    %25 = arith.mulf %24, %18 : vector<28x92xf32>
    %26 = arith.addf %13, %25 : vector<28x92xf32>
    %c55 = arith.constant 55 : index
    %c0_9 = arith.constant 0 : index
    %27 = vector.load %arg0[%c55, %c0_9] : memref<75x92xf32, #tpu.memory_space<vmem>>, vector<1x92xf32>
    %28 = vector.broadcast %27 : vector<1x92xf32> to vector<28x92xf32>
    %29 = arith.mulf %28, %18 : vector<28x92xf32>
    %30 = arith.addf %17, %29 : vector<28x92xf32>
    %31 = vector.extract_strided_slice %4 {offsets = [2, 0], sizes = [28, 92], strides = [1, 1]} : vector<32x92xf32> to vector<28x92xf32>
    %c10 = arith.constant 10 : index
    %c0_10 = arith.constant 0 : index
    %32 = vector.load %arg0[%c10, %c0_10] : memref<75x92xf32, #tpu.memory_space<vmem>>, vector<1x92xf32>
    %33 = vector.broadcast %32 : vector<1x92xf32> to vector<28x92xf32>
    %34 = arith.mulf %33, %31 : vector<28x92xf32>
    %35 = arith.addf %22, %34 : vector<28x92xf32>
    %c35 = arith.constant 35 : index
    %c0_11 = arith.constant 0 : index
    %36 = vector.load %arg0[%c35, %c0_11] : memref<75x92xf32, #tpu.memory_space<vmem>>, vector<1x92xf32>
    %37 = vector.broadcast %36 : vector<1x92xf32> to vector<28x92xf32>
    %38 = arith.mulf %37, %31 : vector<28x92xf32>
    %39 = arith.addf %26, %38 : vector<28x92xf32>
    %c60 = arith.constant 60 : index
    %c0_12 = arith.constant 0 : index
    %40 = vector.load %arg0[%c60, %c0_12] : memref<75x92xf32, #tpu.memory_space<vmem>>, vector<1x92xf32>
    %41 = vector.broadcast %40 : vector<1x92xf32> to vector<28x92xf32>
    %42 = arith.mulf %41, %31 : vector<28x92xf32>
    %43 = arith.addf %30, %42 : vector<28x92xf32>
    %44 = vector.extract_strided_slice %4 {offsets = [3, 0], sizes = [28, 92], strides = [1, 1]} : vector<32x92xf32> to vector<28x92xf32>
    %c15 = arith.constant 15 : index
    %c0_13 = arith.constant 0 : index
    %45 = vector.load %arg0[%c15, %c0_13] : memref<75x92xf32, #tpu.memory_space<vmem>>, vector<1x92xf32>
    %46 = vector.broadcast %45 : vector<1x92xf32> to vector<28x92xf32>
    %47 = arith.mulf %46, %44 : vector<28x92xf32>
    %48 = arith.addf %35, %47 : vector<28x92xf32>
    %c40 = arith.constant 40 : index
    %c0_14 = arith.constant 0 : index
    %49 = vector.load %arg0[%c40, %c0_14] : memref<75x92xf32, #tpu.memory_space<vmem>>, vector<1x92xf32>
    %50 = vector.broadcast %49 : vector<1x92xf32> to vector<28x92xf32>
    %51 = arith.mulf %50, %44 : vector<28x92xf32>
    %52 = arith.addf %39, %51 : vector<28x92xf32>
    %c65 = arith.constant 65 : index
    %c0_15 = arith.constant 0 : index
    %53 = vector.load %arg0[%c65, %c0_15] : memref<75x92xf32, #tpu.memory_space<vmem>>, vector<1x92xf32>
    %54 = vector.broadcast %53 : vector<1x92xf32> to vector<28x92xf32>
    %55 = arith.mulf %54, %44 : vector<28x92xf32>
    %56 = arith.addf %43, %55 : vector<28x92xf32>
    %57 = vector.extract_strided_slice %4 {offsets = [4, 0], sizes = [28, 92], strides = [1, 1]} : vector<32x92xf32> to vector<28x92xf32>
    %c20 = arith.constant 20 : index
    %c0_16 = arith.constant 0 : index
    %58 = vector.load %arg0[%c20, %c0_16] : memref<75x92xf32, #tpu.memory_space<vmem>>, vector<1x92xf32>
    %59 = vector.broadcast %58 : vector<1x92xf32> to vector<28x92xf32>
    %60 = arith.mulf %59, %57 : vector<28x92xf32>
    %61 = arith.addf %48, %60 : vector<28x92xf32>
    %c45 = arith.constant 45 : index
    %c0_17 = arith.constant 0 : index
    %62 = vector.load %arg0[%c45, %c0_17] : memref<75x92xf32, #tpu.memory_space<vmem>>, vector<1x92xf32>
    %63 = vector.broadcast %62 : vector<1x92xf32> to vector<28x92xf32>
    %64 = arith.mulf %63, %57 : vector<28x92xf32>
    %65 = arith.addf %52, %64 : vector<28x92xf32>
    %c70 = arith.constant 70 : index
    %c0_18 = arith.constant 0 : index
    %66 = vector.load %arg0[%c70, %c0_18] : memref<75x92xf32, #tpu.memory_space<vmem>>, vector<1x92xf32>
    %67 = vector.broadcast %66 : vector<1x92xf32> to vector<28x92xf32>
    %68 = arith.mulf %67, %57 : vector<28x92xf32>
    %69 = arith.addf %56, %68 : vector<28x92xf32>
    %70 = vector.extract_strided_slice %0 {offsets = [0, 1], sizes = [32, 92], strides = [1, 1]} : vector<32x96xf32> to vector<32x92xf32>
    %71 = vector.extract_strided_slice %70 {offsets = [0, 0], sizes = [28, 92], strides = [1, 1]} : vector<32x92xf32> to vector<28x92xf32>
    %c1 = arith.constant 1 : index
    %c0_19 = arith.constant 0 : index
    %72 = vector.load %arg0[%c1, %c0_19] : memref<75x92xf32, #tpu.memory_space<vmem>>, vector<1x92xf32>
    %73 = vector.broadcast %72 : vector<1x92xf32> to vector<28x92xf32>
    %74 = arith.mulf %73, %71 : vector<28x92xf32>
    %75 = arith.addf %61, %74 : vector<28x92xf32>
    %c26 = arith.constant 26 : index
    %c0_20 = arith.constant 0 : index
    %76 = vector.load %arg0[%c26, %c0_20] : memref<75x92xf32, #tpu.memory_space<vmem>>, vector<1x92xf32>
    %77 = vector.broadcast %76 : vector<1x92xf32> to vector<28x92xf32>
    %78 = arith.mulf %77, %71 : vector<28x92xf32>
    %79 = arith.addf %65, %78 : vector<28x92xf32>
    %c51 = arith.constant 51 : index
    %c0_21 = arith.constant 0 : index
    %80 = vector.load %arg0[%c51, %c0_21] : memref<75x92xf32, #tpu.memory_space<vmem>>, vector<1x92xf32>
    %81 = vector.broadcast %80 : vector<1x92xf32> to vector<28x92xf32>
    %82 = arith.mulf %81, %71 : vector<28x92xf32>
    %83 = arith.addf %69, %82 : vector<28x92xf32>
    %84 = vector.extract_strided_slice %70 {offsets = [1, 0], sizes = [28, 92], strides = [1, 1]} : vector<32x92xf32> to vector<28x92xf32>
    %c6 = arith.constant 6 : index
    %c0_22 = arith.constant 0 : index
    %85 = vector.load %arg0[%c6, %c0_22] : memref<75x92xf32, #tpu.memory_space<vmem>>, vector<1x92xf32>
    %86 = vector.broadcast %85 : vector<1x92xf32> to vector<28x92xf32>
    %87 = arith.mulf %86, %84 : vector<28x92xf32>
    %88 = arith.addf %75, %87 : vector<28x92xf32>
    %c31 = arith.constant 31 : index
    %c0_23 = arith.constant 0 : index
    %89 = vector.load %arg0[%c31, %c0_23] : memref<75x92xf32, #tpu.memory_space<vmem>>, vector<1x92xf32>
    %90 = vector.broadcast %89 : vector<1x92xf32> to vector<28x92xf32>
    %91 = arith.mulf %90, %84 : vector<28x92xf32>
    %92 = arith.addf %79, %91 : vector<28x92xf32>
    %c56 = arith.constant 56 : index
    %c0_24 = arith.constant 0 : index
    %93 = vector.load %arg0[%c56, %c0_24] : memref<75x92xf32, #tpu.memory_space<vmem>>, vector<1x92xf32>
    %94 = vector.broadcast %93 : vector<1x92xf32> to vector<28x92xf32>
    %95 = arith.mulf %94, %84 : vector<28x92xf32>
    %96 = arith.addf %83, %95 : vector<28x92xf32>
    %97 = vector.extract_strided_slice %70 {offsets = [2, 0], sizes = [28, 92], strides = [1, 1]} : vector<32x92xf32> to vector<28x92xf32>
    %c11 = arith.constant 11 : index
    %c0_25 = arith.constant 0 : index
    %98 = vector.load %arg0[%c11, %c0_25] : memref<75x92xf32, #tpu.memory_space<vmem>>, vector<1x92xf32>
    %99 = vector.broadcast %98 : vector<1x92xf32> to vector<28x92xf32>
    %100 = arith.mulf %99, %97 : vector<28x92xf32>
    %101 = arith.addf %88, %100 : vector<28x92xf32>
    %c36 = arith.constant 36 : index
    %c0_26 = arith.constant 0 : index
    %102 = vector.load %arg0[%c36, %c0_26] : memref<75x92xf32, #tpu.memory_space<vmem>>, vector<1x92xf32>
    %103 = vector.broadcast %102 : vector<1x92xf32> to vector<28x92xf32>
    %104 = arith.mulf %103, %97 : vector<28x92xf32>
    %105 = arith.addf %92, %104 : vector<28x92xf32>
    %c61 = arith.constant 61 : index
    %c0_27 = arith.constant 0 : index
    %106 = vector.load %arg0[%c61, %c0_27] : memref<75x92xf32, #tpu.memory_space<vmem>>, vector<1x92xf32>
    %107 = vector.broadcast %106 : vector<1x92xf32> to vector<28x92xf32>
    %108 = arith.mulf %107, %97 : vector<28x92xf32>
    %109 = arith.addf %96, %108 : vector<28x92xf32>
    %110 = vector.extract_strided_slice %70 {offsets = [3, 0], sizes = [28, 92], strides = [1, 1]} : vector<32x92xf32> to vector<28x92xf32>
    %c16 = arith.constant 16 : index
    %c0_28 = arith.constant 0 : index
    %111 = vector.load %arg0[%c16, %c0_28] : memref<75x92xf32, #tpu.memory_space<vmem>>, vector<1x92xf32>
    %112 = vector.broadcast %111 : vector<1x92xf32> to vector<28x92xf32>
    %113 = arith.mulf %112, %110 : vector<28x92xf32>
    %114 = arith.addf %101, %113 : vector<28x92xf32>
    %c41 = arith.constant 41 : index
    %c0_29 = arith.constant 0 : index
    %115 = vector.load %arg0[%c41, %c0_29] : memref<75x92xf32, #tpu.memory_space<vmem>>, vector<1x92xf32>
    %116 = vector.broadcast %115 : vector<1x92xf32> to vector<28x92xf32>
    %117 = arith.mulf %116, %110 : vector<28x92xf32>
    %118 = arith.addf %105, %117 : vector<28x92xf32>
    %c66 = arith.constant 66 : index
    %c0_30 = arith.constant 0 : index
    %119 = vector.load %arg0[%c66, %c0_30] : memref<75x92xf32, #tpu.memory_space<vmem>>, vector<1x92xf32>
    %120 = vector.broadcast %119 : vector<1x92xf32> to vector<28x92xf32>
    %121 = arith.mulf %120, %110 : vector<28x92xf32>
    %122 = arith.addf %109, %121 : vector<28x92xf32>
    %123 = vector.extract_strided_slice %70 {offsets = [4, 0], sizes = [28, 92], strides = [1, 1]} : vector<32x92xf32> to vector<28x92xf32>
    %c21 = arith.constant 21 : index
    %c0_31 = arith.constant 0 : index
    %124 = vector.load %arg0[%c21, %c0_31] : memref<75x92xf32, #tpu.memory_space<vmem>>, vector<1x92xf32>
    %125 = vector.broadcast %124 : vector<1x92xf32> to vector<28x92xf32>
    %126 = arith.mulf %125, %123 : vector<28x92xf32>
    %127 = arith.addf %114, %126 : vector<28x92xf32>
    %c46 = arith.constant 46 : index
    %c0_32 = arith.constant 0 : index
    %128 = vector.load %arg0[%c46, %c0_32] : memref<75x92xf32, #tpu.memory_space<vmem>>, vector<1x92xf32>
    %129 = vector.broadcast %128 : vector<1x92xf32> to vector<28x92xf32>
    %130 = arith.mulf %129, %123 : vector<28x92xf32>
    %131 = arith.addf %118, %130 : vector<28x92xf32>
    %c71 = arith.constant 71 : index
    %c0_33 = arith.constant 0 : index
    %132 = vector.load %arg0[%c71, %c0_33] : memref<75x92xf32, #tpu.memory_space<vmem>>, vector<1x92xf32>
    %133 = vector.broadcast %132 : vector<1x92xf32> to vector<28x92xf32>
    %134 = arith.mulf %133, %123 : vector<28x92xf32>
    %135 = arith.addf %122, %134 : vector<28x92xf32>
    %136 = vector.extract_strided_slice %0 {offsets = [0, 2], sizes = [32, 92], strides = [1, 1]} : vector<32x96xf32> to vector<32x92xf32>
    %137 = vector.extract_strided_slice %136 {offsets = [0, 0], sizes = [28, 92], strides = [1, 1]} : vector<32x92xf32> to vector<28x92xf32>
    %c2 = arith.constant 2 : index
    %c0_34 = arith.constant 0 : index
    %138 = vector.load %arg0[%c2, %c0_34] : memref<75x92xf32, #tpu.memory_space<vmem>>, vector<1x92xf32>
    %139 = vector.broadcast %138 : vector<1x92xf32> to vector<28x92xf32>
    %140 = arith.mulf %139, %137 : vector<28x92xf32>
    %141 = arith.addf %127, %140 : vector<28x92xf32>
    %c27 = arith.constant 27 : index
    %c0_35 = arith.constant 0 : index
    %142 = vector.load %arg0[%c27, %c0_35] : memref<75x92xf32, #tpu.memory_space<vmem>>, vector<1x92xf32>
    %143 = vector.broadcast %142 : vector<1x92xf32> to vector<28x92xf32>
    %144 = arith.mulf %143, %137 : vector<28x92xf32>
    %145 = arith.addf %131, %144 : vector<28x92xf32>
    %c52 = arith.constant 52 : index
    %c0_36 = arith.constant 0 : index
    %146 = vector.load %arg0[%c52, %c0_36] : memref<75x92xf32, #tpu.memory_space<vmem>>, vector<1x92xf32>
    %147 = vector.broadcast %146 : vector<1x92xf32> to vector<28x92xf32>
    %148 = arith.mulf %147, %137 : vector<28x92xf32>
    %149 = arith.addf %135, %148 : vector<28x92xf32>
    %150 = vector.extract_strided_slice %136 {offsets = [1, 0], sizes = [28, 92], strides = [1, 1]} : vector<32x92xf32> to vector<28x92xf32>
    %c7 = arith.constant 7 : index
    %c0_37 = arith.constant 0 : index
    %151 = vector.load %arg0[%c7, %c0_37] : memref<75x92xf32, #tpu.memory_space<vmem>>, vector<1x92xf32>
    %152 = vector.broadcast %151 : vector<1x92xf32> to vector<28x92xf32>
    %153 = arith.mulf %152, %150 : vector<28x92xf32>
    %154 = arith.addf %141, %153 : vector<28x92xf32>
    %c32 = arith.constant 32 : index
    %c0_38 = arith.constant 0 : index
    %155 = vector.load %arg0[%c32, %c0_38] : memref<75x92xf32, #tpu.memory_space<vmem>>, vector<1x92xf32>
    %156 = vector.broadcast %155 : vector<1x92xf32> to vector<28x92xf32>
    %157 = arith.mulf %156, %150 : vector<28x92xf32>
    %158 = arith.addf %145, %157 : vector<28x92xf32>
    %c57 = arith.constant 57 : index
    %c0_39 = arith.constant 0 : index
    %159 = vector.load %arg0[%c57, %c0_39] : memref<75x92xf32, #tpu.memory_space<vmem>>, vector<1x92xf32>
    %160 = vector.broadcast %159 : vector<1x92xf32> to vector<28x92xf32>
    %161 = arith.mulf %160, %150 : vector<28x92xf32>
    %162 = arith.addf %149, %161 : vector<28x92xf32>
    %163 = vector.extract_strided_slice %136 {offsets = [2, 0], sizes = [28, 92], strides = [1, 1]} : vector<32x92xf32> to vector<28x92xf32>
    %c12 = arith.constant 12 : index
    %c0_40 = arith.constant 0 : index
    %164 = vector.load %arg0[%c12, %c0_40] : memref<75x92xf32, #tpu.memory_space<vmem>>, vector<1x92xf32>
    %165 = vector.broadcast %164 : vector<1x92xf32> to vector<28x92xf32>
    %166 = arith.mulf %165, %163 : vector<28x92xf32>
    %167 = arith.addf %154, %166 : vector<28x92xf32>
    %c37 = arith.constant 37 : index
    %c0_41 = arith.constant 0 : index
    %168 = vector.load %arg0[%c37, %c0_41] : memref<75x92xf32, #tpu.memory_space<vmem>>, vector<1x92xf32>
    %169 = vector.broadcast %168 : vector<1x92xf32> to vector<28x92xf32>
    %170 = arith.mulf %169, %163 : vector<28x92xf32>
    %171 = arith.addf %158, %170 : vector<28x92xf32>
    %c62 = arith.constant 62 : index
    %c0_42 = arith.constant 0 : index
    %172 = vector.load %arg0[%c62, %c0_42] : memref<75x92xf32, #tpu.memory_space<vmem>>, vector<1x92xf32>
    %173 = vector.broadcast %172 : vector<1x92xf32> to vector<28x92xf32>
    %174 = arith.mulf %173, %163 : vector<28x92xf32>
    %175 = arith.addf %162, %174 : vector<28x92xf32>
    %176 = vector.extract_strided_slice %136 {offsets = [3, 0], sizes = [28, 92], strides = [1, 1]} : vector<32x92xf32> to vector<28x92xf32>
    %c17 = arith.constant 17 : index
    %c0_43 = arith.constant 0 : index
    %177 = vector.load %arg0[%c17, %c0_43] : memref<75x92xf32, #tpu.memory_space<vmem>>, vector<1x92xf32>
    %178 = vector.broadcast %177 : vector<1x92xf32> to vector<28x92xf32>
    %179 = arith.mulf %178, %176 : vector<28x92xf32>
    %180 = arith.addf %167, %179 : vector<28x92xf32>
    %c42 = arith.constant 42 : index
    %c0_44 = arith.constant 0 : index
    %181 = vector.load %arg0[%c42, %c0_44] : memref<75x92xf32, #tpu.memory_space<vmem>>, vector<1x92xf32>
    %182 = vector.broadcast %181 : vector<1x92xf32> to vector<28x92xf32>
    %183 = arith.mulf %182, %176 : vector<28x92xf32>
    %184 = arith.addf %171, %183 : vector<28x92xf32>
    %c67 = arith.constant 67 : index
    %c0_45 = arith.constant 0 : index
    %185 = vector.load %arg0[%c67, %c0_45] : memref<75x92xf32, #tpu.memory_space<vmem>>, vector<1x92xf32>
    %186 = vector.broadcast %185 : vector<1x92xf32> to vector<28x92xf32>
    %187 = arith.mulf %186, %176 : vector<28x92xf32>
    %188 = arith.addf %175, %187 : vector<28x92xf32>
    %189 = vector.extract_strided_slice %136 {offsets = [4, 0], sizes = [28, 92], strides = [1, 1]} : vector<32x92xf32> to vector<28x92xf32>
    %c22 = arith.constant 22 : index
    %c0_46 = arith.constant 0 : index
    %190 = vector.load %arg0[%c22, %c0_46] : memref<75x92xf32, #tpu.memory_space<vmem>>, vector<1x92xf32>
    %191 = vector.broadcast %190 : vector<1x92xf32> to vector<28x92xf32>
    %192 = arith.mulf %191, %189 : vector<28x92xf32>
    %193 = arith.addf %180, %192 : vector<28x92xf32>
    %c47 = arith.constant 47 : index
    %c0_47 = arith.constant 0 : index
    %194 = vector.load %arg0[%c47, %c0_47] : memref<75x92xf32, #tpu.memory_space<vmem>>, vector<1x92xf32>
    %195 = vector.broadcast %194 : vector<1x92xf32> to vector<28x92xf32>
    %196 = arith.mulf %195, %189 : vector<28x92xf32>
    %197 = arith.addf %184, %196 : vector<28x92xf32>
    %c72 = arith.constant 72 : index
    %c0_48 = arith.constant 0 : index
    %198 = vector.load %arg0[%c72, %c0_48] : memref<75x92xf32, #tpu.memory_space<vmem>>, vector<1x92xf32>
    %199 = vector.broadcast %198 : vector<1x92xf32> to vector<28x92xf32>
    %200 = arith.mulf %199, %189 : vector<28x92xf32>
    %201 = arith.addf %188, %200 : vector<28x92xf32>
    %202 = vector.extract_strided_slice %0 {offsets = [0, 3], sizes = [32, 92], strides = [1, 1]} : vector<32x96xf32> to vector<32x92xf32>
    %203 = vector.extract_strided_slice %202 {offsets = [0, 0], sizes = [28, 92], strides = [1, 1]} : vector<32x92xf32> to vector<28x92xf32>
    %c3 = arith.constant 3 : index
    %c0_49 = arith.constant 0 : index
    %204 = vector.load %arg0[%c3, %c0_49] : memref<75x92xf32, #tpu.memory_space<vmem>>, vector<1x92xf32>
    %205 = vector.broadcast %204 : vector<1x92xf32> to vector<28x92xf32>
    %206 = arith.mulf %205, %203 : vector<28x92xf32>
    %207 = arith.addf %193, %206 : vector<28x92xf32>
    %c28 = arith.constant 28 : index
    %c0_50 = arith.constant 0 : index
    %208 = vector.load %arg0[%c28, %c0_50] : memref<75x92xf32, #tpu.memory_space<vmem>>, vector<1x92xf32>
    %209 = vector.broadcast %208 : vector<1x92xf32> to vector<28x92xf32>
    %210 = arith.mulf %209, %203 : vector<28x92xf32>
    %211 = arith.addf %197, %210 : vector<28x92xf32>
    %c53 = arith.constant 53 : index
    %c0_51 = arith.constant 0 : index
    %212 = vector.load %arg0[%c53, %c0_51] : memref<75x92xf32, #tpu.memory_space<vmem>>, vector<1x92xf32>
    %213 = vector.broadcast %212 : vector<1x92xf32> to vector<28x92xf32>
    %214 = arith.mulf %213, %203 : vector<28x92xf32>
    %215 = arith.addf %201, %214 : vector<28x92xf32>
    %216 = vector.extract_strided_slice %202 {offsets = [1, 0], sizes = [28, 92], strides = [1, 1]} : vector<32x92xf32> to vector<28x92xf32>
    %c8 = arith.constant 8 : index
    %c0_52 = arith.constant 0 : index
    %217 = vector.load %arg0[%c8, %c0_52] : memref<75x92xf32, #tpu.memory_space<vmem>>, vector<1x92xf32>
    %218 = vector.broadcast %217 : vector<1x92xf32> to vector<28x92xf32>
    %219 = arith.mulf %218, %216 : vector<28x92xf32>
    %220 = arith.addf %207, %219 : vector<28x92xf32>
    %c33 = arith.constant 33 : index
    %c0_53 = arith.constant 0 : index
    %221 = vector.load %arg0[%c33, %c0_53] : memref<75x92xf32, #tpu.memory_space<vmem>>, vector<1x92xf32>
    %222 = vector.broadcast %221 : vector<1x92xf32> to vector<28x92xf32>
    %223 = arith.mulf %222, %216 : vector<28x92xf32>
    %224 = arith.addf %211, %223 : vector<28x92xf32>
    %c58 = arith.constant 58 : index
    %c0_54 = arith.constant 0 : index
    %225 = vector.load %arg0[%c58, %c0_54] : memref<75x92xf32, #tpu.memory_space<vmem>>, vector<1x92xf32>
    %226 = vector.broadcast %225 : vector<1x92xf32> to vector<28x92xf32>
    %227 = arith.mulf %226, %216 : vector<28x92xf32>
    %228 = arith.addf %215, %227 : vector<28x92xf32>
    %229 = vector.extract_strided_slice %202 {offsets = [2, 0], sizes = [28, 92], strides = [1, 1]} : vector<32x92xf32> to vector<28x92xf32>
    %c13 = arith.constant 13 : index
    %c0_55 = arith.constant 0 : index
    %230 = vector.load %arg0[%c13, %c0_55] : memref<75x92xf32, #tpu.memory_space<vmem>>, vector<1x92xf32>
    %231 = vector.broadcast %230 : vector<1x92xf32> to vector<28x92xf32>
    %232 = arith.mulf %231, %229 : vector<28x92xf32>
    %233 = arith.addf %220, %232 : vector<28x92xf32>
    %c38 = arith.constant 38 : index
    %c0_56 = arith.constant 0 : index
    %234 = vector.load %arg0[%c38, %c0_56] : memref<75x92xf32, #tpu.memory_space<vmem>>, vector<1x92xf32>
    %235 = vector.broadcast %234 : vector<1x92xf32> to vector<28x92xf32>
    %236 = arith.mulf %235, %229 : vector<28x92xf32>
    %237 = arith.addf %224, %236 : vector<28x92xf32>
    %c63 = arith.constant 63 : index
    %c0_57 = arith.constant 0 : index
    %238 = vector.load %arg0[%c63, %c0_57] : memref<75x92xf32, #tpu.memory_space<vmem>>, vector<1x92xf32>
    %239 = vector.broadcast %238 : vector<1x92xf32> to vector<28x92xf32>
    %240 = arith.mulf %239, %229 : vector<28x92xf32>
    %241 = arith.addf %228, %240 : vector<28x92xf32>
    %242 = vector.extract_strided_slice %202 {offsets = [3, 0], sizes = [28, 92], strides = [1, 1]} : vector<32x92xf32> to vector<28x92xf32>
    %c18 = arith.constant 18 : index
    %c0_58 = arith.constant 0 : index
    %243 = vector.load %arg0[%c18, %c0_58] : memref<75x92xf32, #tpu.memory_space<vmem>>, vector<1x92xf32>
    %244 = vector.broadcast %243 : vector<1x92xf32> to vector<28x92xf32>
    %245 = arith.mulf %244, %242 : vector<28x92xf32>
    %246 = arith.addf %233, %245 : vector<28x92xf32>
    %c43 = arith.constant 43 : index
    %c0_59 = arith.constant 0 : index
    %247 = vector.load %arg0[%c43, %c0_59] : memref<75x92xf32, #tpu.memory_space<vmem>>, vector<1x92xf32>
    %248 = vector.broadcast %247 : vector<1x92xf32> to vector<28x92xf32>
    %249 = arith.mulf %248, %242 : vector<28x92xf32>
    %250 = arith.addf %237, %249 : vector<28x92xf32>
    %c68 = arith.constant 68 : index
    %c0_60 = arith.constant 0 : index
    %251 = vector.load %arg0[%c68, %c0_60] : memref<75x92xf32, #tpu.memory_space<vmem>>, vector<1x92xf32>
    %252 = vector.broadcast %251 : vector<1x92xf32> to vector<28x92xf32>
    %253 = arith.mulf %252, %242 : vector<28x92xf32>
    %254 = arith.addf %241, %253 : vector<28x92xf32>
    %255 = vector.extract_strided_slice %202 {offsets = [4, 0], sizes = [28, 92], strides = [1, 1]} : vector<32x92xf32> to vector<28x92xf32>
    %c23 = arith.constant 23 : index
    %c0_61 = arith.constant 0 : index
    %256 = vector.load %arg0[%c23, %c0_61] : memref<75x92xf32, #tpu.memory_space<vmem>>, vector<1x92xf32>
    %257 = vector.broadcast %256 : vector<1x92xf32> to vector<28x92xf32>
    %258 = arith.mulf %257, %255 : vector<28x92xf32>
    %259 = arith.addf %246, %258 : vector<28x92xf32>
    %c48 = arith.constant 48 : index
    %c0_62 = arith.constant 0 : index
    %260 = vector.load %arg0[%c48, %c0_62] : memref<75x92xf32, #tpu.memory_space<vmem>>, vector<1x92xf32>
    %261 = vector.broadcast %260 : vector<1x92xf32> to vector<28x92xf32>
    %262 = arith.mulf %261, %255 : vector<28x92xf32>
    %263 = arith.addf %250, %262 : vector<28x92xf32>
    %c73 = arith.constant 73 : index
    %c0_63 = arith.constant 0 : index
    %264 = vector.load %arg0[%c73, %c0_63] : memref<75x92xf32, #tpu.memory_space<vmem>>, vector<1x92xf32>
    %265 = vector.broadcast %264 : vector<1x92xf32> to vector<28x92xf32>
    %266 = arith.mulf %265, %255 : vector<28x92xf32>
    %267 = arith.addf %254, %266 : vector<28x92xf32>
    %268 = vector.extract_strided_slice %0 {offsets = [0, 4], sizes = [32, 92], strides = [1, 1]} : vector<32x96xf32> to vector<32x92xf32>
    %269 = vector.extract_strided_slice %268 {offsets = [0, 0], sizes = [28, 92], strides = [1, 1]} : vector<32x92xf32> to vector<28x92xf32>
    %c4 = arith.constant 4 : index
    %c0_64 = arith.constant 0 : index
    %270 = vector.load %arg0[%c4, %c0_64] : memref<75x92xf32, #tpu.memory_space<vmem>>, vector<1x92xf32>
    %271 = vector.broadcast %270 : vector<1x92xf32> to vector<28x92xf32>
    %272 = arith.mulf %271, %269 : vector<28x92xf32>
    %273 = arith.addf %259, %272 : vector<28x92xf32>
    %c29 = arith.constant 29 : index
    %c0_65 = arith.constant 0 : index
    %274 = vector.load %arg0[%c29, %c0_65] : memref<75x92xf32, #tpu.memory_space<vmem>>, vector<1x92xf32>
    %275 = vector.broadcast %274 : vector<1x92xf32> to vector<28x92xf32>
    %276 = arith.mulf %275, %269 : vector<28x92xf32>
    %277 = arith.addf %263, %276 : vector<28x92xf32>
    %c54 = arith.constant 54 : index
    %c0_66 = arith.constant 0 : index
    %278 = vector.load %arg0[%c54, %c0_66] : memref<75x92xf32, #tpu.memory_space<vmem>>, vector<1x92xf32>
    %279 = vector.broadcast %278 : vector<1x92xf32> to vector<28x92xf32>
    %280 = arith.mulf %279, %269 : vector<28x92xf32>
    %281 = arith.addf %267, %280 : vector<28x92xf32>
    %282 = vector.extract_strided_slice %268 {offsets = [1, 0], sizes = [28, 92], strides = [1, 1]} : vector<32x92xf32> to vector<28x92xf32>
    %c9 = arith.constant 9 : index
    %c0_67 = arith.constant 0 : index
    %283 = vector.load %arg0[%c9, %c0_67] : memref<75x92xf32, #tpu.memory_space<vmem>>, vector<1x92xf32>
    %284 = vector.broadcast %283 : vector<1x92xf32> to vector<28x92xf32>
    %285 = arith.mulf %284, %282 : vector<28x92xf32>
    %286 = arith.addf %273, %285 : vector<28x92xf32>
    %c34 = arith.constant 34 : index
    %c0_68 = arith.constant 0 : index
    %287 = vector.load %arg0[%c34, %c0_68] : memref<75x92xf32, #tpu.memory_space<vmem>>, vector<1x92xf32>
    %288 = vector.broadcast %287 : vector<1x92xf32> to vector<28x92xf32>
    %289 = arith.mulf %288, %282 : vector<28x92xf32>
    %290 = arith.addf %277, %289 : vector<28x92xf32>
    %c59 = arith.constant 59 : index
    %c0_69 = arith.constant 0 : index
    %291 = vector.load %arg0[%c59, %c0_69] : memref<75x92xf32, #tpu.memory_space<vmem>>, vector<1x92xf32>
    %292 = vector.broadcast %291 : vector<1x92xf32> to vector<28x92xf32>
    %293 = arith.mulf %292, %282 : vector<28x92xf32>
    %294 = arith.addf %281, %293 : vector<28x92xf32>
    %295 = vector.extract_strided_slice %268 {offsets = [2, 0], sizes = [28, 92], strides = [1, 1]} : vector<32x92xf32> to vector<28x92xf32>
    %c14 = arith.constant 14 : index
    %c0_70 = arith.constant 0 : index
    %296 = vector.load %arg0[%c14, %c0_70] : memref<75x92xf32, #tpu.memory_space<vmem>>, vector<1x92xf32>
    %297 = vector.broadcast %296 : vector<1x92xf32> to vector<28x92xf32>
    %298 = arith.mulf %297, %295 : vector<28x92xf32>
    %299 = arith.addf %286, %298 : vector<28x92xf32>
    %c39 = arith.constant 39 : index
    %c0_71 = arith.constant 0 : index
    %300 = vector.load %arg0[%c39, %c0_71] : memref<75x92xf32, #tpu.memory_space<vmem>>, vector<1x92xf32>
    %301 = vector.broadcast %300 : vector<1x92xf32> to vector<28x92xf32>
    %302 = arith.mulf %301, %295 : vector<28x92xf32>
    %303 = arith.addf %290, %302 : vector<28x92xf32>
    %c64 = arith.constant 64 : index
    %c0_72 = arith.constant 0 : index
    %304 = vector.load %arg0[%c64, %c0_72] : memref<75x92xf32, #tpu.memory_space<vmem>>, vector<1x92xf32>
    %305 = vector.broadcast %304 : vector<1x92xf32> to vector<28x92xf32>
    %306 = arith.mulf %305, %295 : vector<28x92xf32>
    %307 = arith.addf %294, %306 : vector<28x92xf32>
    %308 = vector.extract_strided_slice %268 {offsets = [3, 0], sizes = [28, 92], strides = [1, 1]} : vector<32x92xf32> to vector<28x92xf32>
    %c19 = arith.constant 19 : index
    %c0_73 = arith.constant 0 : index
    %309 = vector.load %arg0[%c19, %c0_73] : memref<75x92xf32, #tpu.memory_space<vmem>>, vector<1x92xf32>
    %310 = vector.broadcast %309 : vector<1x92xf32> to vector<28x92xf32>
    %311 = arith.mulf %310, %308 : vector<28x92xf32>
    %312 = arith.addf %299, %311 : vector<28x92xf32>
    %c44 = arith.constant 44 : index
    %c0_74 = arith.constant 0 : index
    %313 = vector.load %arg0[%c44, %c0_74] : memref<75x92xf32, #tpu.memory_space<vmem>>, vector<1x92xf32>
    %314 = vector.broadcast %313 : vector<1x92xf32> to vector<28x92xf32>
    %315 = arith.mulf %314, %308 : vector<28x92xf32>
    %316 = arith.addf %303, %315 : vector<28x92xf32>
    %c69 = arith.constant 69 : index
    %c0_75 = arith.constant 0 : index
    %317 = vector.load %arg0[%c69, %c0_75] : memref<75x92xf32, #tpu.memory_space<vmem>>, vector<1x92xf32>
    %318 = vector.broadcast %317 : vector<1x92xf32> to vector<28x92xf32>
    %319 = arith.mulf %318, %308 : vector<28x92xf32>
    %320 = arith.addf %307, %319 : vector<28x92xf32>
    %321 = vector.extract_strided_slice %268 {offsets = [4, 0], sizes = [28, 92], strides = [1, 1]} : vector<32x92xf32> to vector<28x92xf32>
    %c24 = arith.constant 24 : index
    %c0_76 = arith.constant 0 : index
    %322 = vector.load %arg0[%c24, %c0_76] : memref<75x92xf32, #tpu.memory_space<vmem>>, vector<1x92xf32>
    %323 = vector.broadcast %322 : vector<1x92xf32> to vector<28x92xf32>
    %324 = arith.mulf %323, %321 : vector<28x92xf32>
    %325 = arith.addf %312, %324 : vector<28x92xf32>
    %c49 = arith.constant 49 : index
    %c0_77 = arith.constant 0 : index
    %326 = vector.load %arg0[%c49, %c0_77] : memref<75x92xf32, #tpu.memory_space<vmem>>, vector<1x92xf32>
    %327 = vector.broadcast %326 : vector<1x92xf32> to vector<28x92xf32>
    %328 = arith.mulf %327, %321 : vector<28x92xf32>
    %329 = arith.addf %316, %328 : vector<28x92xf32>
    %c74 = arith.constant 74 : index
    %c0_78 = arith.constant 0 : index
    %330 = vector.load %arg0[%c74, %c0_78] : memref<75x92xf32, #tpu.memory_space<vmem>>, vector<1x92xf32>
    %331 = vector.broadcast %330 : vector<1x92xf32> to vector<28x92xf32>
    %332 = arith.mulf %331, %321 : vector<28x92xf32>
    %333 = arith.addf %320, %332 : vector<28x92xf32>
    %334 = vector.extract_strided_slice %325 {offsets = [0, 0], sizes = [28, 28], strides = [1, 1]} : vector<28x92xf32> to vector<28x28xf32>
    %335 = vector.extract_strided_slice %325 {offsets = [0, 32], sizes = [28, 28], strides = [1, 1]} : vector<28x92xf32> to vector<28x28xf32>
    %336 = arith.addf %334, %335 : vector<28x28xf32>
    %337 = vector.extract_strided_slice %325 {offsets = [0, 64], sizes = [28, 28], strides = [1, 1]} : vector<28x92xf32> to vector<28x28xf32>
    %338 = arith.addf %336, %337 : vector<28x28xf32>
    %339 = vector.extract_strided_slice %329 {offsets = [0, 0], sizes = [28, 28], strides = [1, 1]} : vector<28x92xf32> to vector<28x28xf32>
    %340 = vector.extract_strided_slice %329 {offsets = [0, 32], sizes = [28, 28], strides = [1, 1]} : vector<28x92xf32> to vector<28x28xf32>
    %341 = arith.addf %339, %340 : vector<28x28xf32>
    %342 = vector.extract_strided_slice %329 {offsets = [0, 64], sizes = [28, 28], strides = [1, 1]} : vector<28x92xf32> to vector<28x28xf32>
    %343 = arith.addf %341, %342 : vector<28x28xf32>
    %344 = vector.extract_strided_slice %333 {offsets = [0, 0], sizes = [28, 28], strides = [1, 1]} : vector<28x92xf32> to vector<28x28xf32>
    %345 = vector.extract_strided_slice %333 {offsets = [0, 32], sizes = [28, 28], strides = [1, 1]} : vector<28x92xf32> to vector<28x28xf32>
    %346 = arith.addf %344, %345 : vector<28x28xf32>
    %347 = vector.extract_strided_slice %333 {offsets = [0, 64], sizes = [28, 28], strides = [1, 1]} : vector<28x92xf32> to vector<28x28xf32>
    %348 = arith.addf %346, %347 : vector<28x28xf32>
    %c0_79 = arith.constant 0 : index
    %349 = memref.load %arg1[%c0_79] : memref<3xf32, #tpu.memory_space<smem>>
    %c0_80 = arith.constant 0 : index
    %350 = memref.load %arg2[%c0_80] : memref<3xf32, #tpu.memory_space<smem>>
    %cst_81 = arith.constant 0.000000e+00 : f32
    %351 = vector.broadcast %cst_81 : f32 to vector<28x28xf32>
    %352 = vector.extract_strided_slice %338 {offsets = [0, 0], sizes = [16, 16], strides = [1, 1]} : vector<28x28xf32> to vector<16x16xf32>
    %353 = vector.shape_cast %352 : vector<16x16xf32> to vector<1x16x16xf32>
    %cst_82 = arith.constant dense<0.000000e+00> : vector<1xf32>
    %354 = vector.multi_reduction <add>, %353, %cst_82 [1, 2] : vector<1x16x16xf32> to vector<1xf32>
    %355 = vector.shape_cast %354 : vector<1xf32> to vector<1x1x1xf32>
    %356 = vector.extract %355[0, 0, 0] : f32 from vector<1x1x1xf32>
    %357 = vector.broadcast %356 : f32 to vector<1x1xf32>
    %cst_83 = arith.constant 3.906250e-03 : f32
    %358 = vector.broadcast %cst_83 : f32 to vector<1x1xf32>
    %359 = arith.mulf %357, %358 : vector<1x1xf32>
    %360 = vector.broadcast %359 : vector<1x1xf32> to vector<16x16xf32>
    %361 = arith.subf %352, %360 : vector<16x16xf32>
    %362 = arith.mulf %361, %361 : vector<16x16xf32>
    %363 = vector.shape_cast %362 : vector<16x16xf32> to vector<1x16x16xf32>
    %cst_84 = arith.constant dense<0.000000e+00> : vector<1xf32>
    %364 = vector.multi_reduction <add>, %363, %cst_84 [1, 2] : vector<1x16x16xf32> to vector<1xf32>
    %365 = vector.shape_cast %364 : vector<1xf32> to vector<1x1x1xf32>
    %366 = vector.extract %365[0, 0, 0] : f32 from vector<1x1x1xf32>
    %367 = vector.broadcast %366 : f32 to vector<1x1xf32>
    %cst_85 = arith.constant 3.906250e-03 : f32
    %368 = vector.broadcast %cst_85 : f32 to vector<1x1xf32>
    %369 = arith.mulf %367, %368 : vector<1x1xf32>
    %cst_86 = arith.constant 9.99999974E-6 : f32
    %370 = vector.broadcast %cst_86 : f32 to vector<1x1xf32>
    %371 = arith.addf %369, %370 : vector<1x1xf32>
    %372 = math.rsqrt %371 : vector<1x1xf32>
    %373 = vector.broadcast %349 : f32 to vector<1x1xf32>
    %374 = arith.mulf %373, %372 : vector<1x1xf32>
    %375 = vector.broadcast %359 : vector<1x1xf32> to vector<28x28xf32>
    %376 = arith.subf %338, %375 : vector<28x28xf32>
    %377 = vector.broadcast %374 : vector<1x1xf32> to vector<28x28xf32>
    %378 = arith.mulf %376, %377 : vector<28x28xf32>
    %379 = vector.broadcast %350 : f32 to vector<28x28xf32>
    %380 = arith.addf %378, %379 : vector<28x28xf32>
    %cst_87 = arith.constant 0.000000e+00 : f32
    %381 = vector.broadcast %cst_87 : f32 to vector<28x28xf32>
    %382 = arith.maximumf %380, %381 : vector<28x28xf32>
    %c0_88 = arith.constant 0 : index
    %c0_89 = arith.constant 0 : index
    %c0_90 = arith.constant 0 : index
    %383 = vector.load %arg4[%c0_88, %c0_89, %c0_90] : memref<4x28x28xf32, #tpu.memory_space<vmem>>, vector<1x28x28xf32>
    %384 = vector.shape_cast %383 : vector<1x28x28xf32> to vector<28x28xf32>
    %385 = arith.mulf %382, %384 : vector<28x28xf32>
    %386 = arith.addf %351, %385 : vector<28x28xf32>
    %387 = vector.extract_strided_slice %338 {offsets = [0, 12], sizes = [16, 16], strides = [1, 1]} : vector<28x28xf32> to vector<16x16xf32>
    %388 = vector.shape_cast %387 : vector<16x16xf32> to vector<1x16x16xf32>
    %cst_91 = arith.constant dense<0.000000e+00> : vector<1xf32>
    %389 = vector.multi_reduction <add>, %388, %cst_91 [1, 2] : vector<1x16x16xf32> to vector<1xf32>
    %390 = vector.shape_cast %389 : vector<1xf32> to vector<1x1x1xf32>
    %391 = vector.extract %390[0, 0, 0] : f32 from vector<1x1x1xf32>
    %392 = vector.broadcast %391 : f32 to vector<1x1xf32>
    %cst_92 = arith.constant 3.906250e-03 : f32
    %393 = vector.broadcast %cst_92 : f32 to vector<1x1xf32>
    %394 = arith.mulf %392, %393 : vector<1x1xf32>
    %395 = vector.broadcast %394 : vector<1x1xf32> to vector<16x16xf32>
    %396 = arith.subf %387, %395 : vector<16x16xf32>
    %397 = arith.mulf %396, %396 : vector<16x16xf32>
    %398 = vector.shape_cast %397 : vector<16x16xf32> to vector<1x16x16xf32>
    %cst_93 = arith.constant dense<0.000000e+00> : vector<1xf32>
    %399 = vector.multi_reduction <add>, %398, %cst_93 [1, 2] : vector<1x16x16xf32> to vector<1xf32>
    %400 = vector.shape_cast %399 : vector<1xf32> to vector<1x1x1xf32>
    %401 = vector.extract %400[0, 0, 0] : f32 from vector<1x1x1xf32>
    %402 = vector.broadcast %401 : f32 to vector<1x1xf32>
    %cst_94 = arith.constant 3.906250e-03 : f32
    %403 = vector.broadcast %cst_94 : f32 to vector<1x1xf32>
    %404 = arith.mulf %402, %403 : vector<1x1xf32>
    %cst_95 = arith.constant 9.99999974E-6 : f32
    %405 = vector.broadcast %cst_95 : f32 to vector<1x1xf32>
    %406 = arith.addf %404, %405 : vector<1x1xf32>
    %407 = math.rsqrt %406 : vector<1x1xf32>
    %408 = vector.broadcast %349 : f32 to vector<1x1xf32>
    %409 = arith.mulf %408, %407 : vector<1x1xf32>
    %410 = vector.broadcast %394 : vector<1x1xf32> to vector<28x28xf32>
    %411 = arith.subf %338, %410 : vector<28x28xf32>
    %412 = vector.broadcast %409 : vector<1x1xf32> to vector<28x28xf32>
    %413 = arith.mulf %411, %412 : vector<28x28xf32>
    %414 = vector.broadcast %350 : f32 to vector<28x28xf32>
    %415 = arith.addf %413, %414 : vector<28x28xf32>
    %cst_96 = arith.constant 0.000000e+00 : f32
    %416 = vector.broadcast %cst_96 : f32 to vector<28x28xf32>
    %417 = arith.maximumf %415, %416 : vector<28x28xf32>
    %c1_97 = arith.constant 1 : index
    %c0_98 = arith.constant 0 : index
    %c0_99 = arith.constant 0 : index
    %418 = vector.load %arg4[%c1_97, %c0_98, %c0_99] : memref<4x28x28xf32, #tpu.memory_space<vmem>>, vector<1x28x28xf32>
    %419 = vector.shape_cast %418 : vector<1x28x28xf32> to vector<28x28xf32>
    %420 = arith.mulf %417, %419 : vector<28x28xf32>
    %421 = arith.addf %386, %420 : vector<28x28xf32>
    %422 = vector.extract_strided_slice %338 {offsets = [12, 0], sizes = [16, 16], strides = [1, 1]} : vector<28x28xf32> to vector<16x16xf32>
    %423 = vector.shape_cast %422 : vector<16x16xf32> to vector<1x16x16xf32>
    %cst_100 = arith.constant dense<0.000000e+00> : vector<1xf32>
    %424 = vector.multi_reduction <add>, %423, %cst_100 [1, 2] : vector<1x16x16xf32> to vector<1xf32>
    %425 = vector.shape_cast %424 : vector<1xf32> to vector<1x1x1xf32>
    %426 = vector.extract %425[0, 0, 0] : f32 from vector<1x1x1xf32>
    %427 = vector.broadcast %426 : f32 to vector<1x1xf32>
    %cst_101 = arith.constant 3.906250e-03 : f32
    %428 = vector.broadcast %cst_101 : f32 to vector<1x1xf32>
    %429 = arith.mulf %427, %428 : vector<1x1xf32>
    %430 = vector.broadcast %429 : vector<1x1xf32> to vector<16x16xf32>
    %431 = arith.subf %422, %430 : vector<16x16xf32>
    %432 = arith.mulf %431, %431 : vector<16x16xf32>
    %433 = vector.shape_cast %432 : vector<16x16xf32> to vector<1x16x16xf32>
    %cst_102 = arith.constant dense<0.000000e+00> : vector<1xf32>
    %434 = vector.multi_reduction <add>, %433, %cst_102 [1, 2] : vector<1x16x16xf32> to vector<1xf32>
    %435 = vector.shape_cast %434 : vector<1xf32> to vector<1x1x1xf32>
    %436 = vector.extract %435[0, 0, 0] : f32 from vector<1x1x1xf32>
    %437 = vector.broadcast %436 : f32 to vector<1x1xf32>
    %cst_103 = arith.constant 3.906250e-03 : f32
    %438 = vector.broadcast %cst_103 : f32 to vector<1x1xf32>
    %439 = arith.mulf %437, %438 : vector<1x1xf32>
    %cst_104 = arith.constant 9.99999974E-6 : f32
    %440 = vector.broadcast %cst_104 : f32 to vector<1x1xf32>
    %441 = arith.addf %439, %440 : vector<1x1xf32>
    %442 = math.rsqrt %441 : vector<1x1xf32>
    %443 = vector.broadcast %349 : f32 to vector<1x1xf32>
    %444 = arith.mulf %443, %442 : vector<1x1xf32>
    %445 = vector.broadcast %429 : vector<1x1xf32> to vector<28x28xf32>
    %446 = arith.subf %338, %445 : vector<28x28xf32>
    %447 = vector.broadcast %444 : vector<1x1xf32> to vector<28x28xf32>
    %448 = arith.mulf %446, %447 : vector<28x28xf32>
    %449 = vector.broadcast %350 : f32 to vector<28x28xf32>
    %450 = arith.addf %448, %449 : vector<28x28xf32>
    %cst_105 = arith.constant 0.000000e+00 : f32
    %451 = vector.broadcast %cst_105 : f32 to vector<28x28xf32>
    %452 = arith.maximumf %450, %451 : vector<28x28xf32>
    %c2_106 = arith.constant 2 : index
    %c0_107 = arith.constant 0 : index
    %c0_108 = arith.constant 0 : index
    %453 = vector.load %arg4[%c2_106, %c0_107, %c0_108] : memref<4x28x28xf32, #tpu.memory_space<vmem>>, vector<1x28x28xf32>
    %454 = vector.shape_cast %453 : vector<1x28x28xf32> to vector<28x28xf32>
    %455 = arith.mulf %452, %454 : vector<28x28xf32>
    %456 = arith.addf %421, %455 : vector<28x28xf32>
    %457 = vector.extract_strided_slice %338 {offsets = [12, 12], sizes = [16, 16], strides = [1, 1]} : vector<28x28xf32> to vector<16x16xf32>
    %458 = vector.shape_cast %457 : vector<16x16xf32> to vector<1x16x16xf32>
    %cst_109 = arith.constant dense<0.000000e+00> : vector<1xf32>
    %459 = vector.multi_reduction <add>, %458, %cst_109 [1, 2] : vector<1x16x16xf32> to vector<1xf32>
    %460 = vector.shape_cast %459 : vector<1xf32> to vector<1x1x1xf32>
    %461 = vector.extract %460[0, 0, 0] : f32 from vector<1x1x1xf32>
    %462 = vector.broadcast %461 : f32 to vector<1x1xf32>
    %cst_110 = arith.constant 3.906250e-03 : f32
    %463 = vector.broadcast %cst_110 : f32 to vector<1x1xf32>
    %464 = arith.mulf %462, %463 : vector<1x1xf32>
    %465 = vector.broadcast %464 : vector<1x1xf32> to vector<16x16xf32>
    %466 = arith.subf %457, %465 : vector<16x16xf32>
    %467 = arith.mulf %466, %466 : vector<16x16xf32>
    %468 = vector.shape_cast %467 : vector<16x16xf32> to vector<1x16x16xf32>
    %cst_111 = arith.constant dense<0.000000e+00> : vector<1xf32>
    %469 = vector.multi_reduction <add>, %468, %cst_111 [1, 2] : vector<1x16x16xf32> to vector<1xf32>
    %470 = vector.shape_cast %469 : vector<1xf32> to vector<1x1x1xf32>
    %471 = vector.extract %470[0, 0, 0] : f32 from vector<1x1x1xf32>
    %472 = vector.broadcast %471 : f32 to vector<1x1xf32>
    %cst_112 = arith.constant 3.906250e-03 : f32
    %473 = vector.broadcast %cst_112 : f32 to vector<1x1xf32>
    %474 = arith.mulf %472, %473 : vector<1x1xf32>
    %cst_113 = arith.constant 9.99999974E-6 : f32
    %475 = vector.broadcast %cst_113 : f32 to vector<1x1xf32>
    %476 = arith.addf %474, %475 : vector<1x1xf32>
    %477 = math.rsqrt %476 : vector<1x1xf32>
    %478 = vector.broadcast %349 : f32 to vector<1x1xf32>
    %479 = arith.mulf %478, %477 : vector<1x1xf32>
    %480 = vector.broadcast %464 : vector<1x1xf32> to vector<28x28xf32>
    %481 = arith.subf %338, %480 : vector<28x28xf32>
    %482 = vector.broadcast %479 : vector<1x1xf32> to vector<28x28xf32>
    %483 = arith.mulf %481, %482 : vector<28x28xf32>
    %484 = vector.broadcast %350 : f32 to vector<28x28xf32>
    %485 = arith.addf %483, %484 : vector<28x28xf32>
    %cst_114 = arith.constant 0.000000e+00 : f32
    %486 = vector.broadcast %cst_114 : f32 to vector<28x28xf32>
    %487 = arith.maximumf %485, %486 : vector<28x28xf32>
    %c3_115 = arith.constant 3 : index
    %c0_116 = arith.constant 0 : index
    %c0_117 = arith.constant 0 : index
    %488 = vector.load %arg4[%c3_115, %c0_116, %c0_117] : memref<4x28x28xf32, #tpu.memory_space<vmem>>, vector<1x28x28xf32>
    %489 = vector.shape_cast %488 : vector<1x28x28xf32> to vector<28x28xf32>
    %490 = arith.mulf %487, %489 : vector<28x28xf32>
    %491 = arith.addf %456, %490 : vector<28x28xf32>
    %c1_118 = arith.constant 1 : index
    %492 = memref.load %arg1[%c1_118] : memref<3xf32, #tpu.memory_space<smem>>
    %c1_119 = arith.constant 1 : index
    %493 = memref.load %arg2[%c1_119] : memref<3xf32, #tpu.memory_space<smem>>
    %cst_120 = arith.constant 0.000000e+00 : f32
    %494 = vector.broadcast %cst_120 : f32 to vector<28x28xf32>
    %495 = vector.extract_strided_slice %343 {offsets = [0, 0], sizes = [16, 16], strides = [1, 1]} : vector<28x28xf32> to vector<16x16xf32>
    %496 = vector.shape_cast %495 : vector<16x16xf32> to vector<1x16x16xf32>
    %cst_121 = arith.constant dense<0.000000e+00> : vector<1xf32>
    %497 = vector.multi_reduction <add>, %496, %cst_121 [1, 2] : vector<1x16x16xf32> to vector<1xf32>
    %498 = vector.shape_cast %497 : vector<1xf32> to vector<1x1x1xf32>
    %499 = vector.extract %498[0, 0, 0] : f32 from vector<1x1x1xf32>
    %500 = vector.broadcast %499 : f32 to vector<1x1xf32>
    %cst_122 = arith.constant 3.906250e-03 : f32
    %501 = vector.broadcast %cst_122 : f32 to vector<1x1xf32>
    %502 = arith.mulf %500, %501 : vector<1x1xf32>
    %503 = vector.broadcast %502 : vector<1x1xf32> to vector<16x16xf32>
    %504 = arith.subf %495, %503 : vector<16x16xf32>
    %505 = arith.mulf %504, %504 : vector<16x16xf32>
    %506 = vector.shape_cast %505 : vector<16x16xf32> to vector<1x16x16xf32>
    %cst_123 = arith.constant dense<0.000000e+00> : vector<1xf32>
    %507 = vector.multi_reduction <add>, %506, %cst_123 [1, 2] : vector<1x16x16xf32> to vector<1xf32>
    %508 = vector.shape_cast %507 : vector<1xf32> to vector<1x1x1xf32>
    %509 = vector.extract %508[0, 0, 0] : f32 from vector<1x1x1xf32>
    %510 = vector.broadcast %509 : f32 to vector<1x1xf32>
    %cst_124 = arith.constant 3.906250e-03 : f32
    %511 = vector.broadcast %cst_124 : f32 to vector<1x1xf32>
    %512 = arith.mulf %510, %511 : vector<1x1xf32>
    %cst_125 = arith.constant 9.99999974E-6 : f32
    %513 = vector.broadcast %cst_125 : f32 to vector<1x1xf32>
    %514 = arith.addf %512, %513 : vector<1x1xf32>
    %515 = math.rsqrt %514 : vector<1x1xf32>
    %516 = vector.broadcast %492 : f32 to vector<1x1xf32>
    %517 = arith.mulf %516, %515 : vector<1x1xf32>
    %518 = vector.broadcast %502 : vector<1x1xf32> to vector<28x28xf32>
    %519 = arith.subf %343, %518 : vector<28x28xf32>
    %520 = vector.broadcast %517 : vector<1x1xf32> to vector<28x28xf32>
    %521 = arith.mulf %519, %520 : vector<28x28xf32>
    %522 = vector.broadcast %493 : f32 to vector<28x28xf32>
    %523 = arith.addf %521, %522 : vector<28x28xf32>
    %cst_126 = arith.constant 0.000000e+00 : f32
    %524 = vector.broadcast %cst_126 : f32 to vector<28x28xf32>
    %525 = arith.maximumf %523, %524 : vector<28x28xf32>
    %c0_127 = arith.constant 0 : index
    %c0_128 = arith.constant 0 : index
    %c0_129 = arith.constant 0 : index
    %526 = vector.load %arg4[%c0_127, %c0_128, %c0_129] : memref<4x28x28xf32, #tpu.memory_space<vmem>>, vector<1x28x28xf32>
    %527 = vector.shape_cast %526 : vector<1x28x28xf32> to vector<28x28xf32>
    %528 = arith.mulf %525, %527 : vector<28x28xf32>
    %529 = arith.addf %494, %528 : vector<28x28xf32>
    %530 = vector.extract_strided_slice %343 {offsets = [0, 12], sizes = [16, 16], strides = [1, 1]} : vector<28x28xf32> to vector<16x16xf32>
    %531 = vector.shape_cast %530 : vector<16x16xf32> to vector<1x16x16xf32>
    %cst_130 = arith.constant dense<0.000000e+00> : vector<1xf32>
    %532 = vector.multi_reduction <add>, %531, %cst_130 [1, 2] : vector<1x16x16xf32> to vector<1xf32>
    %533 = vector.shape_cast %532 : vector<1xf32> to vector<1x1x1xf32>
    %534 = vector.extract %533[0, 0, 0] : f32 from vector<1x1x1xf32>
    %535 = vector.broadcast %534 : f32 to vector<1x1xf32>
    %cst_131 = arith.constant 3.906250e-03 : f32
    %536 = vector.broadcast %cst_131 : f32 to vector<1x1xf32>
    %537 = arith.mulf %535, %536 : vector<1x1xf32>
    %538 = vector.broadcast %537 : vector<1x1xf32> to vector<16x16xf32>
    %539 = arith.subf %530, %538 : vector<16x16xf32>
    %540 = arith.mulf %539, %539 : vector<16x16xf32>
    %541 = vector.shape_cast %540 : vector<16x16xf32> to vector<1x16x16xf32>
    %cst_132 = arith.constant dense<0.000000e+00> : vector<1xf32>
    %542 = vector.multi_reduction <add>, %541, %cst_132 [1, 2] : vector<1x16x16xf32> to vector<1xf32>
    %543 = vector.shape_cast %542 : vector<1xf32> to vector<1x1x1xf32>
    %544 = vector.extract %543[0, 0, 0] : f32 from vector<1x1x1xf32>
    %545 = vector.broadcast %544 : f32 to vector<1x1xf32>
    %cst_133 = arith.constant 3.906250e-03 : f32
    %546 = vector.broadcast %cst_133 : f32 to vector<1x1xf32>
    %547 = arith.mulf %545, %546 : vector<1x1xf32>
    %cst_134 = arith.constant 9.99999974E-6 : f32
    %548 = vector.broadcast %cst_134 : f32 to vector<1x1xf32>
    %549 = arith.addf %547, %548 : vector<1x1xf32>
    %550 = math.rsqrt %549 : vector<1x1xf32>
    %551 = vector.broadcast %492 : f32 to vector<1x1xf32>
    %552 = arith.mulf %551, %550 : vector<1x1xf32>
    %553 = vector.broadcast %537 : vector<1x1xf32> to vector<28x28xf32>
    %554 = arith.subf %343, %553 : vector<28x28xf32>
    %555 = vector.broadcast %552 : vector<1x1xf32> to vector<28x28xf32>
    %556 = arith.mulf %554, %555 : vector<28x28xf32>
    %557 = vector.broadcast %493 : f32 to vector<28x28xf32>
    %558 = arith.addf %556, %557 : vector<28x28xf32>
    %cst_135 = arith.constant 0.000000e+00 : f32
    %559 = vector.broadcast %cst_135 : f32 to vector<28x28xf32>
    %560 = arith.maximumf %558, %559 : vector<28x28xf32>
    %c1_136 = arith.constant 1 : index
    %c0_137 = arith.constant 0 : index
    %c0_138 = arith.constant 0 : index
    %561 = vector.load %arg4[%c1_136, %c0_137, %c0_138] : memref<4x28x28xf32, #tpu.memory_space<vmem>>, vector<1x28x28xf32>
    %562 = vector.shape_cast %561 : vector<1x28x28xf32> to vector<28x28xf32>
    %563 = arith.mulf %560, %562 : vector<28x28xf32>
    %564 = arith.addf %529, %563 : vector<28x28xf32>
    %565 = vector.extract_strided_slice %343 {offsets = [12, 0], sizes = [16, 16], strides = [1, 1]} : vector<28x28xf32> to vector<16x16xf32>
    %566 = vector.shape_cast %565 : vector<16x16xf32> to vector<1x16x16xf32>
    %cst_139 = arith.constant dense<0.000000e+00> : vector<1xf32>
    %567 = vector.multi_reduction <add>, %566, %cst_139 [1, 2] : vector<1x16x16xf32> to vector<1xf32>
    %568 = vector.shape_cast %567 : vector<1xf32> to vector<1x1x1xf32>
    %569 = vector.extract %568[0, 0, 0] : f32 from vector<1x1x1xf32>
    %570 = vector.broadcast %569 : f32 to vector<1x1xf32>
    %cst_140 = arith.constant 3.906250e-03 : f32
    %571 = vector.broadcast %cst_140 : f32 to vector<1x1xf32>
    %572 = arith.mulf %570, %571 : vector<1x1xf32>
    %573 = vector.broadcast %572 : vector<1x1xf32> to vector<16x16xf32>
    %574 = arith.subf %565, %573 : vector<16x16xf32>
    %575 = arith.mulf %574, %574 : vector<16x16xf32>
    %576 = vector.shape_cast %575 : vector<16x16xf32> to vector<1x16x16xf32>
    %cst_141 = arith.constant dense<0.000000e+00> : vector<1xf32>
    %577 = vector.multi_reduction <add>, %576, %cst_141 [1, 2] : vector<1x16x16xf32> to vector<1xf32>
    %578 = vector.shape_cast %577 : vector<1xf32> to vector<1x1x1xf32>
    %579 = vector.extract %578[0, 0, 0] : f32 from vector<1x1x1xf32>
    %580 = vector.broadcast %579 : f32 to vector<1x1xf32>
    %cst_142 = arith.constant 3.906250e-03 : f32
    %581 = vector.broadcast %cst_142 : f32 to vector<1x1xf32>
    %582 = arith.mulf %580, %581 : vector<1x1xf32>
    %cst_143 = arith.constant 9.99999974E-6 : f32
    %583 = vector.broadcast %cst_143 : f32 to vector<1x1xf32>
    %584 = arith.addf %582, %583 : vector<1x1xf32>
    %585 = math.rsqrt %584 : vector<1x1xf32>
    %586 = vector.broadcast %492 : f32 to vector<1x1xf32>
    %587 = arith.mulf %586, %585 : vector<1x1xf32>
    %588 = vector.broadcast %572 : vector<1x1xf32> to vector<28x28xf32>
    %589 = arith.subf %343, %588 : vector<28x28xf32>
    %590 = vector.broadcast %587 : vector<1x1xf32> to vector<28x28xf32>
    %591 = arith.mulf %589, %590 : vector<28x28xf32>
    %592 = vector.broadcast %493 : f32 to vector<28x28xf32>
    %593 = arith.addf %591, %592 : vector<28x28xf32>
    %cst_144 = arith.constant 0.000000e+00 : f32
    %594 = vector.broadcast %cst_144 : f32 to vector<28x28xf32>
    %595 = arith.maximumf %593, %594 : vector<28x28xf32>
    %c2_145 = arith.constant 2 : index
    %c0_146 = arith.constant 0 : index
    %c0_147 = arith.constant 0 : index
    %596 = vector.load %arg4[%c2_145, %c0_146, %c0_147] : memref<4x28x28xf32, #tpu.memory_space<vmem>>, vector<1x28x28xf32>
    %597 = vector.shape_cast %596 : vector<1x28x28xf32> to vector<28x28xf32>
    %598 = arith.mulf %595, %597 : vector<28x28xf32>
    %599 = arith.addf %564, %598 : vector<28x28xf32>
    %600 = vector.extract_strided_slice %343 {offsets = [12, 12], sizes = [16, 16], strides = [1, 1]} : vector<28x28xf32> to vector<16x16xf32>
    %601 = vector.shape_cast %600 : vector<16x16xf32> to vector<1x16x16xf32>
    %cst_148 = arith.constant dense<0.000000e+00> : vector<1xf32>
    %602 = vector.multi_reduction <add>, %601, %cst_148 [1, 2] : vector<1x16x16xf32> to vector<1xf32>
    %603 = vector.shape_cast %602 : vector<1xf32> to vector<1x1x1xf32>
    %604 = vector.extract %603[0, 0, 0] : f32 from vector<1x1x1xf32>
    %605 = vector.broadcast %604 : f32 to vector<1x1xf32>
    %cst_149 = arith.constant 3.906250e-03 : f32
    %606 = vector.broadcast %cst_149 : f32 to vector<1x1xf32>
    %607 = arith.mulf %605, %606 : vector<1x1xf32>
    %608 = vector.broadcast %607 : vector<1x1xf32> to vector<16x16xf32>
    %609 = arith.subf %600, %608 : vector<16x16xf32>
    %610 = arith.mulf %609, %609 : vector<16x16xf32>
    %611 = vector.shape_cast %610 : vector<16x16xf32> to vector<1x16x16xf32>
    %cst_150 = arith.constant dense<0.000000e+00> : vector<1xf32>
    %612 = vector.multi_reduction <add>, %611, %cst_150 [1, 2] : vector<1x16x16xf32> to vector<1xf32>
    %613 = vector.shape_cast %612 : vector<1xf32> to vector<1x1x1xf32>
    %614 = vector.extract %613[0, 0, 0] : f32 from vector<1x1x1xf32>
    %615 = vector.broadcast %614 : f32 to vector<1x1xf32>
    %cst_151 = arith.constant 3.906250e-03 : f32
    %616 = vector.broadcast %cst_151 : f32 to vector<1x1xf32>
    %617 = arith.mulf %615, %616 : vector<1x1xf32>
    %cst_152 = arith.constant 9.99999974E-6 : f32
    %618 = vector.broadcast %cst_152 : f32 to vector<1x1xf32>
    %619 = arith.addf %617, %618 : vector<1x1xf32>
    %620 = math.rsqrt %619 : vector<1x1xf32>
    %621 = vector.broadcast %492 : f32 to vector<1x1xf32>
    %622 = arith.mulf %621, %620 : vector<1x1xf32>
    %623 = vector.broadcast %607 : vector<1x1xf32> to vector<28x28xf32>
    %624 = arith.subf %343, %623 : vector<28x28xf32>
    %625 = vector.broadcast %622 : vector<1x1xf32> to vector<28x28xf32>
    %626 = arith.mulf %624, %625 : vector<28x28xf32>
    %627 = vector.broadcast %493 : f32 to vector<28x28xf32>
    %628 = arith.addf %626, %627 : vector<28x28xf32>
    %cst_153 = arith.constant 0.000000e+00 : f32
    %629 = vector.broadcast %cst_153 : f32 to vector<28x28xf32>
    %630 = arith.maximumf %628, %629 : vector<28x28xf32>
    %c3_154 = arith.constant 3 : index
    %c0_155 = arith.constant 0 : index
    %c0_156 = arith.constant 0 : index
    %631 = vector.load %arg4[%c3_154, %c0_155, %c0_156] : memref<4x28x28xf32, #tpu.memory_space<vmem>>, vector<1x28x28xf32>
    %632 = vector.shape_cast %631 : vector<1x28x28xf32> to vector<28x28xf32>
    %633 = arith.mulf %630, %632 : vector<28x28xf32>
    %634 = arith.addf %599, %633 : vector<28x28xf32>
    %c2_157 = arith.constant 2 : index
    %635 = memref.load %arg1[%c2_157] : memref<3xf32, #tpu.memory_space<smem>>
    %c2_158 = arith.constant 2 : index
    %636 = memref.load %arg2[%c2_158] : memref<3xf32, #tpu.memory_space<smem>>
    %cst_159 = arith.constant 0.000000e+00 : f32
    %637 = vector.broadcast %cst_159 : f32 to vector<28x28xf32>
    %638 = vector.extract_strided_slice %348 {offsets = [0, 0], sizes = [16, 16], strides = [1, 1]} : vector<28x28xf32> to vector<16x16xf32>
    %639 = vector.shape_cast %638 : vector<16x16xf32> to vector<1x16x16xf32>
    %cst_160 = arith.constant dense<0.000000e+00> : vector<1xf32>
    %640 = vector.multi_reduction <add>, %639, %cst_160 [1, 2] : vector<1x16x16xf32> to vector<1xf32>
    %641 = vector.shape_cast %640 : vector<1xf32> to vector<1x1x1xf32>
    %642 = vector.extract %641[0, 0, 0] : f32 from vector<1x1x1xf32>
    %643 = vector.broadcast %642 : f32 to vector<1x1xf32>
    %cst_161 = arith.constant 3.906250e-03 : f32
    %644 = vector.broadcast %cst_161 : f32 to vector<1x1xf32>
    %645 = arith.mulf %643, %644 : vector<1x1xf32>
    %646 = vector.broadcast %645 : vector<1x1xf32> to vector<16x16xf32>
    %647 = arith.subf %638, %646 : vector<16x16xf32>
    %648 = arith.mulf %647, %647 : vector<16x16xf32>
    %649 = vector.shape_cast %648 : vector<16x16xf32> to vector<1x16x16xf32>
    %cst_162 = arith.constant dense<0.000000e+00> : vector<1xf32>
    %650 = vector.multi_reduction <add>, %649, %cst_162 [1, 2] : vector<1x16x16xf32> to vector<1xf32>
    %651 = vector.shape_cast %650 : vector<1xf32> to vector<1x1x1xf32>
    %652 = vector.extract %651[0, 0, 0] : f32 from vector<1x1x1xf32>
    %653 = vector.broadcast %652 : f32 to vector<1x1xf32>
    %cst_163 = arith.constant 3.906250e-03 : f32
    %654 = vector.broadcast %cst_163 : f32 to vector<1x1xf32>
    %655 = arith.mulf %653, %654 : vector<1x1xf32>
    %cst_164 = arith.constant 9.99999974E-6 : f32
    %656 = vector.broadcast %cst_164 : f32 to vector<1x1xf32>
    %657 = arith.addf %655, %656 : vector<1x1xf32>
    %658 = math.rsqrt %657 : vector<1x1xf32>
    %659 = vector.broadcast %635 : f32 to vector<1x1xf32>
    %660 = arith.mulf %659, %658 : vector<1x1xf32>
    %661 = vector.broadcast %645 : vector<1x1xf32> to vector<28x28xf32>
    %662 = arith.subf %348, %661 : vector<28x28xf32>
    %663 = vector.broadcast %660 : vector<1x1xf32> to vector<28x28xf32>
    %664 = arith.mulf %662, %663 : vector<28x28xf32>
    %665 = vector.broadcast %636 : f32 to vector<28x28xf32>
    %666 = arith.addf %664, %665 : vector<28x28xf32>
    %cst_165 = arith.constant 0.000000e+00 : f32
    %667 = vector.broadcast %cst_165 : f32 to vector<28x28xf32>
    %668 = arith.maximumf %666, %667 : vector<28x28xf32>
    %c0_166 = arith.constant 0 : index
    %c0_167 = arith.constant 0 : index
    %c0_168 = arith.constant 0 : index
    %669 = vector.load %arg4[%c0_166, %c0_167, %c0_168] : memref<4x28x28xf32, #tpu.memory_space<vmem>>, vector<1x28x28xf32>
    %670 = vector.shape_cast %669 : vector<1x28x28xf32> to vector<28x28xf32>
    %671 = arith.mulf %668, %670 : vector<28x28xf32>
    %672 = arith.addf %637, %671 : vector<28x28xf32>
    %673 = vector.extract_strided_slice %348 {offsets = [0, 12], sizes = [16, 16], strides = [1, 1]} : vector<28x28xf32> to vector<16x16xf32>
    %674 = vector.shape_cast %673 : vector<16x16xf32> to vector<1x16x16xf32>
    %cst_169 = arith.constant dense<0.000000e+00> : vector<1xf32>
    %675 = vector.multi_reduction <add>, %674, %cst_169 [1, 2] : vector<1x16x16xf32> to vector<1xf32>
    %676 = vector.shape_cast %675 : vector<1xf32> to vector<1x1x1xf32>
    %677 = vector.extract %676[0, 0, 0] : f32 from vector<1x1x1xf32>
    %678 = vector.broadcast %677 : f32 to vector<1x1xf32>
    %cst_170 = arith.constant 3.906250e-03 : f32
    %679 = vector.broadcast %cst_170 : f32 to vector<1x1xf32>
    %680 = arith.mulf %678, %679 : vector<1x1xf32>
    %681 = vector.broadcast %680 : vector<1x1xf32> to vector<16x16xf32>
    %682 = arith.subf %673, %681 : vector<16x16xf32>
    %683 = arith.mulf %682, %682 : vector<16x16xf32>
    %684 = vector.shape_cast %683 : vector<16x16xf32> to vector<1x16x16xf32>
    %cst_171 = arith.constant dense<0.000000e+00> : vector<1xf32>
    %685 = vector.multi_reduction <add>, %684, %cst_171 [1, 2] : vector<1x16x16xf32> to vector<1xf32>
    %686 = vector.shape_cast %685 : vector<1xf32> to vector<1x1x1xf32>
    %687 = vector.extract %686[0, 0, 0] : f32 from vector<1x1x1xf32>
    %688 = vector.broadcast %687 : f32 to vector<1x1xf32>
    %cst_172 = arith.constant 3.906250e-03 : f32
    %689 = vector.broadcast %cst_172 : f32 to vector<1x1xf32>
    %690 = arith.mulf %688, %689 : vector<1x1xf32>
    %cst_173 = arith.constant 9.99999974E-6 : f32
    %691 = vector.broadcast %cst_173 : f32 to vector<1x1xf32>
    %692 = arith.addf %690, %691 : vector<1x1xf32>
    %693 = math.rsqrt %692 : vector<1x1xf32>
    %694 = vector.broadcast %635 : f32 to vector<1x1xf32>
    %695 = arith.mulf %694, %693 : vector<1x1xf32>
    %696 = vector.broadcast %680 : vector<1x1xf32> to vector<28x28xf32>
    %697 = arith.subf %348, %696 : vector<28x28xf32>
    %698 = vector.broadcast %695 : vector<1x1xf32> to vector<28x28xf32>
    %699 = arith.mulf %697, %698 : vector<28x28xf32>
    %700 = vector.broadcast %636 : f32 to vector<28x28xf32>
    %701 = arith.addf %699, %700 : vector<28x28xf32>
    %cst_174 = arith.constant 0.000000e+00 : f32
    %702 = vector.broadcast %cst_174 : f32 to vector<28x28xf32>
    %703 = arith.maximumf %701, %702 : vector<28x28xf32>
    %c1_175 = arith.constant 1 : index
    %c0_176 = arith.constant 0 : index
    %c0_177 = arith.constant 0 : index
    %704 = vector.load %arg4[%c1_175, %c0_176, %c0_177] : memref<4x28x28xf32, #tpu.memory_space<vmem>>, vector<1x28x28xf32>
    %705 = vector.shape_cast %704 : vector<1x28x28xf32> to vector<28x28xf32>
    %706 = arith.mulf %703, %705 : vector<28x28xf32>
    %707 = arith.addf %672, %706 : vector<28x28xf32>
    %708 = vector.extract_strided_slice %348 {offsets = [12, 0], sizes = [16, 16], strides = [1, 1]} : vector<28x28xf32> to vector<16x16xf32>
    %709 = vector.shape_cast %708 : vector<16x16xf32> to vector<1x16x16xf32>
    %cst_178 = arith.constant dense<0.000000e+00> : vector<1xf32>
    %710 = vector.multi_reduction <add>, %709, %cst_178 [1, 2] : vector<1x16x16xf32> to vector<1xf32>
    %711 = vector.shape_cast %710 : vector<1xf32> to vector<1x1x1xf32>
    %712 = vector.extract %711[0, 0, 0] : f32 from vector<1x1x1xf32>
    %713 = vector.broadcast %712 : f32 to vector<1x1xf32>
    %cst_179 = arith.constant 3.906250e-03 : f32
    %714 = vector.broadcast %cst_179 : f32 to vector<1x1xf32>
    %715 = arith.mulf %713, %714 : vector<1x1xf32>
    %716 = vector.broadcast %715 : vector<1x1xf32> to vector<16x16xf32>
    %717 = arith.subf %708, %716 : vector<16x16xf32>
    %718 = arith.mulf %717, %717 : vector<16x16xf32>
    %719 = vector.shape_cast %718 : vector<16x16xf32> to vector<1x16x16xf32>
    %cst_180 = arith.constant dense<0.000000e+00> : vector<1xf32>
    %720 = vector.multi_reduction <add>, %719, %cst_180 [1, 2] : vector<1x16x16xf32> to vector<1xf32>
    %721 = vector.shape_cast %720 : vector<1xf32> to vector<1x1x1xf32>
    %722 = vector.extract %721[0, 0, 0] : f32 from vector<1x1x1xf32>
    %723 = vector.broadcast %722 : f32 to vector<1x1xf32>
    %cst_181 = arith.constant 3.906250e-03 : f32
    %724 = vector.broadcast %cst_181 : f32 to vector<1x1xf32>
    %725 = arith.mulf %723, %724 : vector<1x1xf32>
    %cst_182 = arith.constant 9.99999974E-6 : f32
    %726 = vector.broadcast %cst_182 : f32 to vector<1x1xf32>
    %727 = arith.addf %725, %726 : vector<1x1xf32>
    %728 = math.rsqrt %727 : vector<1x1xf32>
    %729 = vector.broadcast %635 : f32 to vector<1x1xf32>
    %730 = arith.mulf %729, %728 : vector<1x1xf32>
    %731 = vector.broadcast %715 : vector<1x1xf32> to vector<28x28xf32>
    %732 = arith.subf %348, %731 : vector<28x28xf32>
    %733 = vector.broadcast %730 : vector<1x1xf32> to vector<28x28xf32>
    %734 = arith.mulf %732, %733 : vector<28x28xf32>
    %735 = vector.broadcast %636 : f32 to vector<28x28xf32>
    %736 = arith.addf %734, %735 : vector<28x28xf32>
    %cst_183 = arith.constant 0.000000e+00 : f32
    %737 = vector.broadcast %cst_183 : f32 to vector<28x28xf32>
    %738 = arith.maximumf %736, %737 : vector<28x28xf32>
    %c2_184 = arith.constant 2 : index
    %c0_185 = arith.constant 0 : index
    %c0_186 = arith.constant 0 : index
    %739 = vector.load %arg4[%c2_184, %c0_185, %c0_186] : memref<4x28x28xf32, #tpu.memory_space<vmem>>, vector<1x28x28xf32>
    %740 = vector.shape_cast %739 : vector<1x28x28xf32> to vector<28x28xf32>
    %741 = arith.mulf %738, %740 : vector<28x28xf32>
    %742 = arith.addf %707, %741 : vector<28x28xf32>
    %743 = vector.extract_strided_slice %348 {offsets = [12, 12], sizes = [16, 16], strides = [1, 1]} : vector<28x28xf32> to vector<16x16xf32>
    %744 = vector.shape_cast %743 : vector<16x16xf32> to vector<1x16x16xf32>
    %cst_187 = arith.constant dense<0.000000e+00> : vector<1xf32>
    %745 = vector.multi_reduction <add>, %744, %cst_187 [1, 2] : vector<1x16x16xf32> to vector<1xf32>
    %746 = vector.shape_cast %745 : vector<1xf32> to vector<1x1x1xf32>
    %747 = vector.extract %746[0, 0, 0] : f32 from vector<1x1x1xf32>
    %748 = vector.broadcast %747 : f32 to vector<1x1xf32>
    %cst_188 = arith.constant 3.906250e-03 : f32
    %749 = vector.broadcast %cst_188 : f32 to vector<1x1xf32>
    %750 = arith.mulf %748, %749 : vector<1x1xf32>
    %751 = vector.broadcast %750 : vector<1x1xf32> to vector<16x16xf32>
    %752 = arith.subf %743, %751 : vector<16x16xf32>
    %753 = arith.mulf %752, %752 : vector<16x16xf32>
    %754 = vector.shape_cast %753 : vector<16x16xf32> to vector<1x16x16xf32>
    %cst_189 = arith.constant dense<0.000000e+00> : vector<1xf32>
    %755 = vector.multi_reduction <add>, %754, %cst_189 [1, 2] : vector<1x16x16xf32> to vector<1xf32>
    %756 = vector.shape_cast %755 : vector<1xf32> to vector<1x1x1xf32>
    %757 = vector.extract %756[0, 0, 0] : f32 from vector<1x1x1xf32>
    %758 = vector.broadcast %757 : f32 to vector<1x1xf32>
    %cst_190 = arith.constant 3.906250e-03 : f32
    %759 = vector.broadcast %cst_190 : f32 to vector<1x1xf32>
    %760 = arith.mulf %758, %759 : vector<1x1xf32>
    %cst_191 = arith.constant 9.99999974E-6 : f32
    %761 = vector.broadcast %cst_191 : f32 to vector<1x1xf32>
    %762 = arith.addf %760, %761 : vector<1x1xf32>
    %763 = math.rsqrt %762 : vector<1x1xf32>
    %764 = vector.broadcast %635 : f32 to vector<1x1xf32>
    %765 = arith.mulf %764, %763 : vector<1x1xf32>
    %766 = vector.broadcast %750 : vector<1x1xf32> to vector<28x28xf32>
    %767 = arith.subf %348, %766 : vector<28x28xf32>
    %768 = vector.broadcast %765 : vector<1x1xf32> to vector<28x28xf32>
    %769 = arith.mulf %767, %768 : vector<28x28xf32>
    %770 = vector.broadcast %636 : f32 to vector<28x28xf32>
    %771 = arith.addf %769, %770 : vector<28x28xf32>
    %cst_192 = arith.constant 0.000000e+00 : f32
    %772 = vector.broadcast %cst_192 : f32 to vector<28x28xf32>
    %773 = arith.maximumf %771, %772 : vector<28x28xf32>
    %c3_193 = arith.constant 3 : index
    %c0_194 = arith.constant 0 : index
    %c0_195 = arith.constant 0 : index
    %774 = vector.load %arg4[%c3_193, %c0_194, %c0_195] : memref<4x28x28xf32, #tpu.memory_space<vmem>>, vector<1x28x28xf32>
    %775 = vector.shape_cast %774 : vector<1x28x28xf32> to vector<28x28xf32>
    %776 = arith.mulf %773, %775 : vector<28x28xf32>
    %777 = arith.addf %742, %776 : vector<28x28xf32>
    %778 = vector.shape_cast %491 : vector<28x28xf32> to vector<1x28x28xf32>
    %779 = vector.shape_cast %634 : vector<28x28xf32> to vector<1x28x28xf32>
    %780 = vector.shape_cast %777 : vector<28x28xf32> to vector<1x28x28xf32>
    %781 = tpu.concatenate %778, %779, %780 in 0 : vector<1x28x28xf32>, vector<1x28x28xf32>, vector<1x28x28xf32> -> vector<3x28x28xf32>
    %c0_196 = arith.constant 0 : index
    %c0_197 = arith.constant 0 : index
    %c0_198 = arith.constant 0 : index
    %782 = vector.load %arg5[%c0_196, %c0_197, %c0_198] : memref<3x28x28xf32, #tpu.memory_space<vmem>>, vector<3x28x28xf32>
    tpu.vector_store %arg5[%c0_196, %c0_197, %c0_198], %781 {strides = array<i32>} : memref<3x28x28xf32, #tpu.memory_space<vmem>>, vector<3x28x28xf32>,
    return
  }
}

</mosaic_0001>

<bundles_post_ra>
// kernel: safron_forward.1
= control target key start
LH: loop header
LB: loop body
LE: loop exit
PB: predicated region body
PF: predicated region fallthrough
CT: control target
= control target key end

     0   :  { %10 = vsyncpa [#allocation3], 0  ;;  %s5198_s0 = inlined_call_operand.vmem [shape: f32[75,92], index: 0, kind: input, shape index: {}]   ;;  %s5199_s1 = inlined_call_operand.vmem [shape: f32[3], index: 1, kind: input, shape index: {}]   ;;  %s5200_s2 = inlined_call_operand.vmem [shape: f32[3], index: 2, kind: input, shape index: {}]   ;;  %s5201_s3 = inlined_call_operand.vmem [shape: f32[32,96], index: 3, kind: input, shape index: {}]   ;;  %s5202_s4 = inlined_call_operand.vmem [shape: f32[4,28,28], index: 4, kind: input, shape index: {}]   ;;  %s5203_s5 = inlined_call_operand.vmem [shape: f32[3,28,28], index: 5, kind: output, shape index: {}]  }
   0x1   :  { %s20_s20 = sshll.u32 %s5199_s1, 4  ;;  %s21_s20 = int_to_ptr.vmem [resolvable:$true] %s20_s20 }
   0x2   :  { %11 = vsyncpa [#allocation5], 0  ;;  %s30_s23 = sshll.u32 %s5200_s2, 4  ;;  %s2727_s24 = scalar_lea.vmem %s21_s20, 16  ;;  %s31_s23 = int_to_ptr.vmem [resolvable:$true] %s30_s23 }
   0x3   :  { %p2728_p0 = scmp.ne.s32.totalorder %s21_s20, %s2727_s24  ;;  %p2732_p1 = scmp.lt.s32.totalorder %s21_s20, %s21_s20 }
   0x4   :  { %p2733_p2 = scmp.lt.s32.totalorder %s2727_s24, %s2727_s24 }
   0x6   :  { %p2734_p3 = por %p2733_p2, %p2732_p1 }
   0x8   :  { %p2735_p4 = pnand %p2734_p3, %p2728_p0 }
   0xa   :  { %2738 = shalt.err (!%p2735_p4)
}
   0xb   :  { %s2755_s25 = smov [#allocation2]   ;;  %s2739_s26 = scalar_lea.vmem %s31_s23, 16 }
   0xc   :  { %23 = dma.vmem_to_smem %s21_s20, 16, %s2755_s25, [#allocation3]  }
   0xd   :  { %p2740_p5 = scmp.ne.s32.totalorder %s31_s23, %s2739_s26  ;;  %p2744_p6 = scmp.lt.s32.totalorder %s31_s23, %s31_s23 }
   0xe   :  { %p2745_p7 = scmp.lt.s32.totalorder %s2739_s26, %s2739_s26 }
  0x10   :  { %p2746_p8 = por %p2745_p7, %p2744_p6 }
  0x12   :  { %p2747_p9 = pnand %p2746_p8, %p2740_p5 }
  0x14   :  { %2750 = shalt.err (!%p2747_p9)
}
  0x15   :  { %s2756_s1 = smov [#allocation4]  }
  0x16   :  { %33 = dma.vmem_to_smem %s31_s23, 16, %s2756_s1, [#allocation5]  }
  0x17   :  { %2751 = dma.done.wait [#allocation3], 16  }
  0x18   :  { %2752 = vsyncadd [#allocation3], 4294967280 }
  0x19   :  { %2753 = dma.done.wait [#allocation5], 16  }
  0x1a   :  { %2754 = vsyncadd [#allocation5], 4294967280 }
  0x1b   :  { %44 = sfence }
  0x1c   :  { %v2803_v0 = vld [vmem:[%s5201_s3] sm:$0xff]  ;;  %v2808_v1 = vld [vmem:[%s5201_s3 + $0x8] sm:$0xff]  ;;  %vm101_vm0 = vcmask 1046528   ;;  %v2813_v2 = vld [vmem:[%s5201_s3 + $0x10] sm:$0xff]  ;;  %vm186_vm1 = vcmask 1045504   ;;  %s2757_s7 = smov 127  }
  0x1d   :  { %437 = vrot.lane.b32.xlu0 %v2803_v0, %s2757_s7  ;;  %v488_v3 = vrot.slane %v2803_v0, 1  ;;  %v489_v4 = vrot.slane %v2808_v1, 1  ;;  %v5204_v5 = vrot.slane %v2813_v2, 1  ;;  %v546_v6 = vrot.slane %v2803_v0, 2  ;;  %v2843_v16 = vld [vmem:[%s5198_s0] ss:$0 sm:$0xff] }
  0x1e   :  { %v547_v7 = vrot.slane %v2808_v1, 2  ;;  %v5207_v8 = vrot.slane %v2813_v2, 2  ;;  %vm271_vm2 = vcmask 1044480   ;;  %v604_v9 = vrot.slane %v2803_v0, 3  ;;  %v2848_v17 = vld [vmem:[%s5198_s0 + $0x5] ss:$0 sm:$0xff] }
  0x1f   :  { %v2825_v10 = vsel %vm101_vm0, %v488_v3, %v489_v4  ;;  %v605_v11 = vrot.slane %v2808_v1, 3  ;;  %v5206_v12 = vrot.slane %v2813_v2, 3  ;;  %v2834_v13 = vsel %vm101_vm0, %v489_v4, %v5204_v5  ;;  %v2865_v22 = vld [vmem:[%s5198_s0 + $0x1e] ss:$0 sm:$0xff]  ;;  %v2870_v23 = vld [vmem:[%s5198_s0 + $0x37] ss:$0 sm:$0xff] }
  0x20   :  { %495 = vrot.lane.b32.xlu1 %v2825_v10, %s2757_s7  ;;  %v2837_v14 = vsel %vm186_vm1, %v546_v6, %v547_v7  ;;  %vm356_vm3 = vcmask 1043456   ;;  %v662_v15 = vrot.slane %v2803_v0, 4  ;;  %v2855_v18 = vsel %vm186_vm1, %v547_v7, %v5207_v8  ;;  %v2892_v28 = vld [vmem:[%s5198_s0 + $0xa] ss:$0 sm:$0xff]  ;;  %v2897_v29 = vld [vmem:[%s5198_s0 + $0x23] ss:$0 sm:$0xff] }
  0x21   :  { %439 = vrot.lane.b32.xlu0 %v2808_v1, %s2757_s7  ;;  %v2858_v19 = vsel %vm271_vm2, %v604_v9, %v605_v11  ;;  %v663_v20 = vrot.slane %v2808_v1, 4  ;;  %v5205_v21 = vrot.slane %v2813_v2, 4  ;;  %v2875_v24 = vsel %vm271_vm2, %v605_v11, %v5206_v12  ;;  %v2902_v30 = vld [vmem:[%s5198_s0 + $0x3c] ss:$0 sm:$0xff]  ;;  %v2918_v34 = vld [vmem:[%s5198_s0 + $0xf] ss:$0 sm:$0xff] }
  0x22   :  { %v2879_v25 = vmul.f32 %v2848_v17, %v2808_v1  ;;  %v2883_v26 = vmul.f32 %v2865_v22, %v2808_v1  ;;  %v2887_v27 = vmul.f32 %v2870_v23, %v2808_v1  ;;  %v2909_v32 = vmul.f32 %v2892_v28, %v2808_v1  ;;  %v2923_v35 = vld [vmem:[%s5198_s0 + $0x28] ss:$0 sm:$0xff]  ;;  %v2928_v36 = vld [vmem:[%s5198_s0 + $0x41] ss:$0 sm:$0xff]  ;;  %v2942_v39 = vld [vmem:[%s5198_s0 + $0x19] ss:$0 sm:$0xff] }
  0x23   :  { %v2905_v31 = vsel %vm356_vm3, %v662_v15, %v663_v20  ;;  %v2913_v33 = vmul.f32 %v2897_v29, %v2808_v1  ;;  %v54_v37 = vmul.f32 %v2843_v16, %v2803_v0  ;;  %v2937_v38 = vsel %vm356_vm3, %v663_v20, %v5205_v21  ;;  %v2953_v43 = vld [vmem:[%s5198_s0 + $0x14] ss:$0 sm:$0xff]  ;;  %v2970_v48 = vld [vmem:[%s5198_s0 + $0x2d] ss:$0 sm:$0xff]  ;;  %v2975_v49 = vld [vmem:[%s5198_s0 + $0x46] ss:$0 sm:$0xff] }
  0x24   :  { %5353 = vst [vmem:[#allocation8_spill] sm:$0xff] %v2883_v26  ;;  %5354 = vst [vmem:[#allocation9_spill] sm:$0xff] %v2887_v27  ;;  %497 = vrot.lane.b32.xlu1 %v2834_v13, %s2757_s7  ;;  %v103_v40 = vrot.slane %v2879_v25, 1  ;;  %v5212_v41 = vrot.slane %v2883_v26, 1  ;;  %v2948_v42 = vmul.f32 %v2902_v30, %v2808_v1  ;;  %v5210_v44 = vrot.slane %v2887_v27, 1  ;;  %s2758_s12 = smov 126  }
  0x25   :  { %5355 = vst [vmem:[#allocation10_spill] sm:$0xff] %v2913_v33  ;;  %553 = vrot.lane.b32.xlu0 %v2837_v14, %s2757_s7  ;;  %v188_v45 = vrot.slane %v2909_v32, 2  ;;  %v2961_v46 = vmul.f32 %v2918_v34, %v2808_v1  ;;  %v2965_v47 = vmul.f32 %v2923_v35, %v2808_v1  ;;  %v2980_v50 = vld [vmem:[%s5198_s0 + $0x32] ss:$0 sm:$0xff]  ;;  %v5211_v51 = vrot.slane %v2913_v33, 2  ;;  %s2759_s13 = smov 125  }
  0x26   :  { %5356 = vst [vmem:[#allocation11_spill] sm:$0xff] %v2948_v42  ;;  %v2985_v52 = vmul.f32 %v2928_v36, %v2808_v1  ;;  %v2989_v53 = vmul.f32 %v2953_v43, %v2808_v1  ;;  %v2993_v54 = vmul.f32 %v2970_v48, %v2808_v1  ;;  %v5208_v55 = vrot.slane %v2948_v42, 2  ;;  %s2760_s14 = smov 124   ;;  %s2761_s30 = smov 96  }
  0x27   :  { %5357 = vst [vmem:[#allocation12_spill] sm:$0xff] %v2965_v47  ;;  %v273_v56 = vrot.slane %v2961_v46, 3  ;;  %v3000_v58 = vmul.f32 %v2975_v49, %v2808_v1  ;;  %v67_v62 = vmul.f32 %v2942_v39, %v2803_v0  ;;  %v80_v63 = vmul.f32 %v2980_v50, %v2803_v0  ;;  %s2762_s6 = smov 64   ;;  %s2763_s8 = smov 116  }
  0x28   :  { %5358 = vst [vmem:[#allocation13_spill] sm:$0xff] %v2985_v52  ;;  %5359 = vst [vmem:[#allocation14_spill] sm:$0xff] %v2993_v54  ;;  %555 = vrot.lane.b32.xlu1 %v2855_v18, %s2757_s7  ;;  %v93_v3 = vmul.f32 %v2848_v17, %v2803_v0  ;;  %v122_v4 = vmul.f32 %v2865_v22, %v2803_v0  ;;  %v150_v6 = vmul.f32 %v2870_v23, %v2803_v0  ;;  %vm1590_vm4 = vcmask 130048   ;;  %s1588_s22 = sld [smem:[#allocation2]] }
  0x29   :  { %5360 = vst [vmem:[#allocation15_spill] sm:$0xff] %v3000_v58  ;;  %611 = vrot.lane.b32.xlu0 %v2858_v19, %s2757_s7  ;;  %v178_v7 = vmul.f32 %v2892_v28, %v2803_v0  ;;  %v207_v9 = vmul.f32 %v2897_v29, %v2803_v0  ;;  %v235_v11 = vmul.f32 %v2902_v30, %v2803_v0  ;;  %v5384_v46 = vrot.slane %v2989_v53, 4  ;;  %s1589_s25 = sld [smem:[#allocation4]] }
  0x2a   :  { %v263_v15 = vmul.f32 %v2918_v34, %v2803_v0  ;;  %v102_v20 = vrot.slane %v93_v3, 1  ;;  %v130_v5 = vrot.slane %v122_v4, 1  ;;  %v158_v21 = vrot.slane %v150_v6, 1  ;;  %s2585_s9 = sld [smem:[#allocation4 + $0x2]] }
  0x2b   :  { %v292_v12 = vmul.f32 %v2923_v35, %v2803_v0  ;;  %v187_v8 = vrot.slane %v178_v7, 2  ;;  %v215_v61 = vrot.slane %v207_v9, 2  ;;  %v243_v60 = vrot.slane %v235_v11, 2 }
  0x2c   :  { %613 = vrot.lane.b32.xlu1 %v2875_v24, %s2757_s7  ;;  %v272_v59 = vrot.slane %v263_v15, 3  ;;  %v104_v57 = vsel %vm101_vm0, %v102_v20, %v103_v40  ;;  %v132_v3 = vsel %vm101_vm0, %v130_v5, %v5212_v41  ;;  %v160_v4 = vsel %vm101_vm0, %v158_v21, %v5210_v44  ;;  %v3234_v44 = vld [vmem:[%s5198_s0 + $0x6] ss:$0 sm:$0xff] }
  0x2d   :  { %669 = vrot.lane.b32.xlu0 %v2905_v31, %s2757_s7  ;;  %v300_v6 = vrot.slane %v292_v12, 3  ;;  %v113_v7 = vadd.f32 %v104_v57, %v54_v37  ;;  %v141_v9 = vadd.f32 %v132_v3, %v67_v62  ;;  %v169_v11 = vadd.f32 %v160_v4, %v80_v63 }
  0x2e   :  { %v189_v15 = vsel %vm186_vm1, %v187_v8, %v188_v45  ;;  %v217_v20 = vsel %vm186_vm1, %v215_v61, %v5211_v51  ;;  %v245_v5 = vsel %vm186_vm1, %v243_v60, %v5208_v55  ;;  %v274_v21 = vsel %vm271_vm2, %v272_v59, %v273_v56 }
  0x2f   :  { %v5361_v12 = vrot.slane %v2965_v47, 3  ;;  %v198_v8 = vadd.f32 %v189_v15, %v113_v7  ;;  %v226_v57 = vadd.f32 %v217_v20, %v141_v9  ;;  %v254_v62 = vadd.f32 %v245_v5, %v169_v11 }
  0x30   :  { %671 = vrot.lane.b32.xlu1 %v2937_v38, %s2757_s7  ;;  %v320_v61 = vmul.f32 %v2928_v36, %v2803_v0  ;;  %v5209_v60 = vrot.slane %v3000_v58, 4  ;;  %v348_v59 = vmul.f32 %v2953_v43, %v2803_v0  ;;  %v377_v63 = vmul.f32 %v2970_v48, %v2803_v0 }
  0x31   :  { %v302_v37 = vsel %vm271_vm2, %v300_v6, %v5361_v12  ;;  %720 = vrot.lane.b32.xlu0 %v2803_v0, %s2758_s12  ;;  %v405_v3 = vmul.f32 %v2975_v49, %v2803_v0  ;;  %v283_v4 = vadd.f32 %v274_v21, %v198_v8  ;;  %v5362_v20 = vrot.slane %v2985_v52, 3 }
  0x32   :  { %v311_v6 = vadd.f32 %v302_v37, %v226_v57  ;;  %v328_v7 = vrot.slane %v320_v61, 3  ;;  %v357_v9 = vrot.slane %v348_v59, 4  ;;  %v385_v11 = vrot.slane %v377_v63, 4 }
  0x33   :  { %v413_v15 = vrot.slane %v405_v3, 4  ;;  %v5363_v55 = vrot.slane %v2989_v53, 4  ;;  %v5364_v37 = vrot.slane %v2993_v54, 4  ;;  %v3171_v3 = vmul.f32 %v2892_v28, %v2813_v2 }
  0x34   :  { %722 = vrot.lane.b32.xlu1 %v2808_v1, %s2758_s12  ;;  %v330_v5 = vsel %vm271_vm2, %v328_v7, %v5362_v20  ;;  %v55_v7 = vmul.f32 %v2843_v16, %v2808_v1  ;;  %vm2475_vm5 = vcmask 228352   ;;  %vm2479_vm6 = vcmask 224256  }
  0x35   :  { %771 = vrot.lane.b32.xlu0 %v2825_v10, %s2758_s12  ;;  %v339_v12 = vadd.f32 %v330_v5, %v254_v62  ;;  %v359_v21 = vsel %vm356_vm3, %v357_v9, %v5363_v55  ;;  %v387_v8 = vsel %vm356_vm3, %v385_v11, %v5364_v37  ;;  %v415_v57 = vsel %vm356_vm3, %v413_v15, %v5209_v60 }
  0x36   :  { %v3086_v61 = vadd.f32 %v359_v21, %v283_v4  ;;  %v3088_v59 = vadd.f32 %v387_v8, %v311_v6  ;;  %v5215_v11 = vrot.slane %v3171_v3, 2  ;;  %v3187_v15 = vmul.f32 %v2918_v34, %v2813_v2 }
  0x37   :  { %v3090_v63 = vadd.f32 %v415_v57, %v339_v12 }
  0x38   :  { %5365 = vst [vmem:[#allocation16_spill] sm:$0xff] %v3088_v59  ;;  %773 = vrot.lane.b32.xlu1 %v2834_v13, %s2758_s12  ;;  %v5214_v25 = vrot.slane %v3187_v15, 3 }
  0x39   :  { %5366 = vst [vmem:[#allocation17_spill] sm:$0xff] %v3090_v63  ;;  %822 = vrot.lane.b32.xlu0 %v2837_v14, %s2758_s12 }
  0x3a   :  { %v276_v57 = vsel %vm271_vm2, %v273_v56, %v5214_v25  ;;  %v3253_v25 = vld [vmem:[%s5198_s0 + $0x10] ss:$0 sm:$0xff] }
  0x3c   :  { %824 = vrot.lane.b32.xlu1 %v2855_v18, %s2758_s12 }
  0x3d   :  { %873 = vrot.lane.b32.xlu0 %v2858_v19, %s2758_s12 }
  0x40   :  { %875 = vrot.lane.b32.xlu1 %v2875_v24, %s2758_s12 }
  0x41   :  { %924 = vrot.lane.b32.xlu0 %v2905_v31, %s2758_s12 }
  0x44   :  { %926 = vrot.lane.b32.xlu1 %v2937_v38, %s2758_s12 }
  0x45   :  { %975 = vrot.lane.b32.xlu0 %v2803_v0, %s2759_s13 }
  0x48   :  { %977 = vrot.lane.b32.xlu1 %v2808_v1, %s2759_s13 }
  0x49   :  { %1026 = vrot.lane.b32.xlu0 %v2825_v10, %s2759_s13 }
  0x4c   :  { %1028 = vrot.lane.b32.xlu1 %v2834_v13, %s2759_s13 }
  0x4d   :  { %1077 = vrot.lane.b32.xlu0 %v2837_v14, %s2759_s13 }
  0x50   :  { %1079 = vrot.lane.b32.xlu1 %v2855_v18, %s2759_s13 }
  0x51   :  { %1128 = vrot.lane.b32.xlu0 %v2858_v19, %s2759_s13 }
  0x54   :  { %1130 = vrot.lane.b32.xlu1 %v2875_v24, %s2759_s13 }
  0x55   :  { %1179 = vrot.lane.b32.xlu0 %v2905_v31, %s2759_s13 }
  0x58   :  { %1181 = vrot.lane.b32.xlu1 %v2937_v38, %s2759_s13 }
  0x59   :  { %1230 = vrot.lane.b32.xlu0 %v2803_v0, %s2760_s14 }
  0x5c   :  { %1232 = vrot.lane.b32.xlu1 %v2808_v1, %s2760_s14  ;;  %v191_v1 = vsel %vm186_vm1, %v188_v45, %v5215_v11 }
  0x5d   :  { %1281 = vrot.lane.b32.xlu0 %v2825_v10, %s2760_s14 }
  0x60   :  { %1283 = vrot.lane.b32.xlu1 %v2834_v13, %s2760_s14 }
  0x61   :  { %1332 = vrot.lane.b32.xlu0 %v2837_v14, %s2760_s14 }
  0x64   :  { %1334 = vrot.lane.b32.xlu1 %v2855_v18, %s2760_s14 }
  0x65   :  { %1383 = vrot.lane.b32.xlu0 %v2858_v19, %s2760_s14 }
  0x68   :  { %1385 = vrot.lane.b32.xlu1 %v2875_v24, %s2760_s14  ;;  %v3162_v24 = vmul.f32 %v2848_v17, %v2813_v2 }
  0x69   :  { %1434 = vrot.lane.b32.xlu0 %v2905_v31, %s2760_s14 }
  0x6a   :  { %v5216_v62 = vrot.slane %v3162_v24, 1 }
  0x6c   :  { %1436 = vrot.lane.b32.xlu1 %v2937_v38, %s2760_s14  ;;  %v106_v9 = vsel %vm101_vm0, %v103_v40, %v5216_v62  ;;  %v3201_v40 = vmul.f32 %v2953_v43, %v2813_v2 }
  0x6d   :  { %v114_v12 = vadd.f32 %v106_v9, %v55_v7  ;;  %v3218_v7 = vld [vmem:[%s5198_s0 + $0x1] ss:$0 sm:$0xff] }
  0x6e   :  { %v5213_v32 = vrot.slane %v3201_v40, 4 }
  0x6f   :  { %v199_v8 = vadd.f32 %v191_v1, %v114_v12 }
  0x70   :  { %v361_v56 = vsel %vm356_vm3, %v5384_v46, %v5213_v32 }
  0x71   :  { %v284_v60 = vadd.f32 %v276_v57, %v199_v8  ;;  %v3243_v57 = vld [vmem:[%s5198_s0 + $0xb] ss:$0 sm:$0xff] }
  0x73   :  { %v369_v41 = vadd.f32 %v361_v56, %v284_v60 }
  0x8f   :  { %v3146_v0 = vpop.permute.xlu0 %437 }
  0x90   :  { %5367 = vst [vmem:[#allocation18_spill] sm:$0xff] %v3146_v0  ;;  %v449_v12 = vmul.f32 %v3218_v7, %v3146_v0 }
  0x92   :  { %v3148_v10 = vpop.permute.xlu1 %495  ;;  %v453_v53 = vadd.f32 %v449_v12, %v3086_v61  ;;  %v3264_v61 = vld [vmem:[%s5198_s0 + $0x15] ss:$0 sm:$0xff] }
  0x93   :  { %5368 = vst [vmem:[#allocation19_spill] sm:$0xff] %v3148_v10  ;;  %v3150_v13 = vpop.permute.xlu0 %439  ;;  %v507_v46 = vmul.f32 %v3234_v44, %v3148_v10 }
  0x94   :  { %5369 = vst [vmem:[#allocation20_spill] sm:$0xff] %v3150_v13  ;;  %v450_v8 = vmul.f32 %v3218_v7, %v3150_v13 }
  0x95   :  { %v511_v12 = vadd.f32 %v507_v46, %v453_v53 }
  0x96   :  { %v3152_v14 = vpop.permute.xlu1 %497  ;;  %v454_v11 = vadd.f32 %v450_v8, %v369_v41  ;;  %v3275_v41 = vld [vmem:[%s5198_s0 + $0x2] ss:$0 sm:$0xff] }
  0x97   :  { %5370 = vst [vmem:[#allocation21_spill] sm:$0xff] %v3152_v14  ;;  %v3154_v18 = vpop.permute.xlu0 %553  ;;  %v508_v62 = vmul.f32 %v3234_v44, %v3152_v14 }
  0x98   :  { %5371 = vst [vmem:[#allocation22_spill] sm:$0xff] %v3154_v18  ;;  %v565_v56 = vmul.f32 %v3243_v57, %v3154_v18 }
  0x99   :  { %v512_v53 = vadd.f32 %v508_v62, %v454_v11  ;;  %v3297_v62 = vld [vmem:[%s5198_s0 + $0xc] ss:$0 sm:$0xff] }
  0x9a   :  { %v3156_v19 = vpop.permute.xlu1 %555  ;;  %v569_v42 = vadd.f32 %v565_v56, %v511_v12 }
  0x9b   :  { %5372 = vst [vmem:[#allocation23_spill] sm:$0xff] %v3156_v19  ;;  %v3158_v55 = vpop.permute.xlu0 %611  ;;  %v566_v52 = vmul.f32 %v3243_v57, %v3156_v19 }
  0x9c   :  { %5373 = vst [vmem:[#allocation24_spill] sm:$0xff] %v3158_v55  ;;  %v623_v63 = vmul.f32 %v3253_v25, %v3158_v55  ;;  %v3286_v55 = vld [vmem:[%s5198_s0 + $0x7] ss:$0 sm:$0xff] }
  0x9d   :  { %v570_v10 = vadd.f32 %v566_v52, %v512_v53  ;;  %v3308_v52 = vld [vmem:[%s5198_s0 + $0x11] ss:$0 sm:$0xff] }
  0x9e   :  { %v3164_v31 = vpop.permute.xlu1 %613  ;;  %v627_v19 = vadd.f32 %v623_v63, %v569_v42 }
  0x9f   :  { %5374 = vst [vmem:[#allocation25_spill] sm:$0xff] %v3164_v31  ;;  %v3166_v38 = vpop.permute.xlu0 %669  ;;  %v624_v46 = vmul.f32 %v3253_v25, %v3164_v31 }
  0xa0   :  { %5375 = vst [vmem:[#allocation26_spill] sm:$0xff] %v3166_v38  ;;  %v681_v27 = vmul.f32 %v3264_v61, %v3166_v38 }
  0xa1   :  { %v628_v63 = vadd.f32 %v624_v46, %v570_v10  ;;  %v3319_v10 = vld [vmem:[%s5198_s0 + $0x16] ss:$0 sm:$0xff] }
  0xa2   :  { %v3173_v4 = vpop.permute.xlu1 %671  ;;  %v685_v12 = vadd.f32 %v681_v27, %v627_v19 }
  0xa3   :  { %5376 = vst [vmem:[#allocation27_spill] sm:$0xff] %v3173_v4  ;;  %v3175_v6 = vpop.permute.xlu0 %720  ;;  %v682_v56 = vmul.f32 %v3264_v61, %v3173_v4 }
  0xa4   :  { %5377 = vst [vmem:[#allocation28_spill] sm:$0xff] %v3175_v6  ;;  %v732_v18 = vmul.f32 %v3275_v41, %v3175_v6 }
  0xa5   :  { %v686_v31 = vadd.f32 %v682_v56, %v628_v63  ;;  %v3330_v56 = vld [vmem:[%s5198_s0 + $0x3] ss:$0 sm:$0xff] }
  0xa6   :  { %v3189_v20 = vpop.permute.xlu1 %722  ;;  %v736_v53 = vadd.f32 %v732_v18, %v685_v12 }
  0xa7   :  { %5378 = vst [vmem:[#allocation29_spill] sm:$0xff] %v3189_v20  ;;  %v3191_v5 = vpop.permute.xlu0 %771  ;;  %v733_v6 = vmul.f32 %v3275_v41, %v3189_v20 }
  0xa8   :  { %5379 = vst [vmem:[#allocation30_spill] sm:$0xff] %v3191_v5  ;;  %v783_v42 = vmul.f32 %v3286_v55, %v3191_v5 }
  0xa9   :  { %v737_v12 = vadd.f32 %v733_v6, %v686_v31  ;;  %v3341_v31 = vld [vmem:[%s5198_s0 + $0x8] ss:$0 sm:$0xff] }
  0xaa   :  { %v3203_v21 = vpop.permute.xlu1 %773  ;;  %v787_v46 = vadd.f32 %v783_v42, %v736_v53 }
  0xab   :  { %5380 = vst [vmem:[#allocation31_spill] sm:$0xff] %v3203_v21  ;;  %v3205_v37 = vpop.permute.xlu0 %822  ;;  %v784_v27 = vmul.f32 %v3286_v55, %v3203_v21 }
  0xac   :  { %5381 = vst [vmem:[#allocation32_spill] sm:$0xff] %v3205_v37  ;;  %v834_v4 = vmul.f32 %v3297_v62, %v3205_v37 }
  0xad   :  { %v788_v20 = vadd.f32 %v784_v27, %v737_v12  ;;  %v3352_v27 = vld [vmem:[%s5198_s0 + $0xd] ss:$0 sm:$0xff] }
  0xae   :  { %v3213_v45 = vpop.permute.xlu1 %824  ;;  %v838_v63 = vadd.f32 %v834_v4, %v787_v46  ;;  %5397 = vst [vmem:[#allocation47_spill] sm:$0xff] %v3352_v27 }
  0xaf   :  { %5382 = vst [vmem:[#allocation33_spill] sm:$0xff] %v3213_v45  ;;  %v3220_v9 = vpop.permute.xlu0 %873  ;;  %v835_v37 = vmul.f32 %v3297_v62, %v3213_v45 }
  0xb0   :  { %5383 = vst [vmem:[#allocation34_spill] sm:$0xff] %v3220_v9  ;;  %v885_v18 = vmul.f32 %v3308_v52, %v3220_v9 }
  0xb1   :  { %v839_v46 = vadd.f32 %v835_v37, %v788_v20  ;;  %v3363_v20 = vld [vmem:[%s5198_s0 + $0x12] ss:$0 sm:$0xff] }
  0xb2   :  { %v3229_v1 = vpop.permute.xlu1 %875  ;;  %v889_v53 = vadd.f32 %v885_v18, %v838_v63  ;;  %5399 = vst [vmem:[#allocation49_spill] sm:$0xff] %v3363_v20 }
  0xb3   :  { %5385 = vst [vmem:[#allocation35_spill] sm:$0xff] %v3229_v1  ;;  %v3236_v51 = vpop.permute.xlu0 %924  ;;  %v886_v42 = vmul.f32 %v3308_v52, %v3229_v1 }
  0xb4   :  { %5386 = vst [vmem:[#allocation36_spill] sm:$0xff] %v3236_v51  ;;  %v936_v21 = vmul.f32 %v3319_v10, %v3236_v51 }
  0xb5   :  { %v890_v9 = vadd.f32 %v886_v42, %v839_v46  ;;  %v3374_v42 = vld [vmem:[%s5198_s0 + $0x17] ss:$0 sm:$0xff] }
  0xb6   :  { %v3248_v32 = vpop.permute.xlu1 %926  ;;  %v940_v12 = vadd.f32 %v936_v21, %v889_v53  ;;  %5401 = vst [vmem:[#allocation51_spill] sm:$0xff] %v3374_v42 }
  0xb7   :  { %5387 = vst [vmem:[#allocation37_spill] sm:$0xff] %v3248_v32  ;;  %v3255_v60 = vpop.permute.xlu0 %975  ;;  %v937_v51 = vmul.f32 %v3319_v10, %v3248_v32 }
  0xb8   :  { %5388 = vst [vmem:[#allocation38_spill] sm:$0xff] %v3255_v60  ;;  %v987_v4 = vmul.f32 %v3330_v56, %v3255_v60 }
  0xb9   :  { %v941_v53 = vadd.f32 %v937_v51, %v890_v9  ;;  %v3385_v51 = vld [vmem:[%s5198_s0 + $0x4] ss:$0 sm:$0xff] }
  0xba   :  { %v3268_v58 = vpop.permute.xlu1 %977  ;;  %v991_v63 = vadd.f32 %v987_v4, %v940_v12  ;;  %5403 = vst [vmem:[#allocation53_spill] sm:$0xff] %v3385_v51 }
  0xbb   :  { %5389 = vst [vmem:[#allocation39_spill] sm:$0xff] %v3268_v58  ;;  %v3277_v8 = vpop.permute.xlu0 %1026  ;;  %v988_v18 = vmul.f32 %v3330_v56, %v3268_v58 }
  0xbc   :  { %5390 = vst [vmem:[#allocation40_spill] sm:$0xff] %v3277_v8  ;;  %v1038_v1 = vmul.f32 %v3341_v31, %v3277_v8 }
  0xbd   :  { %v992_v60 = vadd.f32 %v988_v18, %v941_v53  ;;  %v3396_v18 = vld [vmem:[%s5198_s0 + $0x9] ss:$0 sm:$0xff] }
  0xbe   :  { %v3290_v14 = vpop.permute.xlu1 %1028  ;;  %v1042_v46 = vadd.f32 %v1038_v1, %v991_v63  ;;  %5405 = vst [vmem:[#allocation55_spill] sm:$0xff] %v3396_v18 }
  0xbf   :  { %5391 = vst [vmem:[#allocation41_spill] sm:$0xff] %v3290_v14  ;;  %v3299_v11 = vpop.permute.xlu0 %1077  ;;  %v1039_v8 = vmul.f32 %v3341_v31, %v3290_v14 }
  0xc0   :  { %5392 = vst [vmem:[#allocation42_spill] sm:$0xff] %v3299_v11  ;;  %v1089_v21 = vmul.f32 %v3352_v27, %v3299_v11 }
  0xc1   :  { %v1043_v63 = vadd.f32 %v1039_v8, %v992_v60  ;;  %v3407_v60 = vld [vmem:[%s5198_s0 + $0xe] ss:$0 sm:$0xff] }
  0xc2   :  { %v3312_v38 = vpop.permute.xlu1 %1079  ;;  %v1093_v12 = vadd.f32 %v1089_v21, %v1042_v46  ;;  %5407 = vst [vmem:[#allocation57_spill] sm:$0xff] %v3407_v60 }
  0xc3   :  { %5393 = vst [vmem:[#allocation43_spill] sm:$0xff] %v3312_v38  ;;  %v3321_v19 = vpop.permute.xlu0 %1128  ;;  %v1090_v4 = vmul.f32 %v3352_v27, %v3312_v38 }
  0xc4   :  { %5394 = vst [vmem:[#allocation44_spill] sm:$0xff] %v3321_v19  ;;  %v1140_v58 = vmul.f32 %v3363_v20, %v3321_v19 }
  0xc5   :  { %v1094_v11 = vadd.f32 %v1090_v4, %v1043_v63  ;;  %v3418_v4 = vld [vmem:[%s5198_s0 + $0x13] ss:$0 sm:$0xff] }
  0xc6   :  { %v3334_v5 = vpop.permute.xlu1 %1130  ;;  %v1144_v53 = vadd.f32 %v1140_v58, %v1093_v12  ;;  %5409 = vst [vmem:[#allocation59_spill] sm:$0xff] %v3418_v4 }
  0xc7   :  { %5395 = vst [vmem:[#allocation45_spill] sm:$0xff] %v3334_v5  ;;  %v3343_v6 = vpop.permute.xlu0 %1179  ;;  %v1141_v19 = vmul.f32 %v3363_v20, %v3334_v5 }
  0xc8   :  { %5396 = vst [vmem:[#allocation46_spill] sm:$0xff] %v3343_v6  ;;  %v1191_v1 = vmul.f32 %v3374_v42, %v3343_v6 }
  0xc9   :  { %v1145_v12 = vadd.f32 %v1141_v19, %v1094_v11 }
  0xca   :  { %v3356_v45 = vpop.permute.xlu1 %1181  ;;  %v1195_v46 = vadd.f32 %v1191_v1, %v1144_v53 }
  0xcb   :  { %5398 = vst [vmem:[#allocation48_spill] sm:$0xff] %v3356_v45  ;;  %v3365_v37 = vpop.permute.xlu0 %1230  ;;  %v1192_v21 = vmul.f32 %v3374_v42, %v3356_v45 }
  0xcc   :  { %5400 = vst [vmem:[#allocation50_spill] sm:$0xff] %v3365_v37  ;;  %v1242_v38 = vmul.f32 %v3385_v51, %v3365_v37 }
  0xcd   :  { %v1196_v6 = vadd.f32 %v1192_v21, %v1145_v12 }
  0xce   :  { %v3378_v32 = vpop.permute.xlu1 %1232  ;;  %v1246_v63 = vadd.f32 %v1242_v38, %v1195_v46  ;;  %v3435_v38 = vld [vmem:[%s5198_s0 + $0x18] ss:$0 sm:$0xff] }
  0xcf   :  { %5402 = vst [vmem:[#allocation52_spill] sm:$0xff] %v3378_v32  ;;  %v3387_v9 = vpop.permute.xlu0 %1281  ;;  %v1243_v37 = vmul.f32 %v3385_v51, %v3378_v32  ;;  %5412 = vst [vmem:[#allocation62_spill] sm:$0xff] %v3435_v38 }
  0xd0   :  { %5404 = vst [vmem:[#allocation54_spill] sm:$0xff] %v3387_v9  ;;  %v1293_v58 = vmul.f32 %v3396_v18, %v3387_v9 }
  0xd1   :  { %v1247_v32 = vadd.f32 %v1243_v37, %v1196_v6 }
  0xd2   :  { %v3400_v14 = vpop.permute.xlu1 %1283  ;;  %v1297_v11 = vadd.f32 %v1293_v58, %v1246_v63 }
  0xd3   :  { %5406 = vst [vmem:[#allocation56_spill] sm:$0xff] %v3400_v14  ;;  %v3409_v8 = vpop.permute.xlu0 %1332  ;;  %v1294_v1 = vmul.f32 %v3396_v18, %v3400_v14 }
  0xd4   :  { %5408 = vst [vmem:[#allocation58_spill] sm:$0xff] %v3409_v8  ;;  %v1344_v45 = vmul.f32 %v3407_v60, %v3409_v8 }
  0xd5   :  { %v1298_v12 = vadd.f32 %v1294_v1, %v1247_v32 }
  0xd6   :  { %v3422_v5 = vpop.permute.xlu1 %1334  ;;  %v1348_v46 = vadd.f32 %v1344_v45, %v1297_v11 }
  0xd7   :  { %5410 = vst [vmem:[#allocation60_spill] sm:$0xff] %v3422_v5  ;;  %v3426_v53 = vpop.permute.xlu0 %1383  ;;  %v1345_v9 = vmul.f32 %v3407_v60, %v3422_v5 }
  0xd8   :  { %5411 = vst [vmem:[#allocation61_spill] sm:$0xff] %v3426_v53  ;;  %v1395_v19 = vmul.f32 %v3418_v4, %v3426_v53 }
  0xd9   :  { %v1349_v63 = vadd.f32 %v1345_v9, %v1298_v12 }
  0xda   :  { %v3437_v21 = vpop.permute.xlu1 %1385  ;;  %v1399_v37 = vadd.f32 %v1395_v19, %v1348_v46 }
  0xdb   :  { %5413 = vst [vmem:[#allocation63_spill] sm:$0xff] %v3437_v21  ;;  %v1396_v14 = vmul.f32 %v3418_v4, %v3437_v21  ;;  %v3441_v58 = vpop.permute.xlu0 %1434 }
  0xdc   :  { %5414 = vst [vmem:[#allocation64_spill] sm:$0xff] %v3441_v58  ;;  %v1446_v6 = vmul.f32 %v3435_v38, %v3441_v58 }
  0xdd   :  { %v1400_v45 = vadd.f32 %v1396_v14, %v1349_v63  ;;  %v3468_v63 = vld [vmem:[%s5201_s3 + $0x18] sm:$0xff] }
  0xde   :  { %v3445_v5 = vpop.permute.xlu1 %1436  ;;  %v1450_v53 = vadd.f32 %v1446_v6, %v1399_v37  ;;  %v3557_v21 = vmul.f32 %v2918_v34, %v3468_v63  ;;  %v5422_v34 = vrot.slane %v3187_v15, 3  ;;  %v323_v33 = vmul.f32 %v2928_v36, %v3468_v63 }
  0xdf   :  { %5415 = vst [vmem:[#allocation65_spill] sm:$0xff] %v3445_v5  ;;  %v1447_v8 = vmul.f32 %v3435_v38, %v3445_v5 }
  0xe0   :  { %1484 = vrot.lane.b32.xlu0 %v1450_v53, %s2761_s30  ;;  %v333_v60 = vrot.slane %v323_v33, 3 }
  0xe1   :  { %v1451_v32 = vadd.f32 %v1447_v8, %v1400_v45  ;;  %v3471_v45 = vrot.slane %v3468_v63, 2 }
  0xe3   :  { %1486 = vrot.lane.b32.xlu1 %v1451_v32, %s2761_s30 }
  0xe4   :  { %1500 = vrot.lane.b32.xlu0 %v1450_v53, %s2762_s6 }
  0xe7   :  { %1502 = vrot.lane.b32.xlu1 %v1451_v32, %s2762_s6 }
 0x152   :  { %v1485_v1 = vpop.permute.xlu0 %1484 }
 0x153   :  { %v1496_v9 = vadd.f32 %v1485_v1, %v1450_v53 }
 0x155   :  { %v1487_v11 = vpop.permute.xlu1 %1486 }
 0x156   :  { %v1501_v19 = vpop.permute.xlu0 %1500  ;;  %v1497_v12 = vadd.f32 %v1487_v11, %v1451_v32  ;;  %v5416_v32 = vrot.slane %v2813_v2, 2  ;;  %v5417_v11 = vrot.slane %v2813_v2, 3 }
 0x157   :  { %v3453_v46 = vadd.f32 %v1501_v19, %v1496_v9  ;;  %v3482_v9 = vrot.slane %v3468_v63, 3 }
 0x158   :  { %v3479_v1 = vsel %vm186_vm1, %v5416_v32, %v3471_v45 }
 0x159   :  { %v1503_v6 = vpop.permute.xlu1 %1502  ;;  %1656 = vrot.lane.b32.xlu1 %v3453_v46, %s2763_s8  ;;  %v1591_v8 = vsel %vm1590_vm4, %v3453_v46, 0.0  ;;  %v3490_v19 = vsel %vm271_vm2, %v5417_v11, %v3482_v9  ;;  %v3546_v11 = vmul.f32 %v2848_v17, %v3468_v63  ;;  %v5420_v17 = vrot.slane %v3162_v24, 1 }
 0x15a   :  { %v3457_v14 = vadd.f32 %v1503_v6, %v1497_v12  ;;  %v3493_v12 = vrot.slane %v3468_v63, 4  ;;  %v5418_v6 = vrot.slane %v2813_v2, 4  ;;  %v3578_v24 = vmul.f32 %v2953_v43, %v3468_v63 }
 0x15b   :  { %v5306_v5 = vrot.slane %v3546_v11, 1 }
 0x15c   :  { %v1592_v37 = vsel %vm1590_vm4, %v3457_v14, 0.0 }
 0x15d   :  { %1658 = vrot.lane.b32.xlu1 %v3457_v14, %s2763_s8  ;;  %v1593_v53 = vadd.f32 %v1592_v37, %v1591_v8  ;;  %v3501_v8 = vsel %vm356_vm3, %v5418_v6, %v3493_v12  ;;  %v3506_v37 = vrot.slane %v3468_v63, 1  ;;  %v56_v6 = vmul.f32 %v2843_v16, %v2813_v2 }
 0x15e   :  { %v108_v59 = vsel %vm101_vm0, %v5420_v17, %v5306_v5  ;;  %v5303_v16 = vrot.slane %v3557_v21, 3 }
 0x15f   :  { %1594 = vadd.xlane.f32.xlu0 %v1593_v53  ;;  %v5419_v53 = vrot.slane %v2813_v2, 1  ;;  %v115_v13 = vadd.f32 %v108_v59, %v56_v6  ;;  %v5304_v59 = vrot.slane %v3578_v24, 4 }
 0x160   :  { %v278_v47 = vsel %vm271_vm2, %v5422_v34, %v5303_v16 }
 0x161   :  { %443 = vrot.lane.b32.xlu1 %v3468_v63, %s2757_s7  ;;  %v3514_v32 = vsel %vm101_vm0, %v5419_v53, %v3506_v37  ;;  %v3552_v53 = vmul.f32 %v2892_v28, %v3468_v63  ;;  %v5421_v28 = vrot.slane %v3171_v3, 2  ;;  %v5423_v3 = vrot.slane %v3201_v40, 4 }
 0x162   :  { %v3598_v40 = vmul.f32 %v2865_v22, %v2813_v2 }
 0x163   :  { %v5305_v58 = vrot.slane %v3552_v53, 2  ;;  %v363_v6 = vsel %vm356_vm3, %v5423_v3, %v5304_v59  ;;  %v210_v3 = vmul.f32 %v2897_v29, %v3468_v63 }
 0x164   :  { %5425 = vst [vmem:[#allocation67_spill] sm:$0xff] %v3598_v40 }
 0x165   :  { %557 = vrot.lane.b32.xlu1 %v3479_v1, %s2757_s7  ;;  %v193_v0 = vsel %vm186_vm1, %v5421_v28, %v5305_v58  ;;  %v220_v59 = vrot.slane %v210_v3, 2  ;;  %v3637_v3 = vmul.f32 %v2923_v35, %v2813_v2 }
 0x166   :  { %v200_v54 = vadd.f32 %v193_v0, %v115_v13 }
 0x167   :  { %5430 = vst [vmem:[#allocation72_spill] sm:$0xff] %v3637_v3 }
 0x168   :  { %v285_v17 = vadd.f32 %v278_v47, %v200_v54  ;;  %v125_v47 = vmul.f32 %v2865_v22, %v3468_v63  ;;  %v153_v54 = vmul.f32 %v2870_v23, %v3468_v63  ;;  %v5309_v22 = vrot.slane %v3598_v40, 1 }
 0x169   :  { %615 = vrot.lane.b32.xlu1 %v3490_v19, %s2757_s7 }
 0x16a   :  { %v3586_v0 = vadd.f32 %v363_v6, %v285_v17  ;;  %v3602_v17 = vmul.f32 %v2870_v23, %v2813_v2  ;;  %v163_v6 = vrot.slane %v153_v54, 1  ;;  %v3618_v23 = vmul.f32 %v2902_v30, %v2813_v2 }
 0x16b   :  { %v82_v54 = vmul.f32 %v2980_v50, %v2813_v2 }
 0x16c   :  { %5424 = vst [vmem:[#allocation66_spill] sm:$0xff] %v3586_v0  ;;  %5426 = vst [vmem:[#allocation68_spill] sm:$0xff] %v3602_v17  ;;  %v3641_v0 = vmul.f32 %v2928_v36, %v2813_v2 }
 0x16d   :  { %673 = vrot.lane.b32.xlu1 %v3501_v8, %s2757_s7  ;;  %5429 = vst [vmem:[#allocation71_spill] sm:$0xff] %v3618_v23 }
 0x16e   :  { %5431 = vst [vmem:[#allocation73_spill] sm:$0xff] %v3641_v0 }
 0x171   :  { %724 = vrot.lane.b32.xlu1 %v2813_v2, %s2758_s12 }
 0x175   :  { %441 = vrot.lane.b32.xlu0 %v2813_v2, %s2757_s7  ;;  %775 = vrot.lane.b32.xlu1 %v3514_v32, %s2758_s12 }
 0x179   :  { %499 = vrot.lane.b32.xlu0 %v3514_v32, %s2757_s7  ;;  %826 = vrot.lane.b32.xlu1 %v3479_v1, %s2758_s12 }
 0x17d   :  { %501 = vrot.lane.b32.xlu0 %v3506_v37, %s2757_s7  ;;  %877 = vrot.lane.b32.xlu1 %v3490_v19, %s2758_s12 }
 0x181   :  { %559 = vrot.lane.b32.xlu0 %v3471_v45, %s2757_s7  ;;  %928 = vrot.lane.b32.xlu1 %v3501_v8, %s2758_s12 }
 0x185   :  { %617 = vrot.lane.b32.xlu0 %v3482_v9, %s2757_s7 }
 0x189   :  { %675 = vrot.lane.b32.xlu0 %v3493_v12, %s2757_s7 }
 0x18d   :  { %726 = vrot.lane.b32.xlu0 %v3468_v63, %s2758_s12 }
 0x191   :  { %777 = vrot.lane.b32.xlu0 %v3506_v37, %s2758_s12 }
 0x195   :  { %828 = vrot.lane.b32.xlu0 %v3471_v45, %s2758_s12 }
 0x199   :  { %879 = vrot.lane.b32.xlu0 %v3482_v9, %s2758_s12 }
 0x1cb   :  { %v1657_v13 = vpop.permute.xlu1 %1656 }
 0x1cc   :  { %v1662_v15 = vsel %vm1590_vm4, %v1657_v13, 0.0  ;;  %v238_v13 = vmul.f32 %v2902_v30, %v3468_v63 }
 0x1ce   :  { %v248_v30 = vrot.slane %v238_v13, 2  ;;  %v83_v13 = vmul.f32 %v2980_v50, %v3468_v63  ;;  %v408_v50 = vmul.f32 %v2975_v49, %v3468_v63 }
 0x1cf   :  { %v1659_v28 = vpop.permute.xlu1 %1658 }
 0x1d0   :  { %v1663_v34 = vsel %vm1590_vm4, %v1659_v28, 0.0  ;;  %v3610_v28 = vmul.f32 %v2897_v29, %v2813_v2  ;;  %v295_v29 = vmul.f32 %v2923_v35, %v3468_v63  ;;  %v172_v33 = vadd.f32 %v163_v6, %v83_v13 }
 0x1d1   :  { %v1664_v16 = vadd.f32 %v1663_v34, %v1662_v15  ;;  %v5311_v34 = vrot.slane %v3602_v17, 1  ;;  %v70_v17 = vmul.f32 %v2942_v39, %v3468_v63  ;;  %v418_v51 = vrot.slane %v408_v50, 4 }
 0x1d2   :  { %5427 = vst [vmem:[#allocation69_spill] sm:$0xff] %v3610_v28  ;;  %v5317_v26 = vrot.slane %v3610_v28, 2  ;;  %v305_v35 = vrot.slane %v295_v29, 3 }
 0x1d3   :  { %1665 = vadd.xlane.f32.xlu0 %v1664_v16  ;;  %v3590_v43 = vpop.permute.xlu1 %443  ;;  %v135_v16 = vrot.slane %v125_v47, 1  ;;  %v69_v47 = vmul.f32 %v2942_v39, %v2813_v2  ;;  %v164_v5 = vsel %vm101_vm0, %v5311_v34, %v163_v6  ;;  %v380_v39 = vmul.f32 %v2970_v48, %v3468_v63 }
 0x1d4   :  { %v171_v40 = vadd.f32 %v164_v5, %v82_v54  ;;  %v221_v38 = vsel %vm186_vm1, %v5317_v26, %v220_v59  ;;  %v5326_v5 = vrot.slane %v3637_v3, 3  ;;  %v3668_v54 = vmul.f32 %v2975_v49, %v2813_v2 }
 0x1d5   :  { %v136_v58 = vsel %vm101_vm0, %v5309_v22, %v135_v16  ;;  %v5316_v22 = vrot.slane %v3618_v23, 2  ;;  %v144_v29 = vadd.f32 %v135_v16, %v70_v17  ;;  %v390_v18 = vrot.slane %v380_v39, 4 }
 0x1d6   :  { %v143_v34 = vadd.f32 %v136_v58, %v69_v47  ;;  %v5324_v58 = vrot.slane %v3641_v0, 3  ;;  %v3664_v47 = vmul.f32 %v2970_v48, %v2813_v2  ;;  %5434 = vst [vmem:[#allocation76_spill] sm:$0xff] %v3668_v54  ;;  %v306_v23 = vsel %vm271_vm2, %v5326_v5, %v305_v35 }
 0x1d7   :  { %v3612_v15 = vpop.permute.xlu1 %557  ;;  %v249_v36 = vsel %vm186_vm1, %v5316_v22, %v248_v30  ;;  %v5323_v2 = vrot.slane %v3668_v54, 4  ;;  %v229_v49 = vadd.f32 %v220_v59, %v144_v29  ;;  %v257_v17 = vadd.f32 %v248_v30, %v172_v33 }
 0x1d8   :  { %5428 = vst [vmem:[#allocation70_spill] sm:$0xff] %v3612_v15  ;;  %5433 = vst [vmem:[#allocation75_spill] sm:$0xff] %v3664_v47  ;;  %v228_v22 = vadd.f32 %v221_v38, %v143_v34  ;;  %v256_v26 = vadd.f32 %v249_v36, %v171_v40  ;;  %v334_v28 = vsel %vm271_vm2, %v5324_v58, %v333_v60  ;;  %v5325_v42 = vrot.slane %v3664_v47, 4  ;;  %v2524_v47 = vld [vmem:[%s5198_s0 + $0x47] ss:$0 sm:$0xff] }
 0x1d9   :  { %v419_v34 = vsel %vm356_vm3, %v5323_v2, %v418_v51  ;;  %v314_v36 = vadd.f32 %v305_v35, %v229_v49  ;;  %v342_v39 = vadd.f32 %v333_v60, %v257_v17 }
 0x1da   :  { %v313_v38 = vadd.f32 %v306_v23, %v228_v22  ;;  %v341_v40 = vadd.f32 %v334_v28, %v256_v26  ;;  %v391_v6 = vsel %vm356_vm3, %v5325_v42, %v390_v18  ;;  %v3693_v26 = vld [vmem:[%s5198_s0 + $0x1a] ss:$0 sm:$0xff]  ;;  %v2512_v28 = vld [vmem:[%s5198_s0 + $0x33] ss:$0 sm:$0xff] }
 0x1db   :  { %v3651_v4 = vpop.permute.xlu1 %615  ;;  %5437 = vst [vmem:[#allocation79_spill] sm:$0xff] %v3693_v26  ;;  %v399_v33 = vadd.f32 %v390_v18, %v314_v36  ;;  %v427_v49 = vadd.f32 %v418_v51, %v342_v39  ;;  %v465_v17 = vmul.f32 %v3693_v26, %v3590_v43  ;;  %v3721_v51 = vld [vmem:[%s5198_s0 + $0x24] ss:$0 sm:$0xff]  ;;  %v2518_v18 = vld [vmem:[%s5198_s0 + $0x3d] ss:$0 sm:$0xff] }
 0x1dc   :  { %5432 = vst [vmem:[#allocation74_spill] sm:$0xff] %v3651_v4  ;;  %v398_v59 = vadd.f32 %v391_v6, %v313_v38  ;;  %v426_v30 = vadd.f32 %v419_v34, %v341_v40  ;;  %v478_v6 = vmul.f32 %v2512_v28, %v3590_v43  ;;  %v3711_v34 = vld [vmem:[%s5198_s0 + $0x1f] ss:$0 sm:$0xff]  ;;  %5441 = vst [vmem:[#allocation83_spill] sm:$0xff] %v3721_v51 }
 0x1dd   :  { %5439 = vst [vmem:[#allocation81_spill] sm:$0xff] %v3711_v34 }
 0x1de   :  { %v482_v54 = vadd.f32 %v478_v6, %v427_v49 }
 0x1df   :  { %v3676_v48 = vpop.permute.xlu1 %673 }
 0x1e0   :  { %5435 = vst [vmem:[#allocation77_spill] sm:$0xff] %v3676_v48 }
 0x1e3   :  { %v3688_v22 = vpop.permute.xlu1 %724 }
 0x1e4   :  { %5436 = vst [vmem:[#allocation78_spill] sm:$0xff] %v3688_v22 }
 0x1e8   :  { %v1595_v16 = vpop.xlane.xlu0 %1594 }
 0x1e9   :  { %v1596_v13 = vrot.slane %v1595_v16, 4  ;;  %930 = vrot.lane.b32.xlu0 %v3493_v12, %s2758_s12 }
 0x1eb   :  { %v1597_v50 = vadd.f32 %v1596_v13, %v1595_v16  ;;  %v2515_v13 = vld [vmem:[%s5198_s0 + $0x38] ss:$0 sm:$0xff] }
 0x1ec   :  { %v3698_v23 = vpop.permute.xlu0 %441 }
 0x1ed   :  { %5438 = vst [vmem:[#allocation80_spill] sm:$0xff] %v3698_v23  ;;  %981 = vrot.lane.b32.xlu0 %v3468_v63, %s2759_s13  ;;  %v1598_v60 = vrot.slane %v1597_v50, 2  ;;  %v464_v35 = vmul.f32 %v3693_v26, %v3698_v23  ;;  %v477_v29 = vmul.f32 %v2512_v28, %v3698_v23  ;;  %v580_v28 = vmul.f32 %v3721_v51, %v3612_v15  ;;  %v3752_v26 = vld [vmem:[%s5198_s0 + $0x2e] ss:$0 sm:$0xff] }
 0x1ee   :  { %v696_v6 = vmul.f32 %v3752_v26, %v3676_v48 }
 0x1ef   :  { %v1599_v38 = vadd.f32 %v1598_v60, %v1597_v50  ;;  %v468_v40 = vadd.f32 %v464_v35, %v398_v59  ;;  %v481_v16 = vadd.f32 %v477_v29, %v426_v30  ;;  %v3731_v59 = vpop.permute.xlu1 %775  ;;  %v469_v30 = vadd.f32 %v465_v17, %v399_v33  ;;  %v3739_v35 = vld [vmem:[%s5198_s0 + $0x29] ss:$0 sm:$0xff]  ;;  %v2521_v29 = vld [vmem:[%s5198_s0 + $0x42] ss:$0 sm:$0xff] }
 0x1f0   :  { %v3716_v2 = vpop.permute.xlu0 %499  ;;  %5442 = vst [vmem:[#allocation84_spill] sm:$0xff] %v3731_v59  ;;  %v593_v60 = vmul.f32 %v2518_v18, %v3612_v15  ;;  %5443 = vst [vmem:[#allocation85_spill] sm:$0xff] %v3739_v35  ;;  %v638_v33 = vmul.f32 %v3739_v35, %v3651_v4  ;;  %v651_v17 = vmul.f32 %v2521_v29, %v3651_v4 }
 0x1f1   :  { %5440 = vst [vmem:[#allocation82_spill] sm:$0xff] %v3716_v2  ;;  %v1600_v36 = vrot.slane %v1599_v38, 1  ;;  %1032 = vrot.lane.b32.xlu0 %v3506_v37, %s2759_s13  ;;  %v522_v39 = vmul.f32 %v3711_v34, %v3716_v2  ;;  %v535_v50 = vmul.f32 %v2515_v13, %v3716_v2 }
 0x1f3   :  { %v1601_v58 = vadd.f32 %v1600_v36, %v1599_v38  ;;  %v526_v42 = vadd.f32 %v522_v39, %v468_v40  ;;  %v539_v5 = vadd.f32 %v535_v50, %v481_v16  ;;  %v709_v36 = vmul.f32 %v2524_v47, %v3676_v48  ;;  %v3768_v39 = vld [vmem:[%s5198_s0 + $0x1b] ss:$0 sm:$0xff]  ;;  %v3773_v3 = vpop.permute.xlu1 %826  ;;  %v3783_v48 = vld [vmem:[%s5198_s0 + $0x20] ss:$0 sm:$0xff] }
 0x1f4   :  { %v3744_v0 = vpop.permute.xlu0 %501  ;;  %5444 = vst [vmem:[#allocation86_spill] sm:$0xff] %v3773_v3 }
 0x1f5   :  { %2586 = vpush %v1601_v58  ;;  %1083 = vrot.lane.b32.xlu0 %v3471_v45, %s2759_s13  ;;  %v523_v49 = vmul.f32 %v3711_v34, %v3744_v0  ;;  %v536_v38 = vmul.f32 %v2515_v13, %v3744_v0  ;;  %v584_v40 = vadd.f32 %v580_v28, %v526_v42  ;;  %v2527_v58 = vld [vmem:[%s5198_s0 + $0x34] ss:$0 sm:$0xff] }
 0x1f6   :  { %v597_v16 = vadd.f32 %v593_v60, %v539_v5  ;;  %v747_v28 = vmul.f32 %v3768_v39, %v3688_v22  ;;  %v760_v60 = vmul.f32 %v2527_v58, %v3688_v22  ;;  %v2533_v22 = vld [vmem:[%s5198_s0 + $0x3e] ss:$0 sm:$0xff] }
 0x1f7   :  { %v527_v50 = vadd.f32 %v523_v49, %v469_v30  ;;  %v540_v34 = vadd.f32 %v536_v38, %v482_v54  ;;  %v642_v5 = vadd.f32 %v638_v33, %v584_v40  ;;  %v2530_v54 = vld [vmem:[%s5198_s0 + $0x39] ss:$0 sm:$0xff]  ;;  %v798_v38 = vmul.f32 %v3783_v48, %v3731_v59 }
 0x1f8   :  { %v3775_v42 = vpop.permute.xlu0 %559  ;;  %v655_v13 = vadd.f32 %v651_v17, %v597_v16  ;;  %v811_v40 = vmul.f32 %v2530_v54, %v3731_v59  ;;  %v3799_v16 = vld [vmem:[%s5198_s0 + $0x25] ss:$0 sm:$0xff]  ;;  %v3817_v59 = vld [vmem:[%s5198_s0 + $0x43] ss:$0 sm:$0xff] }
 0x1f9   :  { %1134 = vrot.lane.b32.xlu0 %v3482_v9, %s2759_s13  ;;  %v581_v30 = vmul.f32 %v3721_v51, %v3775_v42  ;;  %v594_v33 = vmul.f32 %v2518_v18, %v3775_v42  ;;  %v700_v17 = vadd.f32 %v696_v6, %v642_v5  ;;  %v862_v5 = vmul.f32 %v2533_v22, %v3773_v3 }
 0x1fa   :  { %v713_v49 = vadd.f32 %v709_v36, %v655_v13  ;;  %v849_v36 = vmul.f32 %v3799_v16, %v3773_v3  ;;  %v3812_v13 = vld [vmem:[%s5198_s0 + $0x2a] ss:$0 sm:$0xff] }
 0x1fb   :  { %v585_v4 = vadd.f32 %v581_v30, %v527_v50  ;;  %v598_v51 = vadd.f32 %v594_v33, %v540_v34  ;;  %v751_v18 = vadd.f32 %v747_v28, %v700_v17  ;;  %v3824_v28 = vpop.permute.xlu1 %877 }
 0x1fc   :  { %v3804_v15 = vpop.permute.xlu0 %617  ;;  %v764_v6 = vadd.f32 %v760_v60, %v713_v49  ;;  %v900_v33 = vmul.f32 %v3812_v13, %v3824_v28  ;;  %v913_v17 = vmul.f32 %v3817_v59, %v3824_v28 }
 0x1fd   :  { %1185 = vrot.lane.b32.xlu0 %v3493_v12, %s2759_s13  ;;  %v639_v34 = vmul.f32 %v3739_v35, %v3804_v15  ;;  %v652_v50 = vmul.f32 %v2521_v29, %v3804_v15  ;;  %v802_v60 = vadd.f32 %v798_v38, %v751_v18 }
 0x1fe   :  { %v815_v30 = vadd.f32 %v811_v40, %v764_v6 }
 0x1ff   :  { %v643_v49 = vadd.f32 %v639_v34, %v585_v4  ;;  %v656_v3 = vadd.f32 %v652_v50, %v598_v51  ;;  %v853_v23 = vadd.f32 %v849_v36, %v802_v60 }
 0x200   :  { %v676_v2 = vpop.permute.xlu0 %675  ;;  %v866_v20 = vadd.f32 %v862_v5, %v815_v30 }
 0x201   :  { %1236 = vrot.lane.b32.xlu0 %v3468_v63, %s2760_s14  ;;  %v697_v29 = vmul.f32 %v3752_v26, %v676_v2  ;;  %v710_v35 = vmul.f32 %v2524_v47, %v676_v2  ;;  %v3833_v27 = vadd.f32 %v900_v33, %v853_v23 }
 0x202   :  { %v3835_v38 = vadd.f32 %v913_v17, %v866_v20 }
 0x203   :  { %v701_v40 = vadd.f32 %v697_v29, %v643_v49  ;;  %v714_v18 = vadd.f32 %v710_v35, %v656_v3 }
 0x204   :  { %v727_v6 = vpop.permute.xlu0 %726 }
 0x205   :  { %1287 = vrot.lane.b32.xlu0 %v3506_v37, %s2760_s14  ;;  %v748_v4 = vmul.f32 %v3768_v39, %v727_v6  ;;  %v761_v51 = vmul.f32 %v2527_v58, %v727_v6 }
 0x207   :  { %v752_v36 = vadd.f32 %v748_v4, %v701_v40  ;;  %v765_v5 = vadd.f32 %v761_v51, %v714_v18  ;;  %v5445_v18 = vrot.slane %v3546_v11, 1  ;;  %v5446_v51 = vrot.slane %v3552_v53, 2  ;;  %v2668_v11 = vld [vmem:[%s5201_s3 + $0x10] sm:$0xff] }
 0x208   :  { %v778_v34 = vpop.permute.xlu0 %777 }
 0x209   :  { %1338 = vrot.lane.b32.xlu0 %v3471_v45, %s2760_s14  ;;  %v799_v47 = vmul.f32 %v3783_v48, %v778_v34  ;;  %v812_v23 = vmul.f32 %v2530_v54, %v778_v34 }
 0x20b   :  { %v803_v20 = vadd.f32 %v799_v47, %v752_v36  ;;  %v816_v50 = vadd.f32 %v812_v23, %v765_v5  ;;  %v5447_v5 = vrot.slane %v3557_v21, 3  ;;  %v5448_v23 = vrot.slane %v3578_v24, 4 }
 0x20c   :  { %v829_v60 = vpop.permute.xlu0 %828  ;;  %v568_v21 = vmul.f32 %v3243_v57, %v3775_v42  ;;  %v786_v42 = vmul.f32 %v3286_v55, %v778_v34 }
 0x20d   :  { %1389 = vrot.lane.b32.xlu0 %v3482_v9, %s2760_s14  ;;  %v850_v37 = vmul.f32 %v3799_v16, %v829_v60  ;;  %v863_v3 = vmul.f32 %v2533_v22, %v829_v60 }
 0x20f   :  { %v854_v35 = vadd.f32 %v850_v37, %v803_v20  ;;  %v867_v58 = vadd.f32 %v863_v3, %v816_v50  ;;  %v510_v50 = vmul.f32 %v3234_v44, %v3744_v0  ;;  %v684_v44 = vmul.f32 %v3264_v61, %v676_v2 }
 0x211   :  { %1440 = vrot.lane.b32.xlu0 %v3493_v12, %s2760_s14  ;;  %v2667_v12 = vld [vmem:[%s5198_s0] ss:$0 sm:$0xff] }
 0x212   :  { %v57_v17 = vmul.f32 %v2667_v12, %v3468_v63  ;;  %v452_v63 = vmul.f32 %v3218_v7, %v3590_v43  ;;  %v626_v7 = vmul.f32 %v3253_v25, %v3804_v15  ;;  %v735_v43 = vmul.f32 %v3275_v41, %v727_v6  ;;  %v880_v25 = vpop.permute.xlu0 %879  ;;  %v3928_v12 = vld [vmem:[%s5198_s0 + $0x1c] ss:$0 sm:$0xff] }
 0x213   :  { %v901_v61 = vmul.f32 %v3812_v13, %v880_v25  ;;  %v914_v41 = vmul.f32 %v3817_v59, %v880_v25 }
 0x214   :  { %v116_v4 = vadd.f32 %v5445_v18, %v57_v17  ;;  %v3933_v17 = vld [vmem:[%s5198_s0 + $0x35] ss:$0 sm:$0xff] }
 0x215   :  { %v905_v55 = vadd.f32 %v901_v61, %v854_v35  ;;  %v918_v34 = vadd.f32 %v914_v41, %v867_v58 }
 0x216   :  { %v201_v36 = vadd.f32 %v5446_v51, %v116_v4  ;;  %v3943_v51 = vld [vmem:[%s5198_s0 + $0x21] ss:$0 sm:$0xff] }
 0x218   :  { %v286_v47 = vadd.f32 %v5447_v5, %v201_v36  ;;  %v3948_v36 = vld [vmem:[%s5198_s0 + $0x3a] ss:$0 sm:$0xff] }
 0x21a   :  { %v371_v20 = vadd.f32 %v5448_v23, %v286_v47 }
 0x21c   :  { %v456_v37 = vadd.f32 %v452_v63, %v371_v20 }
 0x21e   :  { %v514_v53 = vadd.f32 %v510_v50, %v456_v37  ;;  %v3956_v50 = vld [vmem:[%s5198_s0 + $0x26] ss:$0 sm:$0xff]  ;;  %v3961_v37 = vld [vmem:[%s5198_s0 + $0x3f] ss:$0 sm:$0xff] }
 0x220   :  { %v572_v24 = vadd.f32 %v568_v21, %v514_v53  ;;  %v5449_v53 = vld [vmem:[#allocation47_spill] sm:$0xff] }
 0x222   :  { %v630_v0 = vadd.f32 %v626_v7, %v572_v24 }
 0x224   :  { %v688_v57 = vadd.f32 %v684_v44, %v630_v0 }
 0x226   :  { %s2587_s26 = spop %2586  ;;  %v739_v3 = vadd.f32 %v735_v43, %v688_v57  ;;  %v3969_v43 = vld [vmem:[%s5198_s0 + $0x2b] ss:$0 sm:$0xff]  ;;  %v3974_v57 = vld [vmem:[%s5198_s0 + $0x44] ss:$0 sm:$0xff] }
 0x227   :  { %v1603_v30 = vstv %s2587_s26 }
 0x228   :  { %v3848_v45 = vmul.f32 0.00390625, %v1603_v30  ;;  %v790_v15 = vadd.f32 %v786_v42, %v739_v3  ;;  %v837_v30 = vmul.f32 %v3297_v62, %v829_v60  ;;  %v3913_v62 = vld [vmem:[%s5198_s0 + $0x2f] ss:$0 sm:$0xff] }
 0x22a   :  { %v3852_v54 = vsub.f32 %v3453_v46, %v3848_v45  ;;  %v3856_v33 = vsub.f32 %v3457_v14, %v3848_v45  ;;  %v841_v6 = vadd.f32 %v837_v30, %v790_v15 }
 0x22c   :  { %v1607_v9 = vmul.f32 %v3852_v54, %v3852_v54  ;;  %v1608_v22 = vmul.f32 %v3856_v33, %v3856_v33 }
 0x22e   :  { %v1609_v49 = vsel %vm1590_vm4, %v1607_v9, 0.0  ;;  %v1610_v29 = vsel %vm1590_vm4, %v1608_v22, 0.0  ;;  %v888_v9 = vmul.f32 %v3308_v52, %v880_v25  ;;  %v5450_v25 = vld [vmem:[#allocation49_spill] sm:$0xff] }
 0x22f   :  { %v1611_v40 = vadd.f32 %v1610_v29, %v1609_v49 }
 0x230   :  { %v892_v60 = vadd.f32 %v888_v9, %v841_v6  ;;  %v3982_v9 = vld [vmem:[%s5198_s0 + $0x30] ss:$0 sm:$0xff] }
 0x231   :  { %1612 = vadd.xlane.f32.xlu1 %v1611_v40 }
 0x242   :  { %979 = vrot.lane.b32.xlu1 %v2668_v11, %s2759_s13 }
 0x246   :  { %1030 = vrot.lane.b32.xlu1 %v3514_v32, %s2759_s13 }
 0x24a   :  { %1081 = vrot.lane.b32.xlu1 %v3479_v1, %s2759_s13 }
 0x24e   :  { %1132 = vrot.lane.b32.xlu1 %v3490_v19, %s2759_s13 }
 0x252   :  { %1183 = vrot.lane.b32.xlu1 %v3501_v8, %s2759_s13 }
 0x256   :  { %1234 = vrot.lane.b32.xlu1 %v2668_v11, %s2760_s14 }
 0x25a   :  { %1285 = vrot.lane.b32.xlu1 %v3514_v32, %s2760_s14  ;;  %v3918_v32 = vld [vmem:[%s5198_s0 + $0x48] ss:$0 sm:$0xff] }
 0x25c   :  { %v3905_v2 = vpop.xlane.xlu0 %1665 }
 0x25e   :  { %1336 = vrot.lane.b32.xlu1 %v3479_v1, %s2760_s14 }
 0x260   :  { %v931_v59 = vpop.permute.xlu0 %930 }
 0x261   :  { %v939_v22 = vmul.f32 %v3319_v10, %v931_v59  ;;  %v952_v52 = vmul.f32 %v3913_v62, %v931_v59  ;;  %v965_v1 = vmul.f32 %v3918_v32, %v931_v59 }
 0x262   :  { %1387 = vrot.lane.b32.xlu1 %v3490_v19, %s2760_s14 }
 0x263   :  { %v956_v35 = vadd.f32 %v952_v52, %v905_v55  ;;  %v969_v58 = vadd.f32 %v965_v1, %v918_v34  ;;  %v943_v49 = vadd.f32 %v939_v22, %v892_v60  ;;  %v3987_v55 = vld [vmem:[%s5198_s0 + $0x49] ss:$0 sm:$0xff]  ;;  %v5451_v60 = vld [vmem:[#allocation51_spill] sm:$0xff] }
 0x264   :  { %v982_v10 = vpop.permute.xlu0 %981 }
 0x265   :  { %v990_v29 = vmul.f32 %v3330_v56, %v982_v10  ;;  %v1003_v40 = vmul.f32 %v3928_v12, %v982_v10  ;;  %v1016_v19 = vmul.f32 %v3933_v17, %v982_v10  ;;  %v3995_v10 = vld [vmem:[%s5198_s0 + $0x1d] ss:$0 sm:$0xff] }
 0x266   :  { %1438 = vrot.lane.b32.xlu1 %v3501_v8, %s2760_s14 }
 0x267   :  { %v1007_v18 = vadd.f32 %v1003_v40, %v956_v35  ;;  %v1020_v4 = vadd.f32 %v1016_v19, %v969_v58  ;;  %v994_v5 = vadd.f32 %v990_v29, %v943_v49  ;;  %v4000_v49 = vld [vmem:[%s5198_s0 + $0x36] ss:$0 sm:$0xff]  ;;  %v5452_v19 = vld [vmem:[#allocation53_spill] sm:$0xff] }
 0x268   :  { %v1033_v56 = vpop.permute.xlu0 %1032 }
 0x269   :  { %v1041_v47 = vmul.f32 %v3341_v31, %v1033_v56  ;;  %v1054_v23 = vmul.f32 %v3943_v51, %v1033_v56  ;;  %v1067_v8 = vmul.f32 %v3948_v36, %v1033_v56 }
 0x26b   :  { %v1058_v20 = vadd.f32 %v1054_v23, %v1007_v18  ;;  %v1071_v63 = vadd.f32 %v1067_v8, %v1020_v4  ;;  %v1045_v21 = vadd.f32 %v1041_v47, %v994_v5  ;;  %v4008_v23 = vld [vmem:[%s5198_s0 + $0x22] ss:$0 sm:$0xff]  ;;  %v4013_v8 = vld [vmem:[%s5198_s0 + $0x3b] ss:$0 sm:$0xff] }
 0x26c   :  { %v1084_v11 = vpop.permute.xlu0 %1083 }
 0x26d   :  { %v1092_v31 = vmul.f32 %v5449_v53, %v1084_v11  ;;  %v1105_v7 = vmul.f32 %v3956_v50, %v1084_v11  ;;  %v1118_v24 = vmul.f32 %v3961_v37, %v1084_v11  ;;  %v5453_v11 = vld [vmem:[#allocation55_spill] sm:$0xff] }
 0x26f   :  { %v1109_v44 = vadd.f32 %v1105_v7, %v1058_v20  ;;  %v1122_v0 = vadd.f32 %v1118_v24, %v1071_v63  ;;  %v1096_v3 = vadd.f32 %v1092_v31, %v1045_v21 }
 0x270   :  { %v1135_v42 = vpop.permute.xlu0 %1134 }
 0x271   :  { %v1143_v15 = vmul.f32 %v5450_v25, %v1135_v42  ;;  %v1156_v30 = vmul.f32 %v3969_v43, %v1135_v42  ;;  %v1169_v61 = vmul.f32 %v3974_v57, %v1135_v42  ;;  %v5454_v25 = vld [vmem:[#allocation57_spill] sm:$0xff] }
 0x273   :  { %v1160_v41 = vadd.f32 %v1156_v30, %v1109_v44  ;;  %v1173_v6 = vadd.f32 %v1169_v61, %v1122_v0  ;;  %v1147_v59 = vadd.f32 %v1143_v15, %v1096_v3  ;;  %v4021_v44 = vld [vmem:[%s5198_s0 + $0x27] ss:$0 sm:$0xff]  ;;  %v4026_v0 = vld [vmem:[%s5198_s0 + $0x40] ss:$0 sm:$0xff] }
 0x274   :  { %v1186_v34 = vpop.permute.xlu0 %1185 }
 0x275   :  { %v1194_v22 = vmul.f32 %v5451_v60, %v1186_v34  ;;  %v1207_v52 = vmul.f32 %v3982_v9, %v1186_v34  ;;  %v1220_v1 = vmul.f32 %v3987_v55, %v1186_v34  ;;  %v4034_v34 = vld [vmem:[%s5198_s0 + $0x2c] ss:$0 sm:$0xff] }
 0x277   :  { %v1211_v35 = vadd.f32 %v1207_v52, %v1160_v41  ;;  %v1224_v58 = vadd.f32 %v1220_v1, %v1173_v6  ;;  %v1198_v40 = vadd.f32 %v1194_v22, %v1147_v59  ;;  %v4039_v59 = vld [vmem:[%s5198_s0 + $0x45] ss:$0 sm:$0xff]  ;;  %v5455_v52 = vld [vmem:[#allocation59_spill] sm:$0xff] }
 0x278   :  { %v1237_v29 = vpop.permute.xlu0 %1236 }
 0x279   :  { %v1245_v18 = vmul.f32 %v5452_v19, %v1237_v29  ;;  %v1258_v4 = vmul.f32 %v3995_v10, %v1237_v29  ;;  %v1271_v56 = vmul.f32 %v4000_v49, %v1237_v29 }
 0x27b   :  { %v1262_v5 = vadd.f32 %v1258_v4, %v1211_v35  ;;  %v1275_v47 = vadd.f32 %v1271_v56, %v1224_v58  ;;  %v1249_v63 = vadd.f32 %v1245_v18, %v1198_v40  ;;  %v5457_v4 = vld [vmem:[#allocation62_spill] sm:$0xff] }
 0x27c   :  { %v1288_v20 = vpop.permute.xlu0 %1287 }
 0x27d   :  { %v1296_v21 = vmul.f32 %v5453_v11, %v1288_v20  ;;  %v1309_v53 = vmul.f32 %v4008_v23, %v1288_v20  ;;  %v1322_v31 = vmul.f32 %v4013_v8, %v1288_v20  ;;  %v5458_v20 = vld [vmem:[#allocation80_spill] sm:$0xff]  ;;  %v5459_v11 = vld [vmem:[#allocation66_spill] sm:$0xff] }
 0x27f   :  { %v1313_v7 = vadd.f32 %v1309_v53, %v1262_v5  ;;  %v1326_v24 = vadd.f32 %v1322_v31, %v1275_v47  ;;  %v1300_v3 = vadd.f32 %v1296_v21, %v1249_v63  ;;  %v2669_v47 = vld [vmem:[%s5198_s0 + $0x1] ss:$0 sm:$0xff]  ;;  %v2670_v53 = vld [vmem:[%s5198_s0 + $0x6] ss:$0 sm:$0xff]  ;;  %v5460_v31 = vld [vmem:[#allocation82_spill] sm:$0xff] }
 0x280   :  { %v1339_v42 = vpop.permute.xlu0 %1338  ;;  %v451_v63 = vmul.f32 %v2669_v47, %v5458_v20 }
 0x281   :  { %v1347_v15 = vmul.f32 %v5454_v25, %v1339_v42  ;;  %v1360_v30 = vmul.f32 %v4021_v44, %v1339_v42  ;;  %v1373_v61 = vmul.f32 %v4026_v0, %v1339_v42  ;;  %v2671_v42 = vld [vmem:[%s5198_s0 + $0xb] ss:$0 sm:$0xff] }
 0x282   :  { %v455_v21 = vadd.f32 %v451_v63, %v5459_v11  ;;  %v5464_v11 = vld [vmem:[#allocation78_spill] sm:$0xff] }
 0x283   :  { %v1364_v41 = vadd.f32 %v1360_v30, %v1313_v7  ;;  %v1377_v6 = vadd.f32 %v1373_v61, %v1326_v24  ;;  %v1351_v22 = vadd.f32 %v1347_v15, %v1300_v3  ;;  %v509_v7 = vmul.f32 %v2670_v53, %v5460_v31  ;;  %v5461_v3 = vld [vmem:[#allocation70_spill] sm:$0xff] }
 0x284   :  { %v1390_v60 = vpop.permute.xlu0 %1389  ;;  %v567_v25 = vmul.f32 %v2671_v42, %v5461_v3  ;;  %v1667_v15 = vrot.slane %v3905_v2, 4  ;;  %v2672_v61 = vld [vmem:[%s5198_s0 + $0x10] ss:$0 sm:$0xff] }
 0x285   :  { %v1398_v1 = vmul.f32 %v5455_v52, %v1390_v60  ;;  %v1411_v35 = vmul.f32 %v4034_v34, %v1390_v60  ;;  %v1424_v58 = vmul.f32 %v4039_v59, %v1390_v60  ;;  %v513_v24 = vadd.f32 %v509_v7, %v455_v21 }
 0x286   :  { %v1668_v60 = vadd.f32 %v1667_v15, %v3905_v2  ;;  %v2674_v2 = vld [vmem:[%s5198_s0 + $0x2] ss:$0 sm:$0xff]  ;;  %v2675_v15 = vld [vmem:[%s5198_s0 + $0x7] ss:$0 sm:$0xff] }
 0x287   :  { %v4044_v29 = vadd.f32 %v1411_v35, %v1364_v41  ;;  %v4046_v40 = vadd.f32 %v1424_v58, %v1377_v6  ;;  %v1402_v18 = vadd.f32 %v1398_v1, %v1351_v22  ;;  %v571_v30 = vadd.f32 %v567_v25, %v513_v24  ;;  %v5462_v41 = vld [vmem:[#allocation74_spill] sm:$0xff]  ;;  %v929_v22 = vpop.permute.xlu1 %928  ;;  %v5463_v35 = vld [vmem:[#allocation77_spill] sm:$0xff] }
 0x288   :  { %v4048_v19 = vpop.permute.xlu0 %1440  ;;  %v625_v6 = vmul.f32 %v2672_v61, %v5462_v41  ;;  %v2673_v1 = vld [vmem:[%s5198_s0 + $0x15] ss:$0 sm:$0xff]  ;;  %v964_v47 = vmul.f32 %v3918_v32, %v929_v22  ;;  %v734_v21 = vmul.f32 %v2674_v2, %v5464_v11 }
 0x289   :  { %5456 = vst [vmem:[#allocation47_spill] sm:$0xff] %v4046_v40  ;;  %v1449_v56 = vmul.f32 %v5457_v4, %v4048_v19  ;;  %v683_v58 = vmul.f32 %v2673_v1, %v5463_v35  ;;  %v951_v4 = vmul.f32 %v3913_v62, %v929_v22  ;;  %v5502_v40 = vld [vmem:[#allocation31_spill] sm:$0xff] }
 0x28a   :  { %v629_v52 = vadd.f32 %v625_v6, %v571_v30  ;;  %v968_v42 = vadd.f32 %v964_v47, %v3835_v38  ;;  %v5465_v30 = vld [vmem:[#allocation84_spill] sm:$0xff] }
 0x28b   :  { %v4052_v5 = vadd.f32 %v1449_v56, %v1402_v18  ;;  %v1669_v18 = vrot.slane %v1668_v60, 2  ;;  %v955_v31 = vadd.f32 %v951_v4, %v3833_v27  ;;  %v785_v61 = vmul.f32 %v2675_v15, %v5465_v30 }
 0x28c   :  { %v687_v63 = vadd.f32 %v683_v58, %v629_v52 }
 0x28d   :  { %1490 = vrot.lane.b32.xlu0 %v4052_v5, %s2761_s30  ;;  %v1670_v24 = vadd.f32 %v1669_v18, %v1668_v60  ;;  %v5466_v18 = vld [vmem:[#allocation86_spill] sm:$0xff] }
 0x28e   :  { %v738_v41 = vadd.f32 %v734_v21, %v687_v63 }
 0x28f   :  { %v1671_v35 = vrot.slane %v1670_v24, 1 }
 0x291   :  { %1506 = vrot.lane.b32.xlu0 %v4052_v5, %s2762_s6  ;;  %v1672_v11 = vadd.f32 %v1671_v35, %v1670_v24 }
 0x2ba   :  { %v1613_v56 = vpop.xlane.xlu1 %1612 }
 0x2bb   :  { %v1614_v20 = vrot.slane %v1613_v56, 4 }
 0x2bd   :  { %v1615_v53 = vadd.f32 %v1614_v20, %v1613_v56  ;;  %v789_v56 = vadd.f32 %v785_v61, %v738_v41 }
 0x2be   :  { %v980_v7 = vpop.permute.xlu1 %979 }
 0x2bf   :  { %v1616_v3 = vrot.slane %v1615_v53, 2  ;;  %v1002_v25 = vmul.f32 %v3928_v12, %v980_v7  ;;  %v1015_v32 = vmul.f32 %v3933_v17, %v980_v7  ;;  %v2676_v17 = vld [vmem:[%s5198_s0 + $0xc] ss:$0 sm:$0xff] }
 0x2c0   :  { %v836_v4 = vmul.f32 %v2676_v17, %v5466_v18 }
 0x2c1   :  { %v1006_v6 = vadd.f32 %v1002_v25, %v955_v31  ;;  %v1019_v52 = vadd.f32 %v1015_v32, %v968_v42  ;;  %v1617_v1 = vadd.f32 %v1616_v3, %v1615_v53  ;;  %v2677_v31 = vld [vmem:[%s5198_s0 + $0x11] ss:$0 sm:$0xff] }
 0x2c2   :  { %v1031_v27 = vpop.permute.xlu1 %1030  ;;  %v887_v42 = vmul.f32 %v2677_v31, %v3824_v28  ;;  %v2679_v28 = vld [vmem:[%s5198_s0 + $0x3] ss:$0 sm:$0xff]  ;;  %v2683_v31 = vld [vmem:[%s5198_s0 + $0x17] ss:$0 sm:$0xff] }
 0x2c3   :  { %v1053_v60 = vmul.f32 %v3943_v51, %v1031_v27  ;;  %v1066_v38 = vmul.f32 %v3948_v36, %v1031_v27  ;;  %v1618_v58 = vrot.slane %v1617_v1, 1  ;;  %v840_v36 = vadd.f32 %v836_v4, %v789_v56  ;;  %v2681_v56 = vld [vmem:[%s5198_s0 + $0xd] ss:$0 sm:$0xff] }
 0x2c5   :  { %v1057_v47 = vadd.f32 %v1053_v60, %v1006_v6  ;;  %v1070_v20 = vadd.f32 %v1066_v38, %v1019_v52  ;;  %v1619_v63 = vadd.f32 %v1618_v58, %v1617_v1  ;;  %v891_v30 = vadd.f32 %v887_v42, %v840_v36 }
 0x2c6   :  { %v1082_v2 = vpop.permute.xlu1 %1081  ;;  %v989_v1 = vmul.f32 %v2679_v28, %v980_v7  ;;  %v2686_v28 = vld [vmem:[%s5198_s0 + $0xe] ss:$0 sm:$0xff] }
 0x2c7   :  { %v1104_v21 = vmul.f32 %v3956_v50, %v1082_v2  ;;  %v1117_v53 = vmul.f32 %v3961_v37, %v1082_v2  ;;  %2588 = vpush %v1619_v63  ;;  %v2678_v37 = vld [vmem:[%s5198_s0 + $0x16] ss:$0 sm:$0xff]  ;;  %v2682_v63 = vld [vmem:[%s5198_s0 + $0x12] ss:$0 sm:$0xff] }
 0x2c8   :  { %2590 = vpush %v1672_v11  ;;  %v938_v61 = vmul.f32 %v2678_v37, %v929_v22 }
 0x2c9   :  { %v1108_v3 = vadd.f32 %v1104_v21, %v1057_v47  ;;  %v1121_v25 = vadd.f32 %v1117_v53, %v1070_v20  ;;  %v1091_v47 = vmul.f32 %v2681_v56, %v1082_v2 }
 0x2ca   :  { %v1133_v32 = vpop.permute.xlu1 %1132  ;;  %v942_v38 = vadd.f32 %v938_v61, %v891_v30  ;;  %v2685_v61 = vld [vmem:[%s5198_s0 + $0x9] ss:$0 sm:$0xff] }
 0x2cb   :  { %v1155_v15 = vmul.f32 %v3969_v43, %v1133_v32  ;;  %v1168_v24 = vmul.f32 %v3974_v57, %v1133_v32  ;;  %v2680_v57 = vld [vmem:[%s5198_s0 + $0x8] ss:$0 sm:$0xff]  ;;  %v1142_v11 = vmul.f32 %v2682_v63, %v1133_v32 }
 0x2cc   :  { %v1040_v58 = vmul.f32 %v2680_v57, %v1031_v27  ;;  %v993_v4 = vadd.f32 %v989_v1, %v942_v38 }
 0x2cd   :  { %v1159_v41 = vadd.f32 %v1155_v15, %v1108_v3  ;;  %v1172_v6 = vadd.f32 %v1168_v24, %v1121_v25  ;;  %v2684_v25 = vld [vmem:[%s5198_s0 + $0x4] ss:$0 sm:$0xff] }
 0x2ce   :  { %v1184_v52 = vpop.permute.xlu1 %1183 }
 0x2cf   :  { %v1206_v35 = vmul.f32 %v3982_v9, %v1184_v52  ;;  %v1219_v60 = vmul.f32 %v3987_v55, %v1184_v52  ;;  %v1044_v55 = vadd.f32 %v1040_v58, %v993_v4  ;;  %v1193_v42 = vmul.f32 %v2683_v31, %v1184_v52  ;;  %v2687_v58 = vld [vmem:[%s5198_s0 + $0x13] ss:$0 sm:$0xff] }
 0x2d1   :  { %v1210_v17 = vadd.f32 %v1206_v35, %v1159_v41  ;;  %v1223_v22 = vadd.f32 %v1219_v60, %v1172_v6  ;;  %v1095_v36 = vadd.f32 %v1091_v47, %v1044_v55 }
 0x2d2   :  { %v1235_v18 = vpop.permute.xlu1 %1234 }
 0x2d3   :  { %v1257_v7 = vmul.f32 %v3995_v10, %v1235_v18  ;;  %v1270_v20 = vmul.f32 %v4000_v49, %v1235_v18  ;;  %v1146_v49 = vadd.f32 %v1142_v11, %v1095_v36  ;;  %v1244_v15 = vmul.f32 %v2684_v25, %v1235_v18 }
 0x2d5   :  { %v1261_v27 = vadd.f32 %v1257_v7, %v1210_v17  ;;  %v1274_v21 = vadd.f32 %v1270_v20, %v1223_v22  ;;  %v1197_v37 = vadd.f32 %v1193_v42, %v1146_v49  ;;  %v2688_v20 = vld [vmem:[%s5198_s0 + $0x18] ss:$0 sm:$0xff] }
 0x2d6   :  { %v1286_v53 = vpop.permute.xlu1 %1285 }
 0x2d7   :  { %v1308_v2 = vmul.f32 %v4008_v23, %v1286_v53  ;;  %v1321_v3 = vmul.f32 %v4013_v8, %v1286_v53  ;;  %v1295_v41 = vmul.f32 %v2685_v61, %v1286_v53  ;;  %v1248_v8 = vadd.f32 %v1244_v15, %v1197_v37 }
 0x2d9   :  { %v1312_v32 = vadd.f32 %v1308_v2, %v1261_v27  ;;  %v1325_v24 = vadd.f32 %v1321_v3, %v1274_v21  ;;  %v1299_v57 = vadd.f32 %v1295_v41, %v1248_v8 }
 0x2da   :  { %v1337_v30 = vpop.permute.xlu1 %1336 }
 0x2db   :  { %v1359_v6 = vmul.f32 %v4021_v44, %v1337_v30  ;;  %v1372_v52 = vmul.f32 %v4026_v0, %v1337_v30  ;;  %v1346_v1 = vmul.f32 %v2686_v28, %v1337_v30 }
 0x2dd   :  { %v1363_v35 = vadd.f32 %v1359_v6, %v1312_v32  ;;  %v1376_v60 = vadd.f32 %v1372_v52, %v1325_v24  ;;  %v1350_v0 = vadd.f32 %v1346_v1, %v1299_v57  ;;  %v1734_v24 = vrot.slane %v3457_v14, 4  ;;  %v2690_v57 = vld [vmem:[%s5198_s0 + $0x19] ss:$0 sm:$0xff] }
 0x2de   :  { %v1388_v38 = vpop.permute.xlu1 %1387 }
 0x2df   :  { %v1397_v17 = vmul.f32 %v2687_v58, %v1388_v38  ;;  %v1410_v22 = vmul.f32 %v4034_v34, %v1388_v38  ;;  %v1423_v18 = vmul.f32 %v4039_v59, %v1388_v38  ;;  %v4198_v38 = vld [vmem:[%s5201_s3 + $0x8] sm:$0xff] }
 0x2e0   :  { %v68_v58 = vmul.f32 %v2690_v57, %v4198_v38 }
 0x2e1   :  { %v4149_v4 = vadd.f32 %v1410_v22, %v1363_v35  ;;  %v4151_v56 = vadd.f32 %v1423_v18, %v1376_v60  ;;  %v1401_v7 = vadd.f32 %v1397_v17, %v1350_v0  ;;  %v5468_v17 = vld [vmem:[#allocation67_spill] sm:$0xff]  ;;  %v5470_v18 = vld [vmem:[#allocation8_spill] sm:$0xff] }
 0x2e2   :  { %v4153_v47 = vpop.permute.xlu1 %1438  ;;  %v5469_v22 = vrot.slane %v5468_v17, 1  ;;  %v5471_v0 = vrot.slane %v5470_v18, 1  ;;  %v5489_v17 = vld [vmem:[#allocation81_spill] sm:$0xff] }
 0x2e3   :  { %5467 = vst [vmem:[#allocation49_spill] sm:$0xff] %v4151_v56  ;;  %v1448_v55 = vmul.f32 %v2688_v20, %v4153_v47 }
 0x2e5   :  { %v1452_v63 = vadd.f32 %v1448_v55, %v1401_v7  ;;  %v134_v7 = vsel %vm101_vm0, %v5471_v0, %v5469_v22  ;;  %v5472_v55 = vld [vmem:[#allocation69_spill] sm:$0xff] }
 0x2e6   :  { %v142_v20 = vadd.f32 %v134_v7, %v68_v58  ;;  %v5488_v58 = vld [vmem:[#allocation19_spill] sm:$0xff]  ;;  %v5490_v0 = vld [vmem:[#allocation21_spill] sm:$0xff] }
 0x2e7   :  { %1488 = vrot.lane.b32.xlu1 %v1452_v63, %s2761_s30  ;;  %v520_v22 = vmul.f32 %v5489_v17, %v5488_v58  ;;  %v521_v7 = vmul.f32 %v5489_v17, %v5490_v0 }
 0x2eb   :  { %1504 = vrot.lane.b32.xlu1 %v1452_v63, %s2762_s6 }
 0x2f8   :  { %s4161_s12 = spop %2588 }
 0x2f9   :  { %s2591_s17 = spop %2590 }
 0x2fa   :  { %v1674_v59 = vstv %s2591_s17 }
 0x2fb   :  { %v4163_v11 = vmul.f32 0.00390625, %v1674_v59  ;;  %v5474_v59 = vld [vmem:[#allocation10_spill] sm:$0xff] }
 0x2fd   :  { %v4167_v27 = vsub.f32 %v3453_v46, %v4163_v11  ;;  %v4171_v21 = vsub.f32 %v3457_v14, %v4163_v11 }
 0x2ff   :  { %v1678_v53 = vmul.f32 %v4167_v27, %v4167_v27  ;;  %v1679_v36 = vmul.f32 %v4171_v21, %v4171_v21  ;;  %v1491_v31 = vpop.permute.xlu0 %1490 }
 0x300   :  { %v1499_v3 = vadd.f32 %v1491_v31, %v4052_v5 }
 0x301   :  { %1682 = vrot.lane.b32.xlu1 %v1678_v53, %s2763_s8  ;;  %1684 = vrot.lane.b32.xlu0 %v1679_v36, %s2763_s8  ;;  %v5475_v53 = vrot.slane %v5474_v59, 2 }
 0x303   :  { %v1507_v42 = vpop.permute.xlu0 %1506 }
 0x304   :  { %v4180_v49 = vadd.f32 %v1507_v42, %v1499_v3  ;;  %v5476_v42 = vld [vmem:[#allocation72_spill] sm:$0xff] }
 0x305   :  { %v5478_v3 = vld [vmem:[#allocation12_spill] sm:$0xff] }
 0x306   :  { %v1737_v37 = vrot.slane %v4180_v49, 4 }
 0x359   :  { %v1489_v2 = vpop.permute.xlu1 %1488 }
 0x35a   :  { %v1498_v25 = vadd.f32 %v1489_v2, %v1452_v63  ;;  %v5473_v63 = vrot.slane %v5472_v55, 2  ;;  %v5477_v2 = vrot.slane %v5476_v42, 3  ;;  %v5491_v55 = vld [vmem:[#allocation22_spill] sm:$0xff]  ;;  %v5494_v42 = vld [vmem:[#allocation24_spill] sm:$0xff] }
 0x35c   :  { %v219_v36 = vsel %vm186_vm1, %v5475_v53, %v5473_v63  ;;  %v5492_v63 = vld [vmem:[#allocation83_spill] sm:$0xff] }
 0x35d   :  { %v1505_v15 = vpop.permute.xlu1 %1504  ;;  %v227_v31 = vadd.f32 %v219_v36, %v142_v20  ;;  %v578_v59 = vmul.f32 %v5492_v63, %v5491_v55  ;;  %v5493_v53 = vld [vmem:[#allocation23_spill] sm:$0xff] }
 0x35e   :  { %v4182_v32 = vadd.f32 %v1505_v15, %v1498_v25  ;;  %v5479_v25 = vrot.slane %v5478_v3, 3  ;;  %v579_v36 = vmul.f32 %v5492_v63, %v5493_v53  ;;  %v5500_v63 = vld [vmem:[#allocation29_spill] sm:$0xff] }
 0x360   :  { %v1735_v30 = vrot.slane %v4182_v32, 4  ;;  %v304_v15 = vsel %vm271_vm2, %v5479_v25, %v5477_v2  ;;  %v5495_v2 = vld [vmem:[#allocation85_spill] sm:$0xff] }
 0x361   :  { %v636_v3 = vmul.f32 %v5495_v2, %v5494_v42 }
 0x362   :  { %v1736_v61 = vsel %vm356_vm3, %v1734_v24, %v1735_v30  ;;  %v1738_v41 = vsel %vm356_vm3, %v1735_v30, %v1737_v37  ;;  %v312_v24 = vadd.f32 %v304_v15, %v227_v31  ;;  %v5480_v30 = vld [vmem:[#allocation75_spill] sm:$0xff] }
 0x363   :  { %v1741_v6 = vsel %vm1590_vm4, %v1736_v61, 0.0  ;;  %v1742_v5 = vsel %vm1590_vm4, %v1738_v41, 0.0  ;;  %v5481_v37 = vrot.slane %v5480_v30, 4 }
 0x364   :  { %v1743_v52 = vadd.f32 %v1742_v5, %v1741_v6  ;;  %v5484_v5 = vld [vmem:[#allocation18_spill] sm:$0xff] }
 0x366   :  { %1744 = vadd.xlane.f32.xlu0 %v1743_v52  ;;  %v5485_v52 = vld [vmem:[#allocation79_spill] sm:$0xff] }
 0x373   :  { %v1683_v8 = vpop.permute.xlu1 %1682  ;;  %v1685_v28 = vpop.permute.xlu0 %1684 }
 0x374   :  { %v1688_v1 = vsel %vm1590_vm4, %v1683_v8, 0.0  ;;  %v1689_v35 = vsel %vm1590_vm4, %v1685_v28, 0.0  ;;  %v462_v8 = vmul.f32 %v5485_v52, %v5484_v5 }
 0x375   :  { %v1690_v60 = vadd.f32 %v1689_v35, %v1688_v1  ;;  %v5486_v1 = vld [vmem:[#allocation20_spill] sm:$0xff] }
 0x376   :  { %v463_v35 = vmul.f32 %v5485_v52, %v5486_v1  ;;  %v5498_v52 = vld [vmem:[#allocation27_spill] sm:$0xff] }
 0x377   :  { %1691 = vadd.xlane.f32.xlu1 %v1690_v60  ;;  %v5487_v60 = vld [vmem:[#allocation16_spill] sm:$0xff] }
 0x378   :  { %v466_v57 = vadd.f32 %v462_v8, %v5487_v60  ;;  %v695_v8 = vmul.f32 %v3752_v26, %v5498_v52 }
 0x37a   :  { %v524_v31 = vadd.f32 %v520_v22, %v466_v57 }
 0x37c   :  { %1814 = vrot.lane.b32.xlu0 %v1736_v61, %s2763_s8  ;;  %v5482_v61 = vld [vmem:[#allocation14_spill] sm:$0xff] }
 0x388   :  { %1816 = vrot.lane.b32.xlu1 %v1738_v41, %s2763_s8  ;;  %v5483_v41 = vrot.slane %v5482_v61, 4  ;;  %v5497_v61 = vld [vmem:[#allocation26_spill] sm:$0xff] }
 0x38a   :  { %v389_v6 = vsel %vm356_vm3, %v5483_v41, %v5481_v37  ;;  %v582_v37 = vadd.f32 %v578_v59, %v524_v31  ;;  %v694_v41 = vmul.f32 %v3752_v26, %v5497_v61 }
 0x38b   :  { %v397_v28 = vadd.f32 %v389_v6, %v312_v24  ;;  %v5496_v24 = vld [vmem:[#allocation25_spill] sm:$0xff] }
 0x38c   :  { %v637_v30 = vmul.f32 %v5495_v2, %v5496_v24 }
 0x38d   :  { %v467_v18 = vadd.f32 %v463_v35, %v397_v28  ;;  %v640_v28 = vadd.f32 %v636_v3, %v582_v37  ;;  %v5499_v35 = vld [vmem:[#allocation28_spill] sm:$0xff] }
 0x38e   :  { %v745_v60 = vmul.f32 %v3768_v39, %v5499_v35 }
 0x38f   :  { %v525_v15 = vadd.f32 %v521_v7, %v467_v18  ;;  %v698_v22 = vadd.f32 %v694_v41, %v640_v28  ;;  %v746_v18 = vmul.f32 %v3768_v39, %v5500_v63  ;;  %v5501_v7 = vld [vmem:[#allocation30_spill] sm:$0xff] }
 0x390   :  { %v796_v59 = vmul.f32 %v3783_v48, %v5501_v7  ;;  %v5507_v7 = vld [vmem:[#allocation35_spill] sm:$0xff] }
 0x391   :  { %v583_v6 = vadd.f32 %v579_v36, %v525_v15  ;;  %v749_v2 = vadd.f32 %v745_v60, %v698_v22  ;;  %v797_v36 = vmul.f32 %v3783_v48, %v5502_v40  ;;  %v5503_v15 = vld [vmem:[#allocation32_spill] sm:$0xff]  ;;  %v899_v63 = vmul.f32 %v3812_v13, %v5507_v7 }
 0x392   :  { %v847_v26 = vmul.f32 %v3799_v16, %v5503_v15  ;;  %v5506_v22 = vld [vmem:[#allocation36_spill] sm:$0xff] }
 0x393   :  { %v641_v17 = vadd.f32 %v637_v30, %v583_v6  ;;  %v5504_v30 = vld [vmem:[#allocation34_spill] sm:$0xff]  ;;  %v5505_v6 = vld [vmem:[#allocation33_spill] sm:$0xff]  ;;  %v949_v48 = vmul.f32 %v3913_v62, %v5506_v22 }
 0x394   :  { %v898_v41 = vmul.f32 %v3812_v13, %v5504_v30  ;;  %v848_v28 = vmul.f32 %v3799_v16, %v5505_v6  ;;  %v5508_v30 = vld [vmem:[#allocation38_spill] sm:$0xff] }
 0x395   :  { %v699_v31 = vadd.f32 %v695_v8, %v641_v17  ;;  %v1000_v16 = vmul.f32 %v3928_v12, %v5508_v30 }
 0x3ef   :  { %v1745_v20 = vpop.xlane.xlu0 %1744 }
 0x3f0   :  { %v1746_v25 = vrot.slane %v1745_v20, 4 }
 0x3f2   :  { %v1747_v57 = vadd.f32 %v1746_v25, %v1745_v20  ;;  %v750_v20 = vadd.f32 %v746_v18, %v699_v31  ;;  %v800_v25 = vadd.f32 %v796_v59, %v749_v2 }
 0x3f3   :  { %v1815_v39 = vpop.permute.xlu0 %1814 }
 0x3f4   :  { %v1748_v3 = vrot.slane %v1747_v57, 2  ;;  %v801_v60 = vadd.f32 %v797_v36, %v750_v20  ;;  %v851_v17 = vadd.f32 %v847_v26, %v800_v25  ;;  %v1820_v18 = vsel %vm1590_vm4, %v1815_v39, 0.0  ;;  %v5509_v26 = vld [vmem:[#allocation37_spill] sm:$0xff] }
 0x3f6   :  { %v1749_v15 = vadd.f32 %v1748_v3, %v1747_v57  ;;  %v902_v2 = vadd.f32 %v898_v41, %v851_v17  ;;  %v852_v36 = vadd.f32 %v848_v28, %v801_v60  ;;  %v5510_v57 = vld [vmem:[#allocation40_spill] sm:$0xff]  ;;  %v5512_v17 = vld [vmem:[#allocation42_spill] sm:$0xff] }
 0x3f7   :  { %v1051_v3 = vmul.f32 %v3943_v51, %v5510_v57 }
 0x3f8   :  { %v953_v25 = vadd.f32 %v949_v48, %v902_v2  ;;  %v1750_v13 = vrot.slane %v1749_v15, 1  ;;  %v903_v39 = vadd.f32 %v899_v63, %v852_v36  ;;  %v5514_v48 = vld [vmem:[#allocation44_spill] sm:$0xff] }
 0x3fa   :  { %v1004_v22 = vadd.f32 %v1000_v16, %v953_v25  ;;  %v1751_v2 = vadd.f32 %v1750_v13, %v1749_v15  ;;  %v5515_v16 = vld [vmem:[#allocation43_spill] sm:$0xff]  ;;  %v5519_v13 = vld [vmem:[#allocation48_spill] sm:$0xff] }
 0x3fb   :  { %v1103_v36 = vmul.f32 %v3956_v50, %v5515_v16 }
 0x400   :  { %v1692_v37 = vpop.xlane.xlu1 %1691 }
 0x401   :  { %v1693_v56 = vrot.slane %v1692_v37, 4 }
 0x403   :  { %v1694_v8 = vadd.f32 %v1693_v56, %v1692_v37  ;;  %v950_v37 = vmul.f32 %v3913_v62, %v5509_v26  ;;  %v5513_v62 = vld [vmem:[#allocation41_spill] sm:$0xff] }
 0x404   :  { %v1817_v40 = vpop.permute.xlu1 %1816 }
 0x405   :  { %v1695_v59 = vrot.slane %v1694_v8, 2  ;;  %v1821_v31 = vsel %vm1590_vm4, %v1817_v40, 0.0  ;;  %v5511_v40 = vld [vmem:[#allocation39_spill] sm:$0xff]  ;;  %v954_v28 = vadd.f32 %v950_v37, %v903_v39 }
 0x406   :  { %v1822_v56 = vadd.f32 %v1821_v31, %v1820_v18  ;;  %v1001_v41 = vmul.f32 %v3928_v12, %v5511_v40  ;;  %v1102_v18 = vmul.f32 %v3956_v50, %v5512_v17  ;;  %v1055_v31 = vadd.f32 %v1051_v3, %v1004_v22  ;;  %v5516_v12 = vld [vmem:[#allocation46_spill] sm:$0xff]  ;;  %v5517_v22 = vld [vmem:[#allocation45_spill] sm:$0xff] }
 0x407   :  { %v1696_v20 = vadd.f32 %v1695_v59, %v1694_v8  ;;  %v1052_v8 = vmul.f32 %v3943_v51, %v5513_v62  ;;  %v1153_v59 = vmul.f32 %v3969_v43, %v5514_v48  ;;  %v1204_v25 = vmul.f32 %v3982_v9, %v5516_v12  ;;  %v5518_v51 = vld [vmem:[#allocation50_spill] sm:$0xff] }
 0x408   :  { %1823 = vadd.xlane.f32.xlu0 %v1822_v56  ;;  %v1005_v63 = vadd.f32 %v1001_v41, %v954_v28  ;;  %v1106_v56 = vadd.f32 %v1102_v18, %v1055_v31  ;;  %v1255_v3 = vmul.f32 %v3995_v10, %v5518_v51  ;;  %v1205_v41 = vmul.f32 %v3982_v9, %v5519_v13  ;;  %v5520_v18 = vld [vmem:[#allocation54_spill] sm:$0xff]  ;;  %v5521_v31 = vld [vmem:[#allocation52_spill] sm:$0xff] }
 0x409   :  { %v1697_v7 = vrot.slane %v1696_v20, 1  ;;  %v1306_v50 = vmul.f32 %v4008_v23, %v5520_v18  ;;  %v5527_v18 = vld [vmem:[#allocation63_spill] sm:$0xff] }
 0x40a   :  { %v1056_v37 = vadd.f32 %v1052_v8, %v1005_v63  ;;  %v1256_v8 = vmul.f32 %v3995_v10, %v5521_v31  ;;  %v5525_v10 = vld [vmem:[#allocation60_spill] sm:$0xff] }
 0x40b   :  { %v1698_v60 = vadd.f32 %v1697_v7, %v1696_v20  ;;  %v1157_v7 = vadd.f32 %v1153_v59, %v1106_v56  ;;  %v1154_v20 = vmul.f32 %v3969_v43, %v5517_v22  ;;  %v5522_v59 = vld [vmem:[#allocation58_spill] sm:$0xff] }
 0x40c   :  { %v1107_v39 = vadd.f32 %v1103_v36, %v1056_v37  ;;  %v4298_v43 = vld [vmem:[%s5198_s0 + $0x31] ss:$0 sm:$0xff]  ;;  %v5523_v36 = vld [vmem:[#allocation56_spill] sm:$0xff] }
 0x40d   :  { %2592 = vpush %v1698_v60  ;;  %v1208_v15 = vadd.f32 %v1204_v25, %v1157_v7  ;;  %v1307_v9 = vmul.f32 %v4008_v23, %v5523_v36  ;;  %v5524_v25 = vld [vmem:[#allocation61_spill] sm:$0xff] }
 0x40e   :  { %2594 = vpush %v1751_v2  ;;  %v1158_v28 = vadd.f32 %v1154_v20, %v1107_v39  ;;  %v1357_v2 = vmul.f32 %v4021_v44, %v5522_v59  ;;  %v1408_v37 = vmul.f32 %v4034_v34, %v5524_v25  ;;  %v5526_v39 = vld [vmem:[#allocation64_spill] sm:$0xff] }
 0x40f   :  { %v1259_v60 = vadd.f32 %v1255_v3, %v1208_v15  ;;  %v1358_v3 = vmul.f32 %v4021_v44, %v5525_v10  ;;  %v1459_v15 = vmul.f32 %v4298_v43, %v5526_v39  ;;  %v1621_v44 = vstv %s4161_s12 }
 0x410   :  { %v1209_v63 = vadd.f32 %v1205_v41, %v1158_v28  ;;  %v1409_v41 = vmul.f32 %v4034_v34, %v5527_v18  ;;  %v5528_v28 = vld [vmem:[#allocation65_spill] sm:$0xff]  ;;  %v1628_v18 = vsub.f32 %v4180_v49, %v3848_v45  ;;  %v4354_v10 = vstv %s1589_s25 }
 0x411   :  { %v1310_v56 = vadd.f32 %v1306_v50, %v1259_v60  ;;  %v1460_v23 = vmul.f32 %v4298_v43, %v5528_v28 }
 0x412   :  { %v1260_v7 = vadd.f32 %v1256_v8, %v1209_v63 }
 0x413   :  { %v1361_v20 = vadd.f32 %v1357_v2, %v1310_v56  ;;  %v1622_v2 = vmul.f32 0.00390625, %v1621_v44 }
 0x414   :  { %v1311_v59 = vadd.f32 %v1307_v9, %v1260_v7 }
 0x415   :  { %v1412_v31 = vadd.f32 %v1408_v37, %v1361_v20  ;;  %v1623_v63 = vadd.f32 1e-05, %v1622_v2 }
 0x416   :  { %v1362_v50 = vadd.f32 %v1358_v3, %v1311_v59 }
 0x417   :  { %v4312_v60 = vadd.f32 %v1459_v15, %v1412_v31  ;;  %2643 = vrsqrt.f32 %v1623_v63 }
 0x418   :  { %v1413_v25 = vadd.f32 %v1409_v41, %v1362_v50  ;;  %v4341_v50 = vstv %s1588_s22 }
 0x41a   :  { %v4316_v8 = vadd.f32 %v1460_v23, %v1413_v25 }
 0x41e   :  { %1520 = vrot.lane.b32.xlu0 %v4312_v60, %s2761_s30 }
 0x422   :  { %1538 = vrot.lane.b32.xlu0 %v4316_v8, %s2762_s6 }
 0x424   :  { %v2644_v41 = vpop.eup %2643 }
 0x425   :  { %v1626_v63 = vmul.f32 %v2644_v41, %v4341_v50 }
 0x43e   :  { %s2593_s23 = spop %2592 }
 0x43f   :  { %v1700_v34 = vstv %s2593_s23  ;;  %s2595_s24 = spop %2594 }
 0x440   :  { %v1701_v59 = vmul.f32 0.00390625, %v1700_v34  ;;  %v1753_v31 = vstv %s2595_s24  ;;  %v1627_v34 = vsub.f32 %v4182_v32, %v3848_v45  ;;  %v1706_v45 = vsub.f32 %v4180_v49, %v4163_v11 }
 0x441   :  { %v4321_v56 = vmul.f32 0.00390625, %v1753_v31 }
 0x442   :  { %v1702_v9 = vadd.f32 1e-05, %v1701_v59  ;;  %v1631_v41 = vmul.f32 %v1627_v34, %v1626_v63 }
 0x443   :  { %v4325_v25 = vsub.f32 %v3457_v14, %v4321_v56  ;;  %v4329_v37 = vsub.f32 %v4182_v32, %v4321_v56  ;;  %v4333_v7 = vsub.f32 %v4180_v49, %v4321_v56 }
 0x444   :  { %2645 = vrsqrt.f32 %v1702_v9 }
 0x445   :  { %v1758_v20 = vmul.f32 %v4325_v25, %v4325_v25  ;;  %v1759_v3 = vmul.f32 %v4329_v37, %v4329_v37  ;;  %v1760_v15 = vmul.f32 %v4333_v7, %v4333_v7 }
 0x447   :  { %v1764_v23 = vrot.slane %v1758_v20, 4  ;;  %v1765_v44 = vrot.slane %v1759_v3, 4  ;;  %v1767_v2 = vrot.slane %v1760_v15, 4  ;;  %v1629_v20 = vmul.f32 %v1626_v63, %v3852_v54 }
 0x448   :  { %v1630_v3 = vmul.f32 %v1626_v63, %v3856_v33  ;;  %v1632_v15 = vmul.f32 %v1628_v18, %v1626_v63  ;;  %v1705_v54 = vsub.f32 %v4182_v32, %v4163_v11 }
 0x449   :  { %v1766_v59 = vsel %vm356_vm3, %v1764_v23, %v1765_v44  ;;  %v1768_v31 = vsel %vm356_vm3, %v1765_v44, %v1767_v2  ;;  %v1634_v44 = vadd.f32 %v4354_v10, %v1629_v20  ;;  %v4370_v20 = vld [vmem:[%s5202_s4] sm:$0xff] }
 0x44a   :  { %v1771_v9 = vsel %vm1590_vm4, %v1766_v59, 0.0  ;;  %v1772_v28 = vsel %vm1590_vm4, %v1768_v31, 0.0  ;;  %v1635_v2 = vadd.f32 %v4354_v10, %v1630_v3  ;;  %v1637_v59 = vadd.f32 %v4354_v10, %v1632_v15  ;;  %v4375_v3 = vld [vmem:[%s5202_s4 + $0x8] sm:$0xff] }
 0x44b   :  { %v1773_v39 = vadd.f32 %v1772_v28, %v1771_v9  ;;  %v1636_v31 = vadd.f32 %v4354_v10, %v1631_v41  ;;  %v1638_v34 = vmax.f32 %v1634_v44, 0.0 }
 0x44c   :  { %v1639_v9 = vmax.f32 %v1635_v2, 0.0  ;;  %v1641_v11 = vmax.f32 %v1637_v59, 0.0  ;;  %v4394_v59 = vld [vmem:[%s5202_s4 + $0x20] sm:$0xff] }
 0x44d   :  { %1774 = vadd.xlane.f32.xlu1 %v1773_v39  ;;  %v1640_v15 = vmax.f32 %v1636_v31, 0.0  ;;  %v4399_v31 = vld [vmem:[%s5202_s4 + $0x28] sm:$0xff] }
 0x44e   :  { %v1647_v36 = vmul.f32 %v4375_v3, %v1639_v9 }
 0x451   :  { %v2646_v23 = vpop.eup %2645 }
 0x452   :  { %v1704_v33 = vmul.f32 %v2646_v23, %v4341_v50 }
 0x454   :  { %v1707_v18 = vmul.f32 %v1704_v33, %v4167_v27  ;;  %v1708_v39 = vmul.f32 %v1704_v33, %v4171_v21  ;;  %v1709_v28 = vmul.f32 %v1705_v54, %v1704_v33  ;;  %v1710_v63 = vmul.f32 %v1706_v45, %v1704_v33  ;;  %v4380_v27 = vld [vmem:[%s5202_s4 + $0x18] sm:$0xf]  ;;  %v4385_v21 = vld [vmem:[%s5202_s4 + $0x10] sm:$0xff] }
 0x455   :  { %v4404_v45 = vld [vmem:[%s5202_s4 + $0x30] sm:$0xff]  ;;  %v4409_v54 = vld [vmem:[%s5202_s4 + $0x38] sm:$0xf]  ;;  %v1649_v13 = vmul.f32 %v4380_v27, %v1641_v11  ;;  %v1648_v51 = vmul.f32 %v4385_v21, %v1640_v15 }
 0x456   :  { %v1711_v41 = vadd.f32 %v1707_v18, %v4354_v10  ;;  %v1712_v23 = vadd.f32 %v1708_v39, %v4354_v10  ;;  %v1713_v44 = vadd.f32 %v1709_v28, %v4354_v10  ;;  %v1714_v2 = vadd.f32 %v1710_v63, %v4354_v10  ;;  %5529 = vst [vmem:[#allocation51_spill] sm:$0xff] %v4404_v45 }
 0x457   :  { %5530 = vst [vmem:[#allocation53_spill] sm:$0xff] %v4409_v54  ;;  %v1646_v63 = vmul.f32 %v4370_v20, %v1638_v34 }
 0x458   :  { %v1715_v33 = vmax.f32 %v1711_v41, 0.0  ;;  %v1716_v18 = vmax.f32 %v1712_v23, 0.0  ;;  %v1717_v39 = vmax.f32 %v1713_v44, 0.0  ;;  %v1718_v28 = vmax.f32 %v1714_v2, 0.0 }
 0x45a   :  { %v1724_v22 = vmul.f32 %v4394_v59, %v1715_v33  ;;  %v1725_v12 = vmul.f32 %v4399_v31, %v1716_v18  ;;  %v1726_v16 = vmul.f32 %v4404_v45, %v1717_v39  ;;  %v1727_v48 = vmul.f32 %v4409_v54, %v1718_v28 }
 0x45c   :  { %v4419_v41 = vadd.f32 %v1724_v22, %v1646_v63  ;;  %v4421_v23 = vadd.f32 %v1725_v12, %v1647_v36  ;;  %v4423_v44 = vadd.f32 %v1726_v16, %v1648_v51  ;;  %v4425_v34 = vadd.f32 %v1727_v48, %v1649_v13 }
 0x45e   :  { %1522 = vrot.lane.b32.xlu1 %v4316_v8, %s2761_s30 }
 0x462   :  { %1536 = vrot.lane.b32.xlu1 %v4312_v60, %s2762_s6 }
 0x491   :  { %v1824_v9 = vpop.xlane.xlu0 %1823 }
 0x492   :  { %v1825_v11 = vrot.slane %v1824_v9, 4 }
 0x494   :  { %v1826_v15 = vadd.f32 %v1825_v11, %v1824_v9 }
 0x496   :  { %v1827_v2 = vrot.slane %v1826_v15, 2 }
 0x498   :  { %v1828_v39 = vadd.f32 %v1827_v2, %v1826_v15 }
 0x49a   :  { %v1829_v16 = vrot.slane %v1828_v39, 1 }
 0x49c   :  { %v1830_v13 = vadd.f32 %v1829_v16, %v1828_v39 }
 0x4d6   :  { %v1775_v33 = vpop.xlane.xlu1 %1774 }
 0x4d7   :  { %v1776_v18 = vrot.slane %v1775_v33, 4 }
 0x4d9   :  { %v1777_v22 = vadd.f32 %v1776_v18, %v1775_v33 }
 0x4db   :  { %v1778_v12 = vrot.slane %v1777_v22, 2 }
 0x4dd   :  { %v1779_v36 = vadd.f32 %v1778_v12, %v1777_v22 }
 0x4df   :  { %v1780_v51 = vrot.slane %v1779_v36, 1 }
 0x4e1   :  { %v1781_v48 = vadd.f32 %v1780_v51, %v1779_v36  ;;  %v1788_v36 = vsub.f32 %v3453_v46, %v4321_v56  ;;  %v4468_v56 = vld [vmem:[%s5202_s4 + $0x40] sm:$0xff] }
 0x4e3   :  { %2596 = vpush %v1781_v48 }
 0x4e4   :  { %2598 = vpush %v1830_v13 }
 0x514   :  { %s2597_s19 = spop %2596 }
 0x515   :  { %v1783_v28 = vstv %s2597_s19  ;;  %s2599_s14 = spop %2598 }
 0x516   :  { %v1784_v63 = vmul.f32 0.00390625, %v1783_v28  ;;  %v1832_v54 = vstv %s2599_s14 }
 0x517   :  { %v4431_v45 = vmul.f32 0.00390625, %v1832_v54 }
 0x518   :  { %v1785_v9 = vadd.f32 1e-05, %v1784_v63 }
 0x519   :  { %v4435_v11 = vsub.f32 %v3457_v14, %v4431_v45  ;;  %v4439_v15 = vsub.f32 %v4182_v32, %v4431_v45  ;;  %v4443_v2 = vsub.f32 %v4180_v49, %v4431_v45 }
 0x51a   :  { %2647 = vrsqrt.f32 %v1785_v9 }
 0x51b   :  { %v1838_v33 = vmul.f32 %v4439_v15, %v4439_v15  ;;  %v1839_v54 = vmul.f32 %v4443_v2, %v4443_v2  ;;  %v1837_v18 = vmul.f32 %v4435_v11, %v4435_v11 }
 0x51d   :  { %v1844_v14 = vrot.slane %v1838_v33, 4  ;;  %v1846_v22 = vrot.slane %v1839_v54, 4  ;;  %v1843_v39 = vrot.slane %v1837_v18, 4  ;;  %v1523_v18 = vpop.permute.xlu1 %1522 }
 0x51f   :  { %v1847_v32 = vsel %vm356_vm3, %v1844_v14, %v1846_v22  ;;  %v1845_v12 = vsel %vm356_vm3, %v1843_v39, %v1844_v14 }
 0x520   :  { %1850 = vrot.lane.b32.xlu0 %v1847_v32, %s2763_s8  ;;  %1848 = vrot.lane.b32.xlu1 %v1845_v12, %s2763_s8 }
 0x527   :  { %v2648_v49 = vpop.eup %2647 }
 0x528   :  { %v1787_v16 = vmul.f32 %v2648_v49, %v4341_v50 }
 0x52a   :  { %v1789_v51 = vmul.f32 %v1788_v36, %v1787_v16  ;;  %v1790_v48 = vmul.f32 %v1787_v16, %v4325_v25  ;;  %v1791_v13 = vmul.f32 %v1787_v16, %v4329_v37  ;;  %v1792_v28 = vmul.f32 %v1787_v16, %v4333_v7  ;;  %v4473_v25 = vld [vmem:[%s5202_s4 + $0x48] sm:$0xff]  ;;  %v4478_v37 = vld [vmem:[%s5202_s4 + $0x50] sm:$0xff]  ;;  %v4483_v7 = vld [vmem:[%s5202_s4 + $0x58] sm:$0xf] }
 0x52b   :  { %5531 = vst [vmem:[#allocation55_spill] sm:$0xff] %v4478_v37  ;;  %5532 = vst [vmem:[#allocation57_spill] sm:$0xff] %v4483_v7 }
 0x52c   :  { %v1793_v63 = vadd.f32 %v1789_v51, %v4354_v10  ;;  %v1794_v9 = vadd.f32 %v1790_v48, %v4354_v10  ;;  %v1795_v33 = vadd.f32 %v1791_v13, %v4354_v10  ;;  %v1796_v54 = vadd.f32 %v1792_v28, %v4354_v10  ;;  %v1521_v51 = vpop.permute.xlu0 %1520 }
 0x52e   :  { %v1797_v14 = vmax.f32 %v1793_v63, 0.0  ;;  %v1798_v22 = vmax.f32 %v1794_v9, 0.0  ;;  %v1799_v39 = vmax.f32 %v1795_v33, 0.0  ;;  %v1800_v32 = vmax.f32 %v1796_v54, 0.0  ;;  %v1537_v9 = vpop.permute.xlu1 %1536 }
 0x52f   :  { %v1532_v33 = vadd.f32 %v1521_v51, %v4312_v60  ;;  %v1533_v54 = vadd.f32 %v1523_v18, %v4316_v8 }
 0x530   :  { %v1806_v12 = vmul.f32 %v4468_v56, %v1797_v14  ;;  %v1807_v49 = vmul.f32 %v4473_v25, %v1798_v22  ;;  %v1808_v36 = vmul.f32 %v4478_v37, %v1799_v39  ;;  %v1809_v16 = vmul.f32 %v4483_v7, %v1800_v32  ;;  %v1539_v22 = vpop.permute.xlu0 %1538 }
 0x531   :  { %v4503_v14 = vadd.f32 %v1537_v9, %v1532_v33  ;;  %v4505_v39 = vadd.f32 %v1539_v22, %v1533_v54 }
 0x532   :  { %v4490_v48 = vadd.f32 %v1806_v12, %v4419_v41  ;;  %v4493_v13 = vadd.f32 %v1807_v49, %v4421_v23  ;;  %v4496_v28 = vadd.f32 %v1808_v36, %v4423_v44  ;;  %v4499_v63 = vadd.f32 %v1809_v16, %v4425_v34 }
 0x533   :  { %v1899_v41 = vsel %vm1590_vm4, %v4503_v14, 0.0  ;;  %v1900_v23 = vsel %vm1590_vm4, %v4505_v39, 0.0 }
 0x534   :  { %v1901_v44 = vadd.f32 %v1900_v23, %v1899_v41 }
 0x53f   :  { %1902 = vadd.xlane.f32.xlu0 %v1901_v44 }
 0x555   :  { %1960 = vrot.lane.b32.xlu0 %v4503_v14, %s2763_s8 }
 0x592   :  { %v1849_v34 = vpop.permute.xlu1 %1848  ;;  %v1851_v60 = vpop.permute.xlu0 %1850 }
 0x593   :  { %v1854_v8 = vsel %vm1590_vm4, %v1849_v34, 0.0  ;;  %v1855_v18 = vsel %vm1590_vm4, %v1851_v60, 0.0 }
 0x594   :  { %v1856_v32 = vadd.f32 %v1855_v18, %v1854_v8 }
 0x596   :  { %1857 = vadd.xlane.f32.xlu1 %v1856_v32 }
 0x5a7   :  { %1962 = vrot.lane.b32.xlu1 %v4505_v39, %s2763_s8 }
 0x5c8   :  { %v1903_v12 = vpop.xlane.xlu0 %1902 }
 0x5c9   :  { %v1904_v49 = vrot.slane %v1903_v12, 4 }
 0x5cb   :  { %v1905_v36 = vadd.f32 %v1904_v49, %v1903_v12  ;;  %v1461_v12 = vmul.f32 %v4298_v43, %v4153_v47  ;;  %v1462_v49 = vmul.f32 %v4298_v43, %v4048_v19 }
 0x5cc   :  { %v1961_v33 = vpop.permute.xlu0 %1960 }
 0x5cd   :  { %v1906_v16 = vrot.slane %v1905_v36, 2  ;;  %v1966_v23 = vsel %vm1590_vm4, %v1961_v33, 0.0 }
 0x5cf   :  { %v1907_v41 = vadd.f32 %v1906_v16, %v1905_v36  ;;  %v4524_v36 = vadd.f32 %v1461_v12, %v4149_v4  ;;  %v4529_v16 = vadd.f32 %v1462_v49, %v4044_v29 }
 0x5d1   :  { %v1908_v18 = vrot.slane %v1907_v41, 1 }
 0x5d3   :  { %v1909_v37 = vadd.f32 %v1908_v18, %v1907_v41 }
 0x61f   :  { %v1858_v51 = vpop.xlane.xlu1 %1857 }
 0x620   :  { %v1859_v9 = vrot.slane %v1858_v51, 4 }
 0x622   :  { %v1860_v54 = vadd.f32 %v1859_v9, %v1858_v51 }
 0x623   :  { %v1963_v22 = vpop.permute.xlu1 %1962 }
 0x624   :  { %v1861_v44 = vrot.slane %v1860_v54, 2  ;;  %v1967_v34 = vsel %vm1590_vm4, %v1963_v22, 0.0 }
 0x625   :  { %v1968_v60 = vadd.f32 %v1967_v34, %v1966_v23  ;;  %v1871_v34 = vsub.f32 %v3453_v46, %v4431_v45  ;;  %v4562_v46 = vld [vmem:[%s5202_s4 + $0x60] sm:$0xff]  ;;  %v4572_v45 = vld [vmem:[%s5202_s4 + $0x70] sm:$0xff] }
 0x626   :  { %v1862_v8 = vadd.f32 %v1861_v44, %v1860_v54 }
 0x627   :  { %1969 = vadd.xlane.f32.xlu0 %v1968_v60 }
 0x628   :  { %v1863_v32 = vrot.slane %v1862_v8, 1 }
 0x62a   :  { %v1864_v7 = vadd.f32 %v1863_v32, %v1862_v8 }
 0x62c   :  { %2600 = vpush %v1864_v7 }
 0x62d   :  { %2602 = vpush %v1909_v37 }
 0x63d   :  { %1524 = vrot.lane.b32.xlu0 %v4524_v36, %s2761_s30 }
 0x641   :  { %1542 = vrot.lane.b32.xlu0 %v4529_v16, %s2762_s6 }
 0x65d   :  { %s2601_s1 = spop %2600 }
 0x65e   :  { %v1866_v37 = vstv %s2601_s1  ;;  %s2603_s2 = spop %2602 }
 0x65f   :  { %v1867_v7 = vmul.f32 0.00390625, %v1866_v37  ;;  %v1911_v51 = vstv %s2603_s2 }
 0x660   :  { %v4533_v9 = vmul.f32 0.00390625, %v1911_v51 }
 0x661   :  { %v1868_v43 = vadd.f32 1e-05, %v1867_v7 }
 0x662   :  { %v4537_v4 = vsub.f32 %v4503_v14, %v4533_v9  ;;  %v4541_v33 = vsub.f32 %v4505_v39, %v4533_v9 }
 0x663   :  { %2649 = vrsqrt.f32 %v1868_v43 }
 0x664   :  { %v1915_v29 = vmul.f32 %v4537_v4, %v4537_v4  ;;  %v1916_v54 = vmul.f32 %v4541_v33, %v4541_v33 }
 0x666   :  { %v1917_v22 = vsel %vm1590_vm4, %v1915_v29, 0.0  ;;  %v1918_v41 = vsel %vm1590_vm4, %v1916_v54, 0.0 }
 0x667   :  { %v1919_v23 = vadd.f32 %v1918_v41, %v1917_v22 }
 0x669   :  { %1920 = vadd.xlane.f32.xlu1 %v1919_v23 }
 0x670   :  { %v2650_v44 = vpop.eup %2649 }
 0x671   :  { %v1870_v60 = vmul.f32 %v2650_v44, %v4341_v50  ;;  %v4567_v50 = vld [vmem:[%s5202_s4 + $0x68] sm:$0xff] }
 0x673   :  { %v1872_v8 = vmul.f32 %v1871_v34, %v1870_v60  ;;  %v1873_v18 = vmul.f32 %v1870_v60, %v4435_v11  ;;  %v1874_v32 = vmul.f32 %v1870_v60, %v4439_v15  ;;  %v1875_v12 = vmul.f32 %v1870_v60, %v4443_v2  ;;  %v4577_v11 = vld [vmem:[%s5202_s4 + $0x78] sm:$0xf] }
 0x675   :  { %v1876_v49 = vadd.f32 %v1872_v8, %v4354_v10  ;;  %v1877_v37 = vadd.f32 %v1873_v18, %v4354_v10  ;;  %v1878_v7 = vadd.f32 %v1874_v32, %v4354_v10  ;;  %v1879_v51 = vadd.f32 %v1875_v12, %v4354_v10 }
 0x677   :  { %v1880_v10 = vmax.f32 %v1876_v49, 0.0  ;;  %v1881_v15 = vmax.f32 %v1877_v37, 0.0  ;;  %v1882_v2 = vmax.f32 %v1878_v7, 0.0  ;;  %v1883_v43 = vmax.f32 %v1879_v51, 0.0 }
 0x679   :  { %v1889_v29 = vmul.f32 %v4562_v46, %v1880_v10  ;;  %v1890_v54 = vmul.f32 %v4567_v50, %v1881_v15  ;;  %v1891_v22 = vmul.f32 %v4572_v45, %v1882_v2  ;;  %v1892_v41 = vmul.f32 %v4577_v11, %v1883_v43 }
 0x67a   :  { %1526 = vrot.lane.b32.xlu1 %v4529_v16, %s2761_s30 }
 0x67b   :  { %v1893_v23 = vadd.f32 %v1889_v29, %v4490_v48  ;;  %v1894_v44 = vadd.f32 %v1890_v54, %v4493_v13  ;;  %v1895_v34 = vadd.f32 %v1891_v22, %v4496_v28  ;;  %v1896_v60 = vadd.f32 %v1892_v41, %v4499_v63 }
 0x67d   :  { %2476 = vst.msk [vmem:[%s5203_s5] sm:$0xff] %vm2475_vm5, %v1893_v23  ;;  %2477 = vst.msk [vmem:[%s5203_s5 + $0x8] sm:$0xff] %vm2475_vm5, %v1894_v44 }
 0x67e   :  { %2478 = vst.msk [vmem:[%s5203_s5 + $0x10] sm:$0xff] %vm2475_vm5, %v1895_v34  ;;  %1540 = vrot.lane.b32.xlu1 %v4524_v36, %s2762_s6 }
 0x67f   :  { %2480 = vst.msk [vmem:[%s5203_s5 + $0x18] sm:$0xf] %vm2479_vm6, %v1896_v60 }
 0x6b0   :  { %v1970_v48 = vpop.xlane.xlu0 %1969 }
 0x6b1   :  { %v1971_v13 = vrot.slane %v1970_v48, 4 }
 0x6b3   :  { %v1972_v28 = vadd.f32 %v1971_v13, %v1970_v48 }
 0x6b4   :  { %v1525_v44 = vpop.permute.xlu0 %1524 }
 0x6b5   :  { %v1973_v63 = vrot.slane %v1972_v28, 2  ;;  %v1534_v60 = vadd.f32 %v1525_v44, %v4524_v36 }
 0x6b7   :  { %v1974_v12 = vadd.f32 %v1973_v63, %v1972_v28 }
 0x6b8   :  { %v1543_v28 = vpop.permute.xlu0 %1542 }
 0x6b9   :  { %v1975_v7 = vrot.slane %v1974_v12, 1 }
 0x6bb   :  { %v1976_v15 = vadd.f32 %v1975_v7, %v1974_v12 }
 0x6f2   :  { %v1921_v8 = vpop.xlane.xlu1 %1920 }
 0x6f3   :  { %v1922_v18 = vrot.slane %v1921_v8, 4 }
 0x6f5   :  { %v1923_v32 = vadd.f32 %v1922_v18, %v1921_v8  ;;  %v2033_v18 = vrot.slane %v4505_v39, 4 }
 0x6f6   :  { %v1527_v23 = vpop.permute.xlu1 %1526 }
 0x6f7   :  { %v1924_v49 = vrot.slane %v1923_v32, 2  ;;  %v1535_v48 = vadd.f32 %v1527_v23, %v4529_v16  ;;  %v5533_v23 = vld [vmem:[#allocation68_spill] sm:$0xff] }
 0x6f8   :  { %v5534_v44 = vrot.slane %v5533_v23, 1 }
 0x6f9   :  { %v1925_v37 = vadd.f32 %v1924_v49, %v1923_v32  ;;  %v4629_v63 = vadd.f32 %v1543_v28, %v1535_v48 }
 0x6fa   :  { %v1541_v34 = vpop.permute.xlu1 %1540 }
 0x6fb   :  { %v1926_v51 = vrot.slane %v1925_v37, 1  ;;  %v4627_v13 = vadd.f32 %v1541_v34, %v1534_v60  ;;  %v2036_v32 = vrot.slane %v4629_v63, 4  ;;  %v5535_v34 = vld [vmem:[#allocation9_spill] sm:$0xff] }
 0x6fc   :  { %v5536_v60 = vrot.slane %v5535_v34, 1 }
 0x6fd   :  { %v1927_v10 = vadd.f32 %v1926_v51, %v1925_v37  ;;  %v2034_v8 = vrot.slane %v4627_v13, 4 }
 0x6fe   :  { %v162_v48 = vsel %vm101_vm0, %v5536_v60, %v5534_v44  ;;  %v2692_v44 = vld [vmem:[%s5198_s0 + $0x33] ss:$0 sm:$0xff] }
 0x6ff   :  { %2604 = vpush %v1927_v10  ;;  %v2035_v12 = vsel %vm356_vm3, %v2033_v18, %v2034_v8  ;;  %v2037_v49 = vsel %vm356_vm3, %v2034_v8, %v2036_v32  ;;  %v5537_v8 = vld [vmem:[#allocation71_spill] sm:$0xff]  ;;  %v475_v34 = vmul.f32 %v2692_v44, %v5484_v5 }
 0x700   :  { %2606 = vpush %v1976_v15  ;;  %v2040_v37 = vsel %vm1590_vm4, %v2035_v12, 0.0  ;;  %v2041_v36 = vsel %vm1590_vm4, %v2037_v49, 0.0  ;;  %v5538_v18 = vrot.slane %v5537_v8, 2  ;;  %v5539_v32 = vld [vmem:[#allocation11_spill] sm:$0xff] }
 0x701   :  { %v2042_v16 = vadd.f32 %v2041_v36, %v2040_v37  ;;  %v5541_v36 = vld [vmem:[#allocation73_spill] sm:$0xff] }
 0x730   :  { %s4607_s3 = spop %2604 }
 0x731   :  { %s2607_s21 = spop %2606 }
 0x732   :  { %v1978_v2 = vstv %s2607_s21 }
 0x733   :  { %v4609_v43 = vmul.f32 0.00390625, %v1978_v2 }
 0x735   :  { %v4613_v29 = vsub.f32 %v4503_v14, %v4609_v43  ;;  %v4617_v54 = vsub.f32 %v4505_v39, %v4609_v43 }
 0x737   :  { %v1983_v22 = vmul.f32 %v4617_v54, %v4617_v54  ;;  %v1982_v41 = vmul.f32 %v4613_v29, %v4613_v29 }
 0x739   :  { %1988 = vrot.lane.b32.xlu0 %v1983_v22, %s2763_s8  ;;  %1986 = vrot.lane.b32.xlu1 %v1982_v41, %s2763_s8  ;;  %v2691_v22 = vld [vmem:[%s5198_s0 + $0x32] ss:$0 sm:$0xff] }
 0x73a   :  { %v81_v41 = vmul.f32 %v2691_v22, %v4198_v38  ;;  %v5547_v22 = vld [vmem:[#allocation15_spill] sm:$0xff] }
 0x73b   :  { %v5548_v23 = vrot.slane %v5547_v22, 4 }
 0x73c   :  { %v170_v28 = vadd.f32 %v162_v48, %v81_v41  ;;  %v476_v48 = vmul.f32 %v2692_v44, %v5486_v1 }
 0x758   :  { %2043 = vadd.xlane.f32.xlu0 %v2042_v16  ;;  %v5542_v16 = vrot.slane %v5541_v36, 3  ;;  %v2694_v36 = vld [vmem:[%s5198_s0 + $0x3d] ss:$0 sm:$0xff] }
 0x759   :  { %v591_v5 = vmul.f32 %v2694_v36, %v5491_v55  ;;  %v592_v1 = vmul.f32 %v2694_v36, %v5493_v53 }
 0x76e   :  { %2108 = vrot.lane.b32.xlu0 %v2035_v12, %s2763_s8  ;;  %v5540_v12 = vrot.slane %v5539_v32, 2 }
 0x770   :  { %v247_v37 = vsel %vm186_vm1, %v5540_v12, %v5538_v18  ;;  %v2693_v18 = vld [vmem:[%s5198_s0 + $0x38] ss:$0 sm:$0xff] }
 0x771   :  { %v533_v32 = vmul.f32 %v2693_v18, %v5488_v58 }
 0x7ab   :  { %v1987_v7 = vpop.permute.xlu1 %1986  ;;  %v1989_v51 = vpop.permute.xlu0 %1988 }
 0x7ac   :  { %v1992_v10 = vsel %vm1590_vm4, %v1987_v7, 0.0  ;;  %v1993_v15 = vsel %vm1590_vm4, %v1989_v51, 0.0  ;;  %v5543_v7 = vld [vmem:[#allocation13_spill] sm:$0xff] }
 0x7ad   :  { %v1994_v2 = vadd.f32 %v1993_v15, %v1992_v10  ;;  %v5544_v51 = vrot.slane %v5543_v7, 3  ;;  %v5545_v15 = vld [vmem:[#allocation76_spill] sm:$0xff] }
 0x7ae   :  { %v2695_v7 = vld [vmem:[%s5198_s0 + $0x42] ss:$0 sm:$0xff] }
 0x7af   :  { %1995 = vadd.xlane.f32.xlu1 %v1994_v2  ;;  %v332_v38 = vsel %vm271_vm2, %v5544_v51, %v5542_v16  ;;  %v5546_v2 = vrot.slane %v5545_v15, 4  ;;  %v649_v51 = vmul.f32 %v2695_v7, %v5494_v42  ;;  %v2696_v15 = vld [vmem:[%s5198_s0 + $0x47] ss:$0 sm:$0xff] }
 0x7b0   :  { %v707_v55 = vmul.f32 %v2696_v15, %v5497_v61  ;;  %v708_v53 = vmul.f32 %v2696_v15, %v5498_v52  ;;  %v5551_v61 = vld [vmem:[#allocation30_spill] sm:$0xff] }
 0x7b1   :  { %v417_v41 = vsel %vm356_vm3, %v5548_v23, %v5546_v2  ;;  %v2697_v23 = vld [vmem:[%s5198_s0 + $0x34] ss:$0 sm:$0xff] }
 0x7b2   :  { %v758_v42 = vmul.f32 %v2697_v23, %v5499_v35  ;;  %v5553_v35 = vld [vmem:[#allocation32_spill] sm:$0xff] }
 0x7c0   :  { %2110 = vrot.lane.b32.xlu1 %v2037_v49, %s2763_s8  ;;  %v255_v49 = vadd.f32 %v247_v37, %v170_v28  ;;  %v5549_v28 = vld [vmem:[#allocation17_spill] sm:$0xff]  ;;  %v534_v37 = vmul.f32 %v2693_v18, %v5490_v0  ;;  %v650_v0 = vmul.f32 %v2695_v7, %v5496_v24  ;;  %v5552_v18 = vld [vmem:[#allocation31_spill] sm:$0xff]  ;;  %v2700_v7 = vld [vmem:[%s5198_s0 + $0x43] ss:$0 sm:$0xff] }
 0x7c1   :  { %v479_v8 = vadd.f32 %v475_v34, %v5549_v28  ;;  %v5550_v34 = vld [vmem:[#allocation29_spill] sm:$0xff] }
 0x7c2   :  { %v340_v10 = vadd.f32 %v332_v38, %v255_v49 }
 0x7c3   :  { %v537_v16 = vadd.f32 %v533_v32, %v479_v8 }
 0x7c4   :  { %v425_v60 = vadd.f32 %v417_v41, %v340_v10 }
 0x7c5   :  { %v595_v10 = vadd.f32 %v591_v5, %v537_v16 }
 0x7c6   :  { %v480_v12 = vadd.f32 %v476_v48, %v425_v60  ;;  %v759_v60 = vmul.f32 %v2697_v23, %v5550_v34  ;;  %v2698_v48 = vld [vmem:[%s5198_s0 + $0x39] ss:$0 sm:$0xff] }
 0x7c7   :  { %v653_v22 = vadd.f32 %v649_v51, %v595_v10  ;;  %v809_v28 = vmul.f32 %v2698_v48, %v5551_v61  ;;  %v810_v32 = vmul.f32 %v2698_v48, %v5552_v18  ;;  %v5554_v51 = vld [vmem:[#allocation34_spill] sm:$0xff] }
 0x7c8   :  { %v538_v38 = vadd.f32 %v534_v37, %v480_v12  ;;  %v2699_v12 = vld [vmem:[%s5198_s0 + $0x3e] ss:$0 sm:$0xff] }
 0x7c9   :  { %v711_v24 = vadd.f32 %v707_v55, %v653_v22  ;;  %v860_v37 = vmul.f32 %v2699_v12, %v5553_v35 }
 0x7ca   :  { %v596_v2 = vadd.f32 %v592_v1, %v538_v38 }
 0x7cb   :  { %v762_v52 = vadd.f32 %v758_v42, %v711_v24 }
 0x7cc   :  { %v654_v44 = vadd.f32 %v650_v0, %v596_v2  ;;  %v861_v0 = vmul.f32 %v2699_v12, %v5505_v6  ;;  %v2701_v2 = vld [vmem:[%s5198_s0 + $0x48] ss:$0 sm:$0xff]  ;;  %v2702_v6 = vld [vmem:[%s5198_s0 + $0x35] ss:$0 sm:$0xff]  ;;  %v2703_v12 = vld [vmem:[%s5198_s0 + $0x3a] ss:$0 sm:$0xff] }
 0x7cd   :  { %v813_v16 = vadd.f32 %v809_v28, %v762_v52  ;;  %v1013_v28 = vmul.f32 %v2702_v6, %v5508_v30  ;;  %v963_v18 = vmul.f32 %v2701_v2, %v5509_v26  ;;  %v1064_v35 = vmul.f32 %v2703_v12, %v5510_v57  ;;  %v2704_v30 = vld [vmem:[%s5198_s0 + $0x3f] ss:$0 sm:$0xff]  ;;  %v2705_v57 = vld [vmem:[%s5198_s0 + $0x44] ss:$0 sm:$0xff] }
 0x7ce   :  { %v712_v8 = vadd.f32 %v708_v53, %v654_v44  ;;  %v5555_v53 = vld [vmem:[#allocation36_spill] sm:$0xff]  ;;  %v5556_v44 = vld [vmem:[#allocation35_spill] sm:$0xff]  ;;  %v1115_v26 = vmul.f32 %v2704_v30, %v5512_v17  ;;  %v2706_v17 = vld [vmem:[%s5198_s0 + $0x49] ss:$0 sm:$0xff] }
 0x7cf   :  { %v864_v55 = vadd.f32 %v860_v37, %v813_v16  ;;  %v962_v22 = vmul.f32 %v2701_v2, %v5555_v53  ;;  %v912_v24 = vmul.f32 %v2700_v7, %v5556_v44  ;;  %v5559_v53 = vld [vmem:[#allocation46_spill] sm:$0xff]  ;;  %v5560_v44 = vld [vmem:[#allocation45_spill] sm:$0xff] }
 0x7d0   :  { %v763_v1 = vadd.f32 %v759_v60, %v712_v8 }
 0x7d2   :  { %v814_v15 = vadd.f32 %v810_v32, %v763_v1  ;;  %v1014_v1 = vmul.f32 %v2702_v6, %v5511_v40  ;;  %v5562_v6 = vld [vmem:[#allocation48_spill] sm:$0xff] }
 0x7d4   :  { %v865_v52 = vadd.f32 %v861_v0, %v814_v15 }
 0x7e1   :  { %v2044_v49 = vpop.xlane.xlu0 %2043 }
 0x7e2   :  { %v2045_v58 = vrot.slane %v2044_v49, 4 }
 0x7e4   :  { %v2046_v41 = vadd.f32 %v2045_v58, %v2044_v49  ;;  %v911_v58 = vmul.f32 %v2700_v7, %v5554_v51 }
 0x7e5   :  { %v2109_v38 = vpop.permute.xlu0 %2108 }
 0x7e6   :  { %v2047_v49 = vrot.slane %v2046_v41, 2  ;;  %v2114_v34 = vsel %vm1590_vm4, %v2109_v38, 0.0  ;;  %v915_v61 = vadd.f32 %v911_v58, %v864_v55  ;;  %v1065_v58 = vmul.f32 %v2703_v12, %v5513_v62  ;;  %v5557_v38 = vld [vmem:[#allocation44_spill] sm:$0xff]  ;;  %v5558_v55 = vld [vmem:[#allocation43_spill] sm:$0xff] }
 0x7e7   :  { %v1166_v0 = vmul.f32 %v2705_v57, %v5557_v38  ;;  %v1116_v2 = vmul.f32 %v2704_v30, %v5558_v55  ;;  %v5564_v12 = vld [vmem:[#allocation52_spill] sm:$0xff] }
 0x7e8   :  { %v2048_v42 = vadd.f32 %v2047_v49, %v2046_v41  ;;  %v966_v41 = vadd.f32 %v962_v22, %v915_v61  ;;  %v916_v49 = vadd.f32 %v912_v24, %v865_v52  ;;  %v1217_v22 = vmul.f32 %v2706_v17, %v5559_v53  ;;  %v5563_v52 = vld [vmem:[#allocation54_spill] sm:$0xff] }
 0x7e9   :  { %v1167_v24 = vmul.f32 %v2705_v57, %v5560_v44 }
 0x7ea   :  { %v2049_v37 = vrot.slane %v2048_v42, 1  ;;  %v967_v16 = vadd.f32 %v963_v18, %v916_v49  ;;  %v5565_v49 = vld [vmem:[#allocation58_spill] sm:$0xff] }
 0x7ec   :  { %v1018_v40 = vadd.f32 %v1014_v1, %v967_v16 }
 0x7ee   :  { %v1069_v62 = vadd.f32 %v1065_v58, %v1018_v40  ;;  %v5569_v40 = vld [vmem:[#allocation64_spill] sm:$0xff] }
 0x838   :  { %v1996_v36 = vpop.xlane.xlu1 %1995 }
 0x839   :  { %v1997_v5 = vrot.slane %v1996_v36, 4 }
 0x83b   :  { %v1998_v10 = vadd.f32 %v1997_v5, %v1996_v36  ;;  %v1017_v5 = vadd.f32 %v1013_v28, %v966_v41  ;;  %v1218_v28 = vmul.f32 %v2706_v17, %v5562_v6  ;;  %v5570_v17 = vld [vmem:[#allocation63_spill] sm:$0xff] }
 0x83c   :  { %v2111_v23 = vpop.permute.xlu1 %2110 }
 0x83d   :  { %v1999_v60 = vrot.slane %v1998_v10, 2  ;;  %v2115_v48 = vsel %vm1590_vm4, %v2111_v23, 0.0  ;;  %v1068_v51 = vadd.f32 %v1064_v35, %v1017_v5  ;;  %v4760_v5 = vld [vmem:[%s5198_s0 + $0x4a] ss:$0 sm:$0xff] }
 0x83e   :  { %v2116_v8 = vadd.f32 %v2115_v48, %v2114_v34  ;;  %v5561_v34 = vld [vmem:[#allocation50_spill] sm:$0xff]  ;;  %v1120_v48 = vadd.f32 %v1116_v2, %v1069_v62  ;;  %v5571_v62 = vld [vmem:[#allocation65_spill] sm:$0xff] }
 0x83f   :  { %v2000_v32 = vadd.f32 %v1999_v60, %v1998_v10  ;;  %v2050_v10 = vadd.f32 %v2049_v37, %v2048_v42  ;;  %v1119_v15 = vadd.f32 %v1115_v26, %v1068_v51  ;;  %v2707_v42 = vld [vmem:[%s5198_s0 + $0x36] ss:$0 sm:$0xff]  ;;  %v2709_v37 = vld [vmem:[%s5198_s0 + $0x40] ss:$0 sm:$0xff]  ;;  %v5567_v51 = vld [vmem:[#allocation61_spill] sm:$0xff] }
 0x840   :  { %2117 = vadd.xlane.f32.xlu0 %v2116_v8  ;;  %v1268_v60 = vmul.f32 %v2707_v42, %v5561_v34  ;;  %v2708_v8 = vld [vmem:[%s5198_s0 + $0x3b] ss:$0 sm:$0xff]  ;;  %v1269_v35 = vmul.f32 %v2707_v42, %v5564_v12  ;;  %v5566_v26 = vld [vmem:[#allocation56_spill] sm:$0xff]  ;;  %v1929_v34 = vstv %s4607_s3  ;;  %s2583_s3 = sld [smem:[#allocation4 + $0x1]] }
 0x841   :  { %v2001_v36 = vrot.slane %v2000_v32, 1  ;;  %v1170_v23 = vadd.f32 %v1166_v0, %v1119_v15  ;;  %v1319_v18 = vmul.f32 %v2708_v8, %v5563_v52  ;;  %v1320_v16 = vmul.f32 %v2708_v8, %v5566_v26  ;;  %v5568_v0 = vld [vmem:[#allocation60_spill] sm:$0xff] }
 0x842   :  { %v1472_v15 = vmul.f32 %v4760_v5, %v5569_v40 }
 0x843   :  { %v2002_v7 = vadd.f32 %v2001_v36, %v2000_v32  ;;  %v1221_v61 = vadd.f32 %v1217_v22, %v1170_v23  ;;  %v1171_v32 = vadd.f32 %v1167_v24, %v1120_v48  ;;  %v1370_v36 = vmul.f32 %v2709_v37, %v5565_v49 }
 0x844   :  { %v1473_v23 = vmul.f32 %v4760_v5, %v5571_v62 }
 0x845   :  { %2608 = vpush %v2002_v7  ;;  %v1272_v41 = vadd.f32 %v1268_v60, %v1221_v61  ;;  %v1222_v1 = vadd.f32 %v1218_v28, %v1171_v32  ;;  %v2710_v7 = vld [vmem:[%s5198_s0 + $0x45] ss:$0 sm:$0xff]  ;;  %v1930_v60 = vmul.f32 0.00390625, %v1929_v34  ;;  %s2582_s0 = sld [smem:[#allocation2 + $0x1]] }
 0x846   :  { %2610 = vpush %v2050_v10  ;;  %v1421_v58 = vmul.f32 %v2710_v7, %v5567_v51  ;;  %v1371_v10 = vmul.f32 %v2709_v37, %v5568_v0  ;;  %v1422_v53 = vmul.f32 %v2710_v7, %v5570_v17  ;;  %v1935_v0 = vsub.f32 %v4627_v13, %v4533_v9 }
 0x847   :  { %v1323_v30 = vadd.f32 %v1319_v18, %v1272_v41  ;;  %v1273_v57 = vadd.f32 %v1269_v35, %v1222_v1  ;;  %v1931_v48 = vadd.f32 1e-05, %v1930_v60  ;;  %v4815_v17 = vstv %s2583_s3 }
 0x849   :  { %v1374_v38 = vadd.f32 %v1370_v36, %v1323_v30  ;;  %v1324_v55 = vadd.f32 %v1320_v16, %v1273_v57  ;;  %2651 = vrsqrt.f32 %v1931_v48 }
 0x84b   :  { %v1425_v2 = vadd.f32 %v1421_v58, %v1374_v38  ;;  %v1375_v22 = vadd.f32 %v1371_v10, %v1324_v55  ;;  %v4802_v36 = vstv %s2582_s0  ;;  %v1936_v38 = vsub.f32 %v4629_v63, %v4533_v9 }
 0x84c   :  { %v2009_v9 = vsub.f32 %v4627_v13, %v4609_v43 }
 0x84d   :  { %v4773_v44 = vadd.f32 %v1472_v15, %v1425_v2  ;;  %v1426_v24 = vadd.f32 %v1422_v53, %v1375_v22 }
 0x84f   :  { %v4777_v42 = vadd.f32 %v1473_v23, %v1426_v24 }
 0x856   :  { %1556 = vrot.lane.b32.xlu0 %v4773_v44, %s2761_s30  ;;  %v2652_v49 = vpop.eup %2651 }
 0x857   :  { %v1934_v16 = vmul.f32 %v2652_v49, %v4802_v36 }
 0x859   :  { %v1937_v40 = vmul.f32 %v1934_v16, %v4537_v4  ;;  %v1938_v15 = vmul.f32 %v1934_v16, %v4541_v33  ;;  %v1939_v55 = vmul.f32 %v1935_v0, %v1934_v16  ;;  %v1940_v2 = vmul.f32 %v1936_v38, %v1934_v16  ;;  %v5572_v38 = vld [vmem:[#allocation51_spill] sm:$0xff] }
 0x85a   :  { %1574 = vrot.lane.b32.xlu0 %v4777_v42, %s2762_s6  ;;  %v2010_v4 = vsub.f32 %v4629_v63, %v4609_v43 }
 0x85b   :  { %v1942_v22 = vadd.f32 %v4815_v17, %v1937_v40  ;;  %v1943_v62 = vadd.f32 %v4815_v17, %v1938_v15  ;;  %v1944_v23 = vadd.f32 %v4815_v17, %v1939_v55  ;;  %v1945_v24 = vadd.f32 %v4815_v17, %v1940_v2 }
 0x876   :  { %s2609_s17 = spop %2608 }
 0x877   :  { %v2004_v61 = vstv %s2609_s17  ;;  %s2611_s18 = spop %2610 }
 0x878   :  { %v2005_v6 = vmul.f32 0.00390625, %v2004_v61  ;;  %v2052_v28 = vstv %s2611_s18 }
 0x879   :  { %v4782_v8 = vmul.f32 0.00390625, %v2052_v28  ;;  %v1947_v28 = vmax.f32 %v1943_v62, 0.0 }
 0x87a   :  { %v2006_v52 = vadd.f32 1e-05, %v2005_v6  ;;  %v1946_v6 = vmax.f32 %v1942_v22, 0.0 }
 0x87b   :  { %v4786_v18 = vsub.f32 %v4505_v39, %v4782_v8  ;;  %v4790_v32 = vsub.f32 %v4627_v13, %v4782_v8  ;;  %v4794_v41 = vsub.f32 %v4629_v63, %v4782_v8  ;;  %v1951_v16 = vmul.f32 %v1947_v28, %v4375_v3 }
 0x87c   :  { %2653 = vrsqrt.f32 %v2006_v52  ;;  %v1948_v52 = vmax.f32 %v1944_v23, 0.0 }
 0x87d   :  { %v2057_v12 = vmul.f32 %v4786_v18, %v4786_v18  ;;  %v2058_v35 = vmul.f32 %v4790_v32, %v4790_v32  ;;  %v2059_v37 = vmul.f32 %v4794_v41, %v4794_v41 }
 0x87f   :  { %v2063_v1 = vrot.slane %v2057_v12, 4  ;;  %v2064_v30 = vrot.slane %v2058_v35, 4  ;;  %v2066_v26 = vrot.slane %v2059_v37, 4  ;;  %v1949_v12 = vmax.f32 %v1945_v24, 0.0 }
 0x881   :  { %v2065_v7 = vsel %vm356_vm3, %v2063_v1, %v2064_v30  ;;  %v2067_v51 = vsel %vm356_vm3, %v2064_v30, %v2066_v26 }
 0x882   :  { %v2070_v58 = vsel %vm1590_vm4, %v2065_v7, 0.0  ;;  %v2071_v57 = vsel %vm1590_vm4, %v2067_v51, 0.0  ;;  %v1952_v7 = vmul.f32 %v1948_v52, %v4385_v21  ;;  %v1953_v51 = vmul.f32 %v1949_v12, %v4380_v27 }
 0x883   :  { %v2072_v10 = vadd.f32 %v2071_v57, %v2070_v58 }
 0x885   :  { %2073 = vadd.xlane.f32.xlu1 %v2072_v10  ;;  %v5573_v10 = vld [vmem:[#allocation53_spill] sm:$0xff] }
 0x889   :  { %v2654_v53 = vpop.eup %2653 }
 0x88a   :  { %v2008_v33 = vmul.f32 %v2654_v53, %v4802_v36 }
 0x88c   :  { %v2011_v34 = vmul.f32 %v2008_v33, %v4613_v29  ;;  %v2012_v60 = vmul.f32 %v2008_v33, %v4617_v54  ;;  %v2013_v48 = vmul.f32 %v2009_v9, %v2008_v33  ;;  %v2014_v61 = vmul.f32 %v2010_v4, %v2008_v33 }
 0x88d   :  { %v1950_v54 = vmul.f32 %v1946_v6, %v4370_v20 }
 0x88e   :  { %v2015_v35 = vadd.f32 %v2011_v34, %v4815_v17  ;;  %v2016_v37 = vadd.f32 %v2012_v60, %v4815_v17  ;;  %v2017_v49 = vadd.f32 %v2013_v48, %v4815_v17  ;;  %v2018_v43 = vadd.f32 %v2014_v61, %v4815_v17 }
 0x890   :  { %v2019_v1 = vmax.f32 %v2015_v35, 0.0  ;;  %v2020_v30 = vmax.f32 %v2016_v37, 0.0  ;;  %v2021_v26 = vmax.f32 %v2017_v49, 0.0  ;;  %v2022_v29 = vmax.f32 %v2018_v43, 0.0 }
 0x892   :  { %v2023_v58 = vmul.f32 %v4394_v59, %v2019_v1  ;;  %v2024_v57 = vmul.f32 %v4399_v31, %v2020_v30  ;;  %v2025_v0 = vmul.f32 %v5572_v38, %v2021_v26  ;;  %v2026_v40 = vmul.f32 %v5573_v10, %v2022_v29 }
 0x893   :  { %v2087_v29 = vsub.f32 %v4503_v14, %v4782_v8 }
 0x894   :  { %v4840_v15 = vadd.f32 %v2023_v58, %v1950_v54  ;;  %v4842_v55 = vadd.f32 %v2024_v57, %v1951_v16  ;;  %v4844_v2 = vadd.f32 %v2025_v0, %v1952_v7  ;;  %v4846_v20 = vadd.f32 %v2026_v40, %v1953_v51 }
 0x896   :  { %1558 = vrot.lane.b32.xlu1 %v4777_v42, %s2761_s30 }
 0x89a   :  { %1572 = vrot.lane.b32.xlu1 %v4773_v44, %s2762_s6 }
 0x8c9   :  { %v2118_v3 = vpop.xlane.xlu0 %2117 }
 0x8ca   :  { %v2119_v27 = vrot.slane %v2118_v3, 4 }
 0x8cc   :  { %v2120_v21 = vadd.f32 %v2119_v27, %v2118_v3 }
 0x8ce   :  { %v2121_v59 = vrot.slane %v2120_v21, 2 }
 0x8d0   :  { %v2122_v62 = vadd.f32 %v2121_v59, %v2120_v21 }
 0x8d2   :  { %v2123_v9 = vrot.slane %v2122_v62, 1 }
 0x8d4   :  { %v2124_v34 = vadd.f32 %v2123_v9, %v2122_v62 }
 0x90e   :  { %v2074_v31 = vpop.xlane.xlu1 %2073 }
 0x90f   :  { %v2075_v53 = vrot.slane %v2074_v31, 4 }
 0x911   :  { %v2076_v22 = vadd.f32 %v2075_v53, %v2074_v31 }
 0x912   :  { %v1559_v40 = vpop.permute.xlu1 %1558 }
 0x913   :  { %v2077_v23 = vrot.slane %v2076_v22, 2 }
 0x915   :  { %v2078_v24 = vadd.f32 %v2077_v23, %v2076_v22  ;;  %v1557_v22 = vpop.permute.xlu0 %1556 }
 0x917   :  { %v2079_v4 = vrot.slane %v2078_v24, 1 }
 0x919   :  { %v2080_v33 = vadd.f32 %v2079_v4, %v2078_v24  ;;  %v1569_v4 = vadd.f32 %v1559_v40, %v4777_v42  ;;  %v1475_v40 = vmul.f32 %v4760_v5, %v4048_v19 }
 0x91b   :  { %2612 = vpush %v2080_v33 }
 0x91c   :  { %2614 = vpush %v2124_v34  ;;  %v1575_v34 = vpop.permute.xlu0 %1574 }
 0x94c   :  { %s2613_s19 = spop %2612 }
 0x94d   :  { %v2082_v60 = vstv %s2613_s19  ;;  %s2615_s14 = spop %2614 }
 0x94e   :  { %v2083_v48 = vmul.f32 0.00390625, %v2082_v60  ;;  %v2126_v61 = vstv %s2615_s14  ;;  %v4906_v60 = vadd.f32 %v1575_v34, %v1569_v4 }
 0x94f   :  { %v4852_v6 = vmul.f32 0.00390625, %v2126_v61 }
 0x950   :  { %v2084_v28 = vadd.f32 1e-05, %v2083_v48 }
 0x951   :  { %v4856_v52 = vsub.f32 %v4505_v39, %v4852_v6  ;;  %v4860_v12 = vsub.f32 %v4627_v13, %v4852_v6  ;;  %v4864_v35 = vsub.f32 %v4629_v63, %v4852_v6  ;;  %v2165_v34 = vsub.f32 %v4503_v14, %v4852_v6 }
 0x952   :  { %2655 = vrsqrt.f32 %v2084_v28 }
 0x953   :  { %v2132_v37 = vmul.f32 %v4860_v12, %v4860_v12  ;;  %v2133_v49 = vmul.f32 %v4864_v35, %v4864_v35  ;;  %v2131_v43 = vmul.f32 %v4856_v52, %v4856_v52 }
 0x955   :  { %v2138_v39 = vrot.slane %v2132_v37, 4  ;;  %v2140_v1 = vrot.slane %v2133_v49, 4  ;;  %v2137_v30 = vrot.slane %v2131_v43, 4 }
 0x957   :  { %v2141_v13 = vsel %vm356_vm3, %v2138_v39, %v2140_v1  ;;  %v2139_v26 = vsel %vm356_vm3, %v2137_v30, %v2138_v39 }
 0x958   :  { %2144 = vrot.lane.b32.xlu0 %v2141_v13, %s2763_s8  ;;  %2142 = vrot.lane.b32.xlu1 %v2139_v26, %s2763_s8 }
 0x95f   :  { %v2656_v63 = vpop.eup %2655 }
 0x960   :  { %v2086_v54 = vmul.f32 %v2656_v63, %v4802_v36 }
 0x962   :  { %v2088_v16 = vmul.f32 %v2087_v29, %v2086_v54  ;;  %v2089_v7 = vmul.f32 %v2086_v54, %v4786_v18  ;;  %v2090_v51 = vmul.f32 %v2086_v54, %v4790_v32  ;;  %v2091_v58 = vmul.f32 %v2086_v54, %v4794_v41  ;;  %v5574_v32 = vld [vmem:[#allocation55_spill] sm:$0xff]  ;;  %v5575_v41 = vld [vmem:[#allocation57_spill] sm:$0xff] }
 0x964   :  { %v2092_v57 = vadd.f32 %v2088_v16, %v4815_v17  ;;  %v2093_v38 = vadd.f32 %v2089_v7, %v4815_v17  ;;  %v2094_v0 = vadd.f32 %v2090_v51, %v4815_v17  ;;  %v2095_v10 = vadd.f32 %v2091_v58, %v4815_v17 }
 0x966   :  { %v2096_v3 = vmax.f32 %v2092_v57, 0.0  ;;  %v2097_v8 = vmax.f32 %v2093_v38, 0.0  ;;  %v2098_v27 = vmax.f32 %v2094_v0, 0.0  ;;  %v2099_v21 = vmax.f32 %v2095_v10, 0.0 }
 0x967   :  { %v1474_v10 = vmul.f32 %v4760_v5, %v4153_v47 }
 0x968   :  { %v2100_v59 = vmul.f32 %v4468_v56, %v2096_v3  ;;  %v2101_v18 = vmul.f32 %v4473_v25, %v2097_v8  ;;  %v2102_v31 = vmul.f32 %v5574_v32, %v2098_v27  ;;  %v2103_v53 = vmul.f32 %v5575_v41, %v2099_v21  ;;  %v1573_v56 = vpop.permute.xlu1 %1572  ;;  %v5576_v3 = vld [vmem:[#allocation49_spill] sm:$0xff]  ;;  %v5577_v27 = vld [vmem:[#allocation47_spill] sm:$0xff] }
 0x969   :  { %v1568_v25 = vadd.f32 %v1557_v22, %v4773_v44  ;;  %v4925_v8 = vadd.f32 %v1474_v10, %v5576_v3  ;;  %v4930_v21 = vadd.f32 %v1475_v40, %v5577_v27 }
 0x96a   :  { %v4891_v62 = vadd.f32 %v2100_v59, %v4840_v15  ;;  %v4894_v23 = vadd.f32 %v2101_v18, %v4842_v55  ;;  %v4897_v24 = vadd.f32 %v2102_v31, %v4844_v2  ;;  %v4900_v9 = vadd.f32 %v2103_v53, %v4846_v20 }
 0x96b   :  { %v4904_v33 = vadd.f32 %v1573_v56, %v1568_v25  ;;  %v2189_v55 = vsel %vm1590_vm4, %v4906_v60, 0.0 }
 0x96d   :  { %v2188_v15 = vsel %vm1590_vm4, %v4904_v33, 0.0 }
 0x96e   :  { %v2190_v2 = vadd.f32 %v2189_v55, %v2188_v15 }
 0x977   :  { %2191 = vadd.xlane.f32.xlu0 %v2190_v2 }
 0x98d   :  { %2249 = vrot.lane.b32.xlu0 %v4904_v33, %s2763_s8 }
 0x9ca   :  { %v2143_v20 = vpop.permute.xlu1 %2142  ;;  %v2145_v44 = vpop.permute.xlu0 %2144 }
 0x9cb   :  { %v2148_v42 = vsel %vm1590_vm4, %v2143_v20, 0.0  ;;  %v2149_v48 = vsel %vm1590_vm4, %v2145_v44, 0.0 }
 0x9cc   :  { %v2150_v61 = vadd.f32 %v2149_v48, %v2148_v42 }
 0x9ce   :  { %2151 = vadd.xlane.f32.xlu1 %v2150_v61 }
 0x9df   :  { %2251 = vrot.lane.b32.xlu1 %v4906_v60, %s2763_s8 }
 0xa00   :  { %v2192_v28 = vpop.xlane.xlu0 %2191 }
 0xa01   :  { %v2193_v37 = vrot.slane %v2192_v28, 4 }
 0xa03   :  { %v2194_v49 = vadd.f32 %v2193_v37, %v2192_v28 }
 0xa04   :  { %v2250_v30 = vpop.permute.xlu0 %2249 }
 0xa05   :  { %v2195_v43 = vrot.slane %v2194_v49, 2  ;;  %v2255_v29 = vsel %vm1590_vm4, %v2250_v30, 0.0 }
 0xa07   :  { %v2196_v63 = vadd.f32 %v2195_v43, %v2194_v49 }
 0xa09   :  { %v2197_v58 = vrot.slane %v2196_v63, 1 }
 0xa0b   :  { %v2198_v0 = vadd.f32 %v2197_v58, %v2196_v63 }
 0xa57   :  { %v2152_v39 = vpop.xlane.xlu1 %2151 }
 0xa58   :  { %v2153_v1 = vrot.slane %v2152_v39, 4 }
 0xa5a   :  { %v2154_v13 = vadd.f32 %v2153_v1, %v2152_v39 }
 0xa5b   :  { %v2252_v26 = vpop.permute.xlu1 %2251 }
 0xa5c   :  { %v2155_v54 = vrot.slane %v2154_v13, 2  ;;  %v2256_v16 = vsel %vm1590_vm4, %v2252_v26, 0.0 }
 0xa5d   :  { %v2257_v7 = vadd.f32 %v2256_v16, %v2255_v29 }
 0xa5e   :  { %v2156_v51 = vadd.f32 %v2155_v54, %v2154_v13 }
 0xa5f   :  { %2258 = vadd.xlane.f32.xlu0 %v2257_v7 }
 0xa60   :  { %v2157_v57 = vrot.slane %v2156_v51, 1 }
 0xa62   :  { %v2158_v38 = vadd.f32 %v2157_v57, %v2156_v51 }
 0xa64   :  { %2616 = vpush %v2158_v38 }
 0xa65   :  { %2618 = vpush %v2198_v0 }
 0xa75   :  { %1560 = vrot.lane.b32.xlu0 %v4925_v8, %s2761_s30 }
 0xa79   :  { %1578 = vrot.lane.b32.xlu0 %v4930_v21, %s2762_s6 }
 0xa95   :  { %s2617_s20 = spop %2616 }
 0xa96   :  { %v2160_v59 = vstv %s2617_s20  ;;  %s2619_s21 = spop %2618 }
 0xa97   :  { %v2161_v18 = vmul.f32 0.00390625, %v2160_v59  ;;  %v2200_v47 = vstv %s2619_s21 }
 0xa98   :  { %v4934_v32 = vmul.f32 0.00390625, %v2200_v47 }
 0xa99   :  { %v2162_v19 = vadd.f32 1e-05, %v2161_v18 }
 0xa9a   :  { %v4938_v5 = vsub.f32 %v4904_v33, %v4934_v32  ;;  %v4942_v31 = vsub.f32 %v4906_v60, %v4934_v32 }
 0xa9b   :  { %2657 = vrsqrt.f32 %v2162_v19 }
 0xa9c   :  { %v2204_v41 = vmul.f32 %v4938_v5, %v4938_v5  ;;  %v2205_v53 = vmul.f32 %v4942_v31, %v4942_v31 }
 0xa9e   :  { %v2206_v22 = vsel %vm1590_vm4, %v2204_v41, 0.0  ;;  %v2207_v56 = vsel %vm1590_vm4, %v2205_v53, 0.0  ;;  %v2322_v41 = vrot.slane %v4906_v60, 4 }
 0xa9f   :  { %v2208_v25 = vadd.f32 %v2207_v56, %v2206_v22 }
 0xaa1   :  { %2209 = vadd.xlane.f32.xlu1 %v2208_v25 }
 0xaa8   :  { %v2658_v4 = vpop.eup %2657 }
 0xaa9   :  { %v2164_v15 = vmul.f32 %v2658_v4, %v4802_v36 }
 0xaab   :  { %v2166_v55 = vmul.f32 %v2165_v34, %v2164_v15  ;;  %v2167_v2 = vmul.f32 %v2164_v15, %v4856_v52  ;;  %v2168_v20 = vmul.f32 %v2164_v15, %v4860_v12  ;;  %v2169_v44 = vmul.f32 %v2164_v15, %v4864_v35 }
 0xaad   :  { %v2170_v42 = vadd.f32 %v2166_v55, %v4815_v17  ;;  %v2171_v48 = vadd.f32 %v2167_v2, %v4815_v17  ;;  %v2172_v61 = vadd.f32 %v2168_v20, %v4815_v17  ;;  %v2173_v28 = vadd.f32 %v2169_v44, %v4815_v17 }
 0xaaf   :  { %v2174_v37 = vmax.f32 %v2170_v42, 0.0  ;;  %v2175_v49 = vmax.f32 %v2171_v48, 0.0  ;;  %v2176_v14 = vmax.f32 %v2172_v61, 0.0  ;;  %v2177_v6 = vmax.f32 %v2173_v28, 0.0 }
 0xab1   :  { %v2178_v36 = vmul.f32 %v4562_v46, %v2174_v37  ;;  %v2179_v52 = vmul.f32 %v4567_v50, %v2175_v49  ;;  %v2180_v12 = vmul.f32 %v4572_v45, %v2176_v14  ;;  %v2181_v35 = vmul.f32 %v4577_v11, %v2177_v6 }
 0xab2   :  { %1562 = vrot.lane.b32.xlu1 %v4930_v21, %s2761_s30 }
 0xab3   :  { %v2182_v43 = vadd.f32 %v2178_v36, %v4891_v62  ;;  %v2183_v39 = vadd.f32 %v2179_v52, %v4894_v23  ;;  %v2184_v17 = vadd.f32 %v2180_v12, %v4897_v24  ;;  %v2185_v1 = vadd.f32 %v2181_v35, %v4900_v9 }
 0xab5   :  { %2481 = vst.msk [vmem:[%s5203_s5 + $0x20] sm:$0xff] %vm2475_vm5, %v2182_v43  ;;  %2482 = vst.msk [vmem:[%s5203_s5 + $0x28] sm:$0xff] %vm2475_vm5, %v2183_v39 }
 0xab6   :  { %2483 = vst.msk [vmem:[%s5203_s5 + $0x30] sm:$0xff] %vm2475_vm5, %v2184_v17  ;;  %1576 = vrot.lane.b32.xlu1 %v4925_v8, %s2762_s6  ;;  %s2584_s6 = sld [smem:[#allocation2 + $0x2]] }
 0xab7   :  { %2484 = vst.msk [vmem:[%s5203_s5 + $0x38] sm:$0xf] %vm2479_vm6, %v2185_v1 }
 0xae8   :  { %v2259_v46 = vpop.xlane.xlu0 %2258 }
 0xae9   :  { %v2260_v50 = vrot.slane %v2259_v46, 4 }
 0xaeb   :  { %v2261_v45 = vadd.f32 %v2260_v50, %v2259_v46 }
 0xaec   :  { %v1561_v10 = vpop.permute.xlu0 %1560 }
 0xaed   :  { %v2262_v11 = vrot.slane %v2261_v45, 2  ;;  %v1570_v3 = vadd.f32 %v1561_v10, %v4925_v8 }
 0xaef   :  { %v2263_v9 = vadd.f32 %v2262_v11, %v2261_v45 }
 0xaf0   :  { %v1579_v18 = vpop.permute.xlu0 %1578 }
 0xaf1   :  { %v2264_v26 = vrot.slane %v2263_v9, 1 }
 0xaf3   :  { %v2265_v54 = vadd.f32 %v2264_v26, %v2263_v9 }
 0xb2a   :  { %v2210_v62 = vpop.xlane.xlu1 %2209 }
 0xb2b   :  { %v2211_v23 = vrot.slane %v2210_v62, 4 }
 0xb2d   :  { %v2212_v24 = vadd.f32 %v2211_v23, %v2210_v62 }
 0xb2e   :  { %v1563_v0 = vpop.permute.xlu1 %1562 }
 0xb2f   :  { %v2213_v30 = vrot.slane %v2212_v24, 2  ;;  %v1571_v27 = vadd.f32 %v1563_v0, %v4930_v21 }
 0xb31   :  { %v2214_v13 = vadd.f32 %v2213_v30, %v2212_v24  ;;  %v5010_v47 = vadd.f32 %v1579_v18, %v1571_v27 }
 0xb32   :  { %v1577_v40 = vpop.permute.xlu1 %1576 }
 0xb33   :  { %v2215_v63 = vrot.slane %v2214_v13, 1  ;;  %v5008_v59 = vadd.f32 %v1577_v40, %v1570_v3  ;;  %v2325_v53 = vrot.slane %v5010_v47, 4 }
 0xb35   :  { %v2216_v29 = vadd.f32 %v2215_v63, %v2214_v13  ;;  %v2323_v19 = vrot.slane %v5008_v59, 4 }
 0xb37   :  { %2620 = vpush %v2216_v29  ;;  %v2324_v22 = vsel %vm356_vm3, %v2322_v41, %v2323_v19  ;;  %v2326_v56 = vsel %vm356_vm3, %v2323_v19, %v2325_v53  ;;  %v2225_v53 = vsub.f32 %v5010_v47, %v4934_v32 }
 0xb38   :  { %2622 = vpush %v2265_v54  ;;  %v2329_v25 = vsel %vm1590_vm4, %v2324_v22, 0.0  ;;  %v2330_v8 = vsel %vm1590_vm4, %v2326_v56, 0.0 }
 0xb39   :  { %v2331_v21 = vadd.f32 %v2330_v8, %v2329_v25 }
 0xb68   :  { %s4988_s27 = spop %2620 }
 0xb69   :  { %s2623_s28 = spop %2622  ;;  %v2218_v50 = vstv %s4988_s27 }
 0xb6a   :  { %v2267_v16 = vstv %s2623_s28  ;;  %v2219_v45 = vmul.f32 0.00390625, %v2218_v50  ;;  %v2713_v50 = vld [vmem:[%s5202_s4 + $0x10] sm:$0xff] }
 0xb6b   :  { %v4990_v7 = vmul.f32 0.00390625, %v2267_v16 }
 0xb6c   :  { %v2220_v11 = vadd.f32 1e-05, %v2219_v45 }
 0xb6d   :  { %v4994_v51 = vsub.f32 %v4904_v33, %v4990_v7  ;;  %v4998_v58 = vsub.f32 %v4906_v60, %v4990_v7 }
 0xb6e   :  { %2659 = vrsqrt.f32 %v2220_v11  ;;  %v2714_v11 = vld [vmem:[%s5202_s4 + $0x18] sm:$0xf] }
 0xb6f   :  { %v2272_v57 = vmul.f32 %v4998_v58, %v4998_v58  ;;  %v2271_v38 = vmul.f32 %v4994_v51, %v4994_v51 }
 0xb71   :  { %2277 = vrot.lane.b32.xlu0 %v2272_v57, %s2763_s8  ;;  %2275 = vrot.lane.b32.xlu1 %v2271_v38, %s2763_s8  ;;  %v5046_v38 = vstv %s2584_s6 }
 0xb7b   :  { %v2660_v57 = vpop.eup %2659 }
 0xb7c   :  { %v2223_v3 = vmul.f32 %v2660_v57, %v5046_v38  ;;  %v2718_v57 = vld [vmem:[%s5202_s4 + $0x38] sm:$0xf] }
 0xb7e   :  { %v2226_v25 = vmul.f32 %v2223_v3, %v4938_v5  ;;  %v2227_v8 = vmul.f32 %v2223_v3, %v4942_v31  ;;  %v2299_v5 = vsub.f32 %v5010_v47, %v4990_v7 }
 0xb90   :  { %2332 = vadd.xlane.f32.xlu0 %v2331_v21 }
 0xba6   :  { %2397 = vrot.lane.b32.xlu0 %v2324_v22, %s2763_s8  ;;  %v2224_v22 = vsub.f32 %v5008_v59, %v4934_v32  ;;  %v2298_v32 = vsub.f32 %v5008_v59, %v4990_v7 }
 0xba8   :  { %v2228_v21 = vmul.f32 %v2224_v22, %v2223_v3 }
 0xbe3   :  { %v2276_v4 = vpop.permute.xlu1 %2275  ;;  %v2278_v34 = vpop.permute.xlu0 %2277 }
 0xbe4   :  { %v2281_v15 = vsel %vm1590_vm4, %v2276_v4, 0.0  ;;  %v2282_v55 = vsel %vm1590_vm4, %v2278_v34, 0.0  ;;  %v2229_v4 = vmul.f32 %v2225_v53, %v2223_v3  ;;  %v5059_v34 = vstv %s2585_s9 }
 0xbe5   :  { %v2283_v2 = vadd.f32 %v2282_v55, %v2281_v15  ;;  %v2231_v55 = vadd.f32 %v5059_v34, %v2226_v25 }
 0xbe7   :  { %2284 = vadd.xlane.f32.xlu1 %v2283_v2  ;;  %v2232_v2 = vadd.f32 %v5059_v34, %v2227_v8 }
 0xbf8   :  { %2399 = vrot.lane.b32.xlu1 %v2326_v56, %s2763_s8 }
 0xc19   :  { %v2333_v20 = vpop.xlane.xlu0 %2332 }
 0xc1a   :  { %v2334_v44 = vrot.slane %v2333_v20, 4 }
 0xc1c   :  { %v2335_v42 = vadd.f32 %v2334_v44, %v2333_v20  ;;  %v2233_v20 = vadd.f32 %v5059_v34, %v2228_v21  ;;  %v2234_v44 = vadd.f32 %v5059_v34, %v2229_v4 }
 0xc1d   :  { %v2398_v37 = vpop.permute.xlu0 %2397 }
 0xc1e   :  { %v2336_v48 = vrot.slane %v2335_v42, 2  ;;  %v2403_v36 = vsel %vm1590_vm4, %v2398_v37, 0.0  ;;  %v2235_v37 = vmax.f32 %v2231_v55, 0.0 }
 0xc20   :  { %v2337_v6 = vadd.f32 %v2336_v48, %v2335_v42 }
 0xc22   :  { %v2338_v39 = vrot.slane %v2337_v6, 1 }
 0xc24   :  { %v2339_v46 = vadd.f32 %v2338_v39, %v2337_v6  ;;  %v2238_v6 = vmax.f32 %v2234_v44, 0.0 }
 0xc70   :  { %v2285_v61 = vpop.xlane.xlu1 %2284 }
 0xc71   :  { %v2286_v28 = vrot.slane %v2285_v61, 4 }
 0xc73   :  { %v2287_v49 = vadd.f32 %v2286_v28, %v2285_v61 }
 0xc74   :  { %v2400_v14 = vpop.permute.xlu1 %2399 }
 0xc75   :  { %v2288_v52 = vrot.slane %v2287_v49, 2  ;;  %v2404_v12 = vsel %vm1590_vm4, %v2400_v14, 0.0  ;;  %v2237_v14 = vmax.f32 %v2233_v20, 0.0 }
 0xc76   :  { %v2405_v35 = vadd.f32 %v2404_v12, %v2403_v36 }
 0xc77   :  { %v2289_v43 = vadd.f32 %v2288_v52, %v2287_v49  ;;  %v2236_v49 = vmax.f32 %v2232_v2, 0.0  ;;  %v2241_v45 = vmul.f32 %v2713_v50, %v2237_v14 }
 0xc78   :  { %2406 = vadd.xlane.f32.xlu0 %v2405_v35 }
 0xc79   :  { %v2290_v17 = vrot.slane %v2289_v43, 1 }
 0xc7b   :  { %v2291_v1 = vadd.f32 %v2290_v17, %v2289_v43 }
 0xc7d   :  { %2624 = vpush %v2291_v1  ;;  %v2712_v1 = vld [vmem:[%s5202_s4 + $0x8] sm:$0xff] }
 0xc7e   :  { %2626 = vpush %v2339_v46  ;;  %v2240_v46 = vmul.f32 %v2712_v1, %v2236_v49 }
 0xcae   :  { %s2625_s13 = spop %2624 }
 0xcaf   :  { %v2293_v62 = vstv %s2625_s13  ;;  %s2627_s29 = spop %2626 }
 0xcb0   :  { %v2294_v23 = vmul.f32 0.00390625, %v2293_v62  ;;  %v2341_v24 = vstv %s2627_s29  ;;  %v2242_v62 = vmul.f32 %v2714_v11, %v2238_v6 }
 0xcb1   :  { %v5026_v9 = vmul.f32 0.00390625, %v2341_v24 }
 0xcb2   :  { %v2295_v30 = vadd.f32 1e-05, %v2294_v23  ;;  %v2715_v23 = vld [vmem:[%s5202_s4 + $0x20] sm:$0xff] }
 0xcb3   :  { %v5030_v13 = vsub.f32 %v4906_v60, %v5026_v9  ;;  %v5034_v26 = vsub.f32 %v5008_v59, %v5026_v9  ;;  %v5038_v63 = vsub.f32 %v5010_v47, %v5026_v9 }
 0xcb4   :  { %2661 = vrsqrt.f32 %v2295_v30  ;;  %v2716_v30 = vld [vmem:[%s5202_s4 + $0x28] sm:$0xff] }
 0xcb5   :  { %v2346_v29 = vmul.f32 %v5030_v13, %v5030_v13  ;;  %v2347_v54 = vmul.f32 %v5034_v26, %v5034_v26  ;;  %v2348_v16 = vmul.f32 %v5038_v63, %v5038_v63 }
 0xcb7   :  { %v2352_v0 = vrot.slane %v2346_v29, 4  ;;  %v2353_v10 = vrot.slane %v2347_v54, 4  ;;  %v2355_v40 = vrot.slane %v2348_v16, 4  ;;  %v2717_v54 = vld [vmem:[%s5202_s4 + $0x30] sm:$0xff] }
 0xcb9   :  { %v2354_v27 = vsel %vm356_vm3, %v2352_v0, %v2353_v10  ;;  %v2356_v18 = vsel %vm356_vm3, %v2353_v10, %v2355_v40 }
 0xcba   :  { %v2359_v19 = vsel %vm1590_vm4, %v2354_v27, 0.0  ;;  %v2360_v41 = vsel %vm1590_vm4, %v2356_v18, 0.0 }
 0xcbb   :  { %v2361_v56 = vadd.f32 %v2360_v41, %v2359_v19 }
 0xcbd   :  { %2362 = vadd.xlane.f32.xlu1 %v2361_v56 }
 0xcc1   :  { %v2662_v15 = vpop.eup %2661 }
 0xcc2   :  { %v2297_v31 = vmul.f32 %v2662_v15, %v5046_v38 }
 0xcc4   :  { %v2300_v42 = vmul.f32 %v2297_v31, %v4994_v51  ;;  %v2301_v48 = vmul.f32 %v2297_v31, %v4998_v58  ;;  %v2302_v61 = vmul.f32 %v2298_v32, %v2297_v31  ;;  %v2303_v28 = vmul.f32 %v2299_v5, %v2297_v31  ;;  %v2711_v58 = vld [vmem:[%s5202_s4] sm:$0xff] }
 0xcc5   :  { %v2239_v17 = vmul.f32 %v2711_v58, %v2235_v37 }
 0xcc6   :  { %v2304_v36 = vadd.f32 %v2300_v42, %v5059_v34  ;;  %v2305_v52 = vadd.f32 %v2301_v48, %v5059_v34  ;;  %v2306_v12 = vadd.f32 %v2302_v61, %v5059_v34  ;;  %v2307_v7 = vadd.f32 %v2303_v28, %v5059_v34 }
 0xcc8   :  { %v2308_v35 = vmax.f32 %v2304_v36, 0.0  ;;  %v2309_v43 = vmax.f32 %v2305_v52, 0.0  ;;  %v2310_v39 = vmax.f32 %v2306_v12, 0.0  ;;  %v2311_v51 = vmax.f32 %v2307_v7, 0.0 }
 0xcc9   :  { %v2376_v12 = vsub.f32 %v4904_v33, %v5026_v9 }
 0xcca   :  { %v2312_v24 = vmul.f32 %v2715_v23, %v2308_v35  ;;  %v2313_v29 = vmul.f32 %v2716_v30, %v2309_v43  ;;  %v2314_v16 = vmul.f32 %v2717_v54, %v2310_v39  ;;  %v2315_v0 = vmul.f32 %v2718_v57, %v2311_v51  ;;  %v2721_v23 = vld [vmem:[%s5202_s4 + $0x50] sm:$0xff]  ;;  %v2722_v30 = vld [vmem:[%s5202_s4 + $0x58] sm:$0xf] }
 0xccc   :  { %v5100_v10 = vadd.f32 %v2312_v24, %v2239_v17  ;;  %v5102_v40 = vadd.f32 %v2313_v29, %v2240_v46  ;;  %v5104_v3 = vadd.f32 %v2314_v16, %v2241_v45  ;;  %v5106_v27 = vadd.f32 %v2315_v0, %v2242_v62 }
 0xd01   :  { %v2407_v18 = vpop.xlane.xlu0 %2406 }
 0xd02   :  { %v2408_v19 = vrot.slane %v2407_v18, 4 }
 0xd04   :  { %v2409_v41 = vadd.f32 %v2408_v19, %v2407_v18 }
 0xd06   :  { %v2410_v53 = vrot.slane %v2409_v41, 2 }
 0xd08   :  { %v2411_v8 = vadd.f32 %v2410_v53, %v2409_v41 }
 0xd0a   :  { %v2412_v15 = vrot.slane %v2411_v8, 1 }
 0xd0c   :  { %v2413_v20 = vadd.f32 %v2412_v15, %v2411_v8 }
 0xd46   :  { %v2363_v22 = vpop.xlane.xlu1 %2362 }
 0xd47   :  { %v2364_v56 = vrot.slane %v2363_v22, 4 }
 0xd49   :  { %v2365_v25 = vadd.f32 %v2364_v56, %v2363_v22 }
 0xd4b   :  { %v2366_v21 = vrot.slane %v2365_v25, 2 }
 0xd4d   :  { %v2367_v4 = vadd.f32 %v2366_v21, %v2365_v25 }
 0xd4f   :  { %v2368_v55 = vrot.slane %v2367_v4, 1 }
 0xd51   :  { %v2369_v2 = vadd.f32 %v2368_v55, %v2367_v4 }
 0xd53   :  { %2628 = vpush %v2369_v2 }
 0xd54   :  { %2630 = vpush %v2413_v20 }
 0xd84   :  { %s2629_s24 = spop %2628 }
 0xd85   :  { %v2371_v44 = vstv %s2629_s24  ;;  %s2631_s25 = spop %2630 }
 0xd86   :  { %v2372_v32 = vmul.f32 0.00390625, %v2371_v44  ;;  %v2415_v5 = vstv %s2631_s25 }
 0xd87   :  { %v5108_v31 = vmul.f32 0.00390625, %v2415_v5 }
 0xd88   :  { %v2373_v42 = vadd.f32 1e-05, %v2372_v32 }
 0xd89   :  { %v5112_v48 = vsub.f32 %v4906_v60, %v5108_v31  ;;  %v5116_v61 = vsub.f32 %v5008_v59, %v5108_v31  ;;  %v5120_v28 = vsub.f32 %v5010_v47, %v5108_v31  ;;  %v2454_v2 = vsub.f32 %v4904_v33, %v5108_v31 }
 0xd8a   :  { %2663 = vrsqrt.f32 %v2373_v42 }
 0xd8b   :  { %v2421_v37 = vmul.f32 %v5116_v61, %v5116_v61  ;;  %v2422_v49 = vmul.f32 %v5120_v28, %v5120_v28  ;;  %v2420_v14 = vmul.f32 %v5112_v48, %v5112_v48 }
 0xd8d   :  { %v2427_v60 = vrot.slane %v2421_v37, 4  ;;  %v2429_v6 = vrot.slane %v2422_v49, 4  ;;  %v2426_v36 = vrot.slane %v2420_v14, 4 }
 0xd8f   :  { %v2430_v59 = vsel %vm356_vm3, %v2427_v60, %v2429_v6  ;;  %v2428_v52 = vsel %vm356_vm3, %v2426_v36, %v2427_v60 }
 0xd90   :  { %2433 = vrot.lane.b32.xlu1 %v2430_v59, %s2763_s8  ;;  %2431 = vrot.lane.b32.xlu0 %v2428_v52, %s2763_s8  ;;  %v2725_v59 = vld [vmem:[%s5202_s4 + $0x70] sm:$0xff] }
 0xd97   :  { %v2664_v47 = vpop.eup %2663 }
 0xd98   :  { %v2375_v7 = vmul.f32 %v2664_v47, %v5046_v38 }
 0xd9a   :  { %v2377_v35 = vmul.f32 %v2376_v12, %v2375_v7  ;;  %v2378_v43 = vmul.f32 %v2375_v7, %v5030_v13  ;;  %v2379_v39 = vmul.f32 %v2375_v7, %v5034_v26  ;;  %v2380_v51 = vmul.f32 %v2375_v7, %v5038_v63  ;;  %v2719_v13 = vld [vmem:[%s5202_s4 + $0x40] sm:$0xff]  ;;  %v2720_v26 = vld [vmem:[%s5202_s4 + $0x48] sm:$0xff] }
 0xd9c   :  { %v2381_v58 = vadd.f32 %v2377_v35, %v5059_v34  ;;  %v2382_v17 = vadd.f32 %v2378_v43, %v5059_v34  ;;  %v2383_v1 = vadd.f32 %v2379_v39, %v5059_v34  ;;  %v2384_v46 = vadd.f32 %v2380_v51, %v5059_v34 }
 0xd9e   :  { %v2385_v50 = vmax.f32 %v2381_v58, 0.0  ;;  %v2386_v45 = vmax.f32 %v2382_v17, 0.0  ;;  %v2387_v9 = vmax.f32 %v2383_v1, 0.0  ;;  %v2388_v11 = vmax.f32 %v2384_v46, 0.0 }
 0xda0   :  { %v2389_v62 = vmul.f32 %v2719_v13, %v2385_v50  ;;  %v2390_v63 = vmul.f32 %v2720_v26, %v2386_v45  ;;  %v2391_v24 = vmul.f32 %v2721_v23, %v2387_v9  ;;  %v2392_v29 = vmul.f32 %v2722_v30, %v2388_v11 }
 0xda2   :  { %v2393_v54 = vadd.f32 %v2389_v62, %v5100_v10  ;;  %v2394_v16 = vadd.f32 %v2390_v63, %v5102_v40  ;;  %v2395_v57 = vadd.f32 %v2391_v24, %v5104_v3  ;;  %v2396_v0 = vadd.f32 %v2392_v29, %v5106_v27 }
 0xe02   :  { %v2434_v18 = vpop.permute.xlu1 %2433  ;;  %v2432_v19 = vpop.permute.xlu0 %2431 }
 0xe03   :  { %v2438_v41 = vsel %vm1590_vm4, %v2434_v18, 0.0  ;;  %v2437_v53 = vsel %vm1590_vm4, %v2432_v19, 0.0 }
 0xe04   :  { %v2439_v22 = vadd.f32 %v2438_v41, %v2437_v53 }
 0xe06   :  { %2440 = vadd.xlane.f32.xlu1 %v2439_v22 }
 0xe8f   :  { %v2441_v56 = vpop.xlane.xlu1 %2440 }
 0xe90   :  { %v2442_v25 = vrot.slane %v2441_v56, 4 }
 0xe92   :  { %v2443_v8 = vadd.f32 %v2442_v25, %v2441_v56 }
 0xe94   :  { %v2444_v21 = vrot.slane %v2443_v8, 2 }
 0xe96   :  { %v2445_v4 = vadd.f32 %v2444_v21, %v2443_v8 }
 0xe98   :  { %v2446_v10 = vrot.slane %v2445_v4, 1 }
 0xe9a   :  { %v2447_v15 = vadd.f32 %v2446_v10, %v2445_v4 }
 0xe9c   :  { %2632 = vpush %v2447_v15 }
 0xecd   :  { %s2633_s13 = spop %2632 }
 0xece   :  { %v2449_v40 = vstv %s2633_s13 }
 0xecf   :  { %v2450_v3 = vmul.f32 0.00390625, %v2449_v40 }
 0xed1   :  { %v2451_v27 = vadd.f32 1e-05, %v2450_v3 }
 0xed3   :  { %2665 = vrsqrt.f32 %v2451_v27 }
 0xee0   :  { %v2666_v55 = vpop.eup %2665 }
 0xee1   :  { %v2453_v20 = vmul.f32 %v2666_v55, %v5046_v38  ;;  %v2723_v38 = vld [vmem:[%s5202_s4 + $0x60] sm:$0xff] }
 0xee3   :  { %v2455_v44 = vmul.f32 %v2454_v2, %v2453_v20  ;;  %v2456_v32 = vmul.f32 %v2453_v20, %v5112_v48  ;;  %v2457_v5 = vmul.f32 %v2453_v20, %v5116_v61  ;;  %v2458_v42 = vmul.f32 %v2453_v20, %v5120_v28  ;;  %v2724_v61 = vld [vmem:[%s5202_s4 + $0x68] sm:$0xff] }
 0xee5   :  { %v2459_v37 = vadd.f32 %v2455_v44, %v5059_v34  ;;  %v2460_v49 = vadd.f32 %v2456_v32, %v5059_v34  ;;  %v2461_v14 = vadd.f32 %v2457_v5, %v5059_v34  ;;  %v2462_v60 = vadd.f32 %v2458_v42, %v5059_v34  ;;  %v2726_v34 = vld [vmem:[%s5202_s4 + $0x78] sm:$0xf] }
 0xee7   :  { %v2463_v6 = vmax.f32 %v2459_v37, 0.0  ;;  %v2464_v36 = vmax.f32 %v2460_v49, 0.0  ;;  %v2465_v33 = vmax.f32 %v2461_v14, 0.0  ;;  %v2466_v31 = vmax.f32 %v2462_v60, 0.0 }
 0xee9   :  { %v2467_v48 = vmul.f32 %v2723_v38, %v2463_v6  ;;  %v2468_v28 = vmul.f32 %v2724_v61, %v2464_v36  ;;  %v2469_v52 = vmul.f32 %v2725_v59, %v2465_v33  ;;  %v2470_v47 = vmul.f32 %v2726_v34, %v2466_v31 }
 0xeeb   :  { %v2471_v12 = vadd.f32 %v2467_v48, %v2393_v54  ;;  %v2472_v7 = vadd.f32 %v2468_v28, %v2394_v16  ;;  %v2473_v35 = vadd.f32 %v2469_v52, %v2395_v57  ;;  %v2474_v43 = vadd.f32 %v2470_v47, %v2396_v0 }
 0xeed   :  { %2485 = vst.msk [vmem:[%s5203_s5 + $0x40] sm:$0xff] %vm2475_vm5, %v2471_v12  ;;  %2486 = vst.msk [vmem:[%s5203_s5 + $0x48] sm:$0xff] %vm2475_vm5, %v2472_v7 }
 0xeee   :  { %2487 = vst.msk [vmem:[%s5203_s5 + $0x50] sm:$0xff] %vm2475_vm5, %v2473_v35 }
 0xeef   :  { %2488 = vst.msk [vmem:[%s5203_s5 + $0x58] sm:$0xf] %vm2479_vm6, %v2474_v43 }
 0xef0   :  { %2493 = vsyncpa [#allocation3], 1 }
 0xef1   :  { %2494 = vsyncpa [#allocation5], 1 }

</bundles_post_ra>
